<compile_context>
chip_gen: v7x
topology: tpu7x:2x2x1
jax: 0.10.0
libtpu: 0.0.40
codegen_flags: <defaults>
</compile_context>

<pallas_src>
import functools

import numpy as np
import jax
import jax.numpy as jnp
from jax import lax
from jax.experimental import pallas as pl
from jax.experimental.pallas import tpu as pltpu

BN_EPS = 1e-5
MXU_DTYPE = jnp.bfloat16     # MXU-native operand dtype; accumulation stays f32.


def _round_up(x, m):
    return (x + m - 1) // m * m


# ----------------------------------------------------------------------------
# Fused kernel: whole network for one image per grid step
# ----------------------------------------------------------------------------
def _fused_cnn_kernel(x_ref, w1_ref, b1_ref, w2a_ref, w2b_ref, b2_ref,
                      w3_ref, b3_ref, wfc_ref, o_ref, *, c1):
    f32 = jnp.float32
    x = x_ref[0]                                        # [34, LIN] padded input, HL layout

    # ---- Block1: conv 3x3 s1 p1 (+ folded BN) as ONE dot on a kh-concatenated LHS ----
    lhs1 = jnp.concatenate([x[0:32, :], x[1:33, :], x[2:34, :]], axis=1)
    r1 = jnp.dot(lhs1.astype(MXU_DTYPE), w1_ref[...], preferred_element_type=f32)
    r1 = jnp.maximum(r1 + b1_ref[...], 0.0)             # [32, L1], lane = w*C1 + c

    # ---- Block1 AvgPool 2x2 s1 p1 (count_include_pad), 32x32 region only -------------
    l1 = r1.shape[1]
    vs = r1 + jnp.concatenate([jnp.zeros((1, l1), f32), r1[0:31, :]], axis=0)   # + row h-1
    rolled = pltpu.roll(vs, shift=c1, axis=1)                                    # + col w-1
    lane = lax.broadcasted_iota(jnp.int32, vs.shape, 1)
    p1 = 0.25 * (vs + jnp.where(lane >= c1, rolled, 0.0))                        # [32, L1]

    # ---- regroup rows by (h mod 4): G_q[t] = p1[4t + q] -------------------------------
    g = []
    for q in range(4):
        g.append(jnp.concatenate([p1[4 * t + q:4 * t + q + 1, :] for t in range(8)],
                                 axis=0).astype(MXU_DTYPE))                      # [8, L1]

    # ---- Block2: conv 2x2 s2 (+BN) + ReLU, then AvgPool 2x2 s2 (h-half explicit) -----
    w2a = w2a_ref[...]
    w2b = w2b_ref[...]
    ye = (jnp.dot(g[0], w2a, preferred_element_type=f32)
          + jnp.dot(g[1], w2b, preferred_element_type=f32))      # conv2 rows 0,2,...,14
    yo = (jnp.dot(g[2], w2a, preferred_element_type=f32)
          + jnp.dot(g[3], w2b, preferred_element_type=f32))      # conv2 rows 1,3,...,15
    ph = jnp.maximum(ye + b2_ref[...], 0.0) + jnp.maximum(yo + b2_ref[...], 0.0)  # [8, L2]

    # ---- Block3: conv 3x3 s1 p2 (+BN+ReLU); pool2's w-half & the 1/4 factor are folded
    #      into the banded w3 weights ---------------------------------------------------
    l2 = ph.shape[1]
    php = jnp.concatenate([jnp.zeros((2, l2), f32), ph, jnp.zeros((2, l2), f32)], axis=0)
    lhs3 = jnp.concatenate([php[0:10, :], php[1:11, :], php[2:12, :]], axis=1)   # [10, 3*L2]
    r3 = jnp.dot(lhs3.astype(MXU_DTYPE), w3_ref[...], preferred_element_type=f32)
    r3 = jnp.maximum(r3 + b3_ref[...], 0.0)              # [10, L3], lane = n*C3 + o

    # ---- FC (bias=False): flatten rows by lane-concat, one dot, lane-dense [1,128] ----
    lhs_fc = jnp.concatenate([r3[m:m + 1, :] for m in range(10)], axis=1)        # [1, 10*L3]
    o_ref[0] = jnp.dot(lhs_fc.astype(MXU_DTYPE), wfc_ref[...],
                       preferred_element_type=f32)


# ----------------------------------------------------------------------------
# One-time parameter preparation (outside jit): BN folding + banded matmul weights
# ----------------------------------------------------------------------------
def prepare_params(params):
    def fold(p):
        scale = np.asarray(p["bn_gamma"], np.float32) / np.sqrt(
            np.asarray(p["bn_var"], np.float32) + BN_EPS)
        bias = (np.asarray(p["b"], np.float32) - np.asarray(p["bn_mean"], np.float32)) * scale \
            + np.asarray(p["bn_beta"], np.float32)
        return scale, bias

    w1 = np.asarray(params["block1"]["w"], np.float32)   # [C1, Cin, 3, 3]
    w2 = np.asarray(params["block2"]["w"], np.float32)   # [C2, C1, 2, 2]
    w3 = np.asarray(params["block3"]["w"], np.float32)   # [C3, C2, 3, 3]
    wfc = np.asarray(params["fc_w"], np.float32)          # [ncls, 100*C3]
    c1, cin = w1.shape[0], w1.shape[1]
    c2, c3, ncls = w2.shape[0], w3.shape[0], wfc.shape[0]

    s1, b1 = fold(params["block1"])
    s2, b2 = fold(params["block2"])
    s3, b3 = fold(params["block3"])
    w1t = np.transpose(w1 * s1[:, None, None, None], (2, 3, 1, 0))   # [kh, kw, cin, c1]
    w2t = np.transpose(w2 * s2[:, None, None, None], (2, 3, 1, 0))   # [dh, dw, c1, c2]
    w3t = np.transpose(w3 * s3[:, None, None, None], (2, 3, 1, 0))   # [s, t, c2, c3]

    lin = _round_up(34 * cin, 128)
    l1 = _round_up(32 * c1, 128)
    l2 = _round_up(16 * c2, 128)
    l3 = _round_up(10 * c3, 128)
    kpad = _round_up(ncls, 128)

    # Block1 band: rows (kh, j, c) of the padded input, cols (w, o).
    w1b = np.zeros((3 * lin, l1), np.float32)
    for kh in range(3):
        for w in range(32):
            for kw in range(3):
                j = w + kw
                r0 = kh * lin + j * cin
                w1b[r0:r0 + cin, w * c1:(w + 1) * c1] = w1t[kh, kw]
    b1hl = np.zeros((1, l1), np.float32)
    b1hl[0, :32 * c1] = np.tile(b1, 32)

    # Block2 bands (one per conv row-tap dh): rows (j, c) of p1, cols (b, o).
    w2band = [np.zeros((l1, l2), np.float32) for _ in range(2)]
    for dh in range(2):
        for b in range(16):
            for dw in range(2):
                j = 2 * b + dw
                w2band[dh][j * c1:(j + 1) * c1, b * c2:(b + 1) * c2] = w2t[dh, dw]
    b2hl = np.zeros((1, l2), np.float32)
    b2hl[0, :16 * c2] = np.tile(b2, 16)

    # Block3 band: rows (s, j, c) of ph (pre-pool2 row-sums); pool2's w-half + 1/4 folded in.
    w3b = np.zeros((3 * l2, l3), np.float32)
    for s in range(3):
        for n in range(10):
            for t in range(3):
                b = n + t - 2
                if 0 <= b <= 7:
                    for v in range(2):
                        j = 2 * b + v
                        r0 = s * l2 + j * c2
                        w3b[r0:r0 + c2, n * c3:(n + 1) * c3] = 0.25 * w3t[s, t]
    b3hl = np.zeros((1, l3), np.float32)
    b3hl[0, :10 * c3] = np.tile(b3, 10)

    # FC: rows (m, n*C3+o) matching the kernel's lane-concat flatten; cols padded to 128.
    wfcb = np.zeros((10 * l3, kpad), np.float32)
    tmp = np.transpose(wfc.reshape(ncls, c3, 10, 10), (2, 3, 1, 0))   # [m, n, o, k]
    for m in range(10):
        wfcb[m * l3:m * l3 + 10 * c3, :ncls] = tmp[m].reshape(10 * c3, ncls)

    return dict(
        w1=jnp.asarray(w1b, MXU_DTYPE), b1=jnp.asarray(b1hl),
        w2a=jnp.asarray(w2band[0], MXU_DTYPE), w2b=jnp.asarray(w2band[1], MXU_DTYPE),
        b2=jnp.asarray(b2hl),
        w3=jnp.asarray(w3b, MXU_DTYPE), b3=jnp.asarray(b3hl),
        wfc=jnp.asarray(wfcb, MXU_DTYPE),
        cin=cin, c1=c1, ncls=ncls, lin=lin,
    )


# ----------------------------------------------------------------------------
# Forward pass (inference semantics, 32x32 input)
# ----------------------------------------------------------------------------
def cnn_3layer_fc_forward(x_nchw, kp):
    cin, c1, ncls, lin = kp["cin"], kp["c1"], kp["ncls"], kp["lin"]
    n = x_nchw.shape[0]
    assert x_nchw.shape[1] == cin and x_nchw.shape[2] == 32 and x_nchw.shape[3] == 32

    # Tiny input-only prep: NCHW -> "HL" layout [h, w*Cin + c], conv1 padding applied.
    x_hl = jnp.transpose(x_nchw, (0, 2, 3, 1)).astype(jnp.float32).reshape(n, 32, 32 * cin)
    x_hl = jnp.pad(x_hl, ((0, 0), (1, 1), (cin, lin - 33 * cin)))     # [N, 34, LIN]

    kcols = kp["wfc"].shape[1]
    kernel = functools.partial(_fused_cnn_kernel, c1=c1)
    out = pl.pallas_call(
        kernel,
        out_shape=jax.ShapeDtypeStruct((n, 1, kcols), jnp.float32),
        grid=(n,),
        in_specs=[
            pl.BlockSpec((1, 34, lin), lambda i: (i, 0, 0)),
            pl.BlockSpec(kp["w1"].shape, lambda i: (0, 0)),
            pl.BlockSpec(kp["b1"].shape, lambda i: (0, 0)),
            pl.BlockSpec(kp["w2a"].shape, lambda i: (0, 0)),
            pl.BlockSpec(kp["w2b"].shape, lambda i: (0, 0)),
            pl.BlockSpec(kp["b2"].shape, lambda i: (0, 0)),
            pl.BlockSpec(kp["w3"].shape, lambda i: (0, 0)),
            pl.BlockSpec(kp["b3"].shape, lambda i: (0, 0)),
            pl.BlockSpec(kp["wfc"].shape, lambda i: (0, 0)),
        ],
        out_specs=pl.BlockSpec((1, 1, kcols), lambda i: (i, 0, 0)),
        compiler_params=pltpu.CompilerParams(dimension_semantics=("parallel",)),
    )(x_hl, kp["w1"], kp["b1"], kp["w2a"], kp["w2b"], kp["b2"],
      kp["w3"], kp["b3"], kp["wfc"])
    return out[:, 0, :ncls]


# ----------------------------------------------------------------------------
# Pure-XLA reference (same math) for validation
# ----------------------------------------------------------------------------
def _reference_forward(x_nchw, params):
    def bn(y, p):
        scale = p["bn_gamma"] / jnp.sqrt(p["bn_var"] + BN_EPS)
        return (y - p["bn_mean"][None, :, None, None]) * scale[None, :, None, None] \
            + p["bn_beta"][None, :, None, None]

    def block(x, p, *, stride, pad, pool_stride=1, pool_pad=0, is_pool=True):
        y = lax.conv_general_dilated(
            x, p["w"], window_strides=(stride, stride),
            padding=[(pad, pad), (pad, pad)],
            dimension_numbers=("NCHW", "OIHW", "NCHW"))
        y = y + p["b"][None, :, None, None]
        y = jnp.maximum(bn(y, p), 0.0)
        if is_pool:
            y = lax.reduce_window(
                y, 0.0, lax.add, (1, 1, 2, 2), (1, 1, pool_stride, pool_stride),
                [(0, 0), (0, 0), (pool_pad, pool_pad), (pool_pad, pool_pad)]) * 0.25
        return y

    y = block(x_nchw, params["block1"], stride=1, pad=1, pool_stride=1, pool_pad=1)
    y = block(y, params["block2"], stride=2, pad=0, pool_stride=2, pool_pad=0)
    y = block(y, params["block3"], stride=1, pad=2, is_pool=False)
    y = y.reshape(y.shape[0], -1)
    return y @ params["fc_w"].T


# ----------------------------------------------------------------------------
# Deterministic synthetic parameters (PyTorch layouts)
# ----------------------------------------------------------------------------
def _conv_block_params(key, cin, cout, kh, kw):
    k = jax.random.split(key, 6)
    return dict(
        w=0.1 * jax.random.normal(k[0], (cout, cin, kh, kw), jnp.float32),
        b=0.1 * jax.random.normal(k[1], (cout,), jnp.float32),
        bn_gamma=1.0 + 0.1 * jax.random.normal(k[2], (cout,), jnp.float32),
        bn_beta=0.1 * jax.random.normal(k[3], (cout,), jnp.float32),
        bn_mean=0.1 * jax.random.normal(k[4], (cout,), jnp.float32),
        bn_var=jax.random.uniform(k[5], (cout,), jnp.float32, 0.5, 1.5),
    )


def init_params(key, *, n1, n2, n3, n_classes, fc=100):
    k1, k2, k3, k4 = jax.random.split(key, 4)
    return dict(
        block1=_conv_block_params(k1, 3, n1, 3, 3),
        block2=_conv_block_params(k2, n1, n2, 2, 2),
        block3=_conv_block_params(k3, n2, n3, 3, 3),
        fc_w=0.05 * jax.random.normal(k4, (n_classes, fc * n3), jnp.float32),
    )


if __name__ == "__main__":
    # CIFAR geometry: 32x32 -> Block1 33x33 -> Block2 8x8 -> Block3 10x10 -> fc=100*n3.
    n1, n2, n3, n_classes = 16, 24, 32, 10
    key = jax.random.PRNGKey(0)
    kx, kparam = jax.random.split(key)
    x = jax.random.normal(kx, (2, 3, 32, 32), jnp.float32)     # NCHW, like PyTorch
    params = init_params(kparam, n1=n1, n2=n2, n3=n3, n_classes=n_classes)

    kp = prepare_params(params)                                 # once, outside jit
    fwd = jax.jit(lambda xx: cnn_3layer_fc_forward(xx, kp))
    out = jax.block_until_ready(fwd(x))
    assert out.shape == (2, n_classes), out.shape
    assert bool(jnp.all(jnp.isfinite(out)))

    ref = jax.jit(lambda xx: _reference_forward(xx, params))(x)
    err = float(jnp.max(jnp.abs(out - ref)))
    assert err < 1e-1, f"max |diff| vs XLA reference = {err}"
    print("KERNEL_OK")
</pallas_src>

<mosaic_0001>
module attributes {stable_mosaic.version = 11 : i64} {
  func.func @_fused_cnn_kernel(%arg0: i32, %arg1: memref<1x34x128xf32, #tpu.memory_space<vmem>>, %arg2: memref<384x512xbf16, #tpu.memory_space<vmem>>, %arg3: memref<1x512xf32, #tpu.memory_space<vmem>>, %arg4: memref<512x384xbf16, #tpu.memory_space<vmem>>, %arg5: memref<512x384xbf16, #tpu.memory_space<vmem>>, %arg6: memref<1x384xf32, #tpu.memory_space<vmem>>, %arg7: memref<1152x384xbf16, #tpu.memory_space<vmem>>, %arg8: memref<1x384xf32, #tpu.memory_space<vmem>>, %arg9: memref<3840x128xbf16, #tpu.memory_space<vmem>>, %arg10: memref<1x1x128xf32, #tpu.memory_space<vmem>>) attributes {dimension_semantics = [#tpu.dimension_semantics<parallel>], iteration_bounds = array<i64: 2>, scalar_prefetch = 0 : i64, scratch_operands = 0 : i64, tpu.core_type = #tpu.core_type<tc>, window_params = [{transform_indices = @transform_0, window_bounds = array<i64: 1, 34, 128>}, {pipeline_mode = #tpu.pipeline_mode<synchronous>, transform_indices = @transform_1, window_bounds = array<i64: 384, 512>}, {pipeline_mode = #tpu.pipeline_mode<synchronous>, transform_indices = @transform_2, window_bounds = array<i64: 1, 512>}, {pipeline_mode = #tpu.pipeline_mode<synchronous>, transform_indices = @transform_3, window_bounds = array<i64: 512, 384>}, {pipeline_mode = #tpu.pipeline_mode<synchronous>, transform_indices = @transform_4, window_bounds = array<i64: 512, 384>}, {pipeline_mode = #tpu.pipeline_mode<synchronous>, transform_indices = @transform_5, window_bounds = array<i64: 1, 384>}, {pipeline_mode = #tpu.pipeline_mode<synchronous>, transform_indices = @transform_6, window_bounds = array<i64: 1152, 384>}, {pipeline_mode = #tpu.pipeline_mode<synchronous>, transform_indices = @transform_7, window_bounds = array<i64: 1, 384>}, {pipeline_mode = #tpu.pipeline_mode<synchronous>, transform_indices = @transform_8, window_bounds = array<i64: 3840, 128>}, {transform_indices = @transform_9, window_bounds = array<i64: 1, 1, 128>}]} {
    %c0 = arith.constant 0 : index
    %c0_0 = arith.constant 0 : index
    %c0_1 = arith.constant 0 : index
    %0 = vector.load %arg1[%c0, %c0_0, %c0_1] : memref<1x34x128xf32, #tpu.memory_space<vmem>>, vector<1x34x128xf32>
    %1 = vector.shape_cast %0 : vector<1x34x128xf32> to vector<34x128xf32>
    %2 = vector.extract_strided_slice %1 {offsets = [0, 0], sizes = [32, 128], strides = [1, 1]} : vector<34x128xf32> to vector<32x128xf32>
    %3 = vector.extract_strided_slice %1 {offsets = [1, 0], sizes = [32, 128], strides = [1, 1]} : vector<34x128xf32> to vector<32x128xf32>
    %4 = vector.extract_strided_slice %1 {offsets = [2, 0], sizes = [32, 128], strides = [1, 1]} : vector<34x128xf32> to vector<32x128xf32>
    %5 = tpu.concatenate %2, %3, %4 in 1 : vector<32x128xf32>, vector<32x128xf32>, vector<32x128xf32> -> vector<32x384xf32>
    %6 = arith.truncf %5 : vector<32x384xf32> to vector<32x384xbf16>
    %c0_2 = arith.constant 0 : index
    %c0_3 = arith.constant 0 : index
    %7 = vector.load %arg2[%c0_2, %c0_3] : memref<384x512xbf16, #tpu.memory_space<vmem>>, vector<384x512xbf16>
    %cst = arith.constant dense<0.000000e+00> : vector<32x512xf32>
    %8 = tpu.matmul %6, %7, %cst {dimension_numbers = #tpu.dot_dimension_numbers<[1], [0], [0], [1], [0, 0, 1, 1], [], []>} : vector<32x384xbf16>, vector<384x512xbf16>, vector<32x512xf32> -> vector<32x512xf32>
    %c0_4 = arith.constant 0 : index
    %c0_5 = arith.constant 0 : index
    %9 = vector.load %arg3[%c0_4, %c0_5] : memref<1x512xf32, #tpu.memory_space<vmem>>, vector<1x512xf32>
    %10 = vector.broadcast %9 : vector<1x512xf32> to vector<32x512xf32>
    %11 = arith.addf %8, %10 : vector<32x512xf32>
    %cst_6 = arith.constant 0.000000e+00 : f32
    %12 = vector.broadcast %cst_6 : f32 to vector<32x512xf32>
    %13 = arith.maximumf %11, %12 : vector<32x512xf32>
    %cst_7 = arith.constant 0.000000e+00 : f32
    %14 = vector.broadcast %cst_7 : f32 to vector<1x512xf32>
    %15 = vector.extract_strided_slice %13 {offsets = [0, 0], sizes = [31, 512], strides = [1, 1]} : vector<32x512xf32> to vector<31x512xf32>
    %16 = tpu.concatenate %14, %15 in 0 : vector<1x512xf32>, vector<31x512xf32> -> vector<32x512xf32>
    %17 = arith.addf %13, %16 : vector<32x512xf32>
    %c16_i32 = arith.constant 16 : i32
    %18 = tpu.dynamic_rotate %17 by %c16_i32 dim 1 : vector<32x512xf32>, i32 -> vector<32x512xf32>
    %19 = tpu.iota {dimensions = array<i32: 1>} : vector<32x512xi32>
    %c16_i32_8 = arith.constant 16 : i32
    %20 = vector.broadcast %c16_i32_8 : i32 to vector<32x512xi32>
    %21 = arith.cmpi sge, %19, %20 : vector<32x512xi32>
    %cst_9 = arith.constant 0.000000e+00 : f32
    %22 = vector.broadcast %cst_9 : f32 to vector<32x512xf32>
    %23 = arith.select %21, %18, %22 : vector<32x512xi1>, vector<32x512xf32>
    %24 = arith.addf %17, %23 : vector<32x512xf32>
    %cst_10 = arith.constant 2.500000e-01 : f32
    %25 = vector.broadcast %cst_10 : f32 to vector<32x512xf32>
    %26 = arith.mulf %25, %24 : vector<32x512xf32>
    %27 = vector.extract_strided_slice %26 {offsets = [0, 0], sizes = [1, 512], strides = [1, 1]} : vector<32x512xf32> to vector<1x512xf32>
    %28 = vector.extract_strided_slice %26 {offsets = [4, 0], sizes = [1, 512], strides = [1, 1]} : vector<32x512xf32> to vector<1x512xf32>
    %29 = vector.extract_strided_slice %26 {offsets = [8, 0], sizes = [1, 512], strides = [1, 1]} : vector<32x512xf32> to vector<1x512xf32>
    %30 = vector.extract_strided_slice %26 {offsets = [12, 0], sizes = [1, 512], strides = [1, 1]} : vector<32x512xf32> to vector<1x512xf32>
    %31 = vector.extract_strided_slice %26 {offsets = [16, 0], sizes = [1, 512], strides = [1, 1]} : vector<32x512xf32> to vector<1x512xf32>
    %32 = vector.extract_strided_slice %26 {offsets = [20, 0], sizes = [1, 512], strides = [1, 1]} : vector<32x512xf32> to vector<1x512xf32>
    %33 = vector.extract_strided_slice %26 {offsets = [24, 0], sizes = [1, 512], strides = [1, 1]} : vector<32x512xf32> to vector<1x512xf32>
    %34 = vector.extract_strided_slice %26 {offsets = [28, 0], sizes = [1, 512], strides = [1, 1]} : vector<32x512xf32> to vector<1x512xf32>
    %35 = tpu.concatenate %27, %28, %29, %30, %31, %32, %33, %34 in 0 : vector<1x512xf32>, vector<1x512xf32>, vector<1x512xf32>, vector<1x512xf32>, vector<1x512xf32>, vector<1x512xf32>, vector<1x512xf32>, vector<1x512xf32> -> vector<8x512xf32>
    %36 = arith.truncf %35 : vector<8x512xf32> to vector<8x512xbf16>
    %37 = vector.extract_strided_slice %26 {offsets = [1, 0], sizes = [1, 512], strides = [1, 1]} : vector<32x512xf32> to vector<1x512xf32>
    %38 = vector.extract_strided_slice %26 {offsets = [5, 0], sizes = [1, 512], strides = [1, 1]} : vector<32x512xf32> to vector<1x512xf32>
    %39 = vector.extract_strided_slice %26 {offsets = [9, 0], sizes = [1, 512], strides = [1, 1]} : vector<32x512xf32> to vector<1x512xf32>
    %40 = vector.extract_strided_slice %26 {offsets = [13, 0], sizes = [1, 512], strides = [1, 1]} : vector<32x512xf32> to vector<1x512xf32>
    %41 = vector.extract_strided_slice %26 {offsets = [17, 0], sizes = [1, 512], strides = [1, 1]} : vector<32x512xf32> to vector<1x512xf32>
    %42 = vector.extract_strided_slice %26 {offsets = [21, 0], sizes = [1, 512], strides = [1, 1]} : vector<32x512xf32> to vector<1x512xf32>
    %43 = vector.extract_strided_slice %26 {offsets = [25, 0], sizes = [1, 512], strides = [1, 1]} : vector<32x512xf32> to vector<1x512xf32>
    %44 = vector.extract_strided_slice %26 {offsets = [29, 0], sizes = [1, 512], strides = [1, 1]} : vector<32x512xf32> to vector<1x512xf32>
    %45 = tpu.concatenate %37, %38, %39, %40, %41, %42, %43, %44 in 0 : vector<1x512xf32>, vector<1x512xf32>, vector<1x512xf32>, vector<1x512xf32>, vector<1x512xf32>, vector<1x512xf32>, vector<1x512xf32>, vector<1x512xf32> -> vector<8x512xf32>
    %46 = arith.truncf %45 : vector<8x512xf32> to vector<8x512xbf16>
    %47 = vector.extract_strided_slice %26 {offsets = [2, 0], sizes = [1, 512], strides = [1, 1]} : vector<32x512xf32> to vector<1x512xf32>
    %48 = vector.extract_strided_slice %26 {offsets = [6, 0], sizes = [1, 512], strides = [1, 1]} : vector<32x512xf32> to vector<1x512xf32>
    %49 = vector.extract_strided_slice %26 {offsets = [10, 0], sizes = [1, 512], strides = [1, 1]} : vector<32x512xf32> to vector<1x512xf32>
    %50 = vector.extract_strided_slice %26 {offsets = [14, 0], sizes = [1, 512], strides = [1, 1]} : vector<32x512xf32> to vector<1x512xf32>
    %51 = vector.extract_strided_slice %26 {offsets = [18, 0], sizes = [1, 512], strides = [1, 1]} : vector<32x512xf32> to vector<1x512xf32>
    %52 = vector.extract_strided_slice %26 {offsets = [22, 0], sizes = [1, 512], strides = [1, 1]} : vector<32x512xf32> to vector<1x512xf32>
    %53 = vector.extract_strided_slice %26 {offsets = [26, 0], sizes = [1, 512], strides = [1, 1]} : vector<32x512xf32> to vector<1x512xf32>
    %54 = vector.extract_strided_slice %26 {offsets = [30, 0], sizes = [1, 512], strides = [1, 1]} : vector<32x512xf32> to vector<1x512xf32>
    %55 = tpu.concatenate %47, %48, %49, %50, %51, %52, %53, %54 in 0 : vector<1x512xf32>, vector<1x512xf32>, vector<1x512xf32>, vector<1x512xf32>, vector<1x512xf32>, vector<1x512xf32>, vector<1x512xf32>, vector<1x512xf32> -> vector<8x512xf32>
    %56 = arith.truncf %55 : vector<8x512xf32> to vector<8x512xbf16>
    %57 = vector.extract_strided_slice %26 {offsets = [3, 0], sizes = [1, 512], strides = [1, 1]} : vector<32x512xf32> to vector<1x512xf32>
    %58 = vector.extract_strided_slice %26 {offsets = [7, 0], sizes = [1, 512], strides = [1, 1]} : vector<32x512xf32> to vector<1x512xf32>
    %59 = vector.extract_strided_slice %26 {offsets = [11, 0], sizes = [1, 512], strides = [1, 1]} : vector<32x512xf32> to vector<1x512xf32>
    %60 = vector.extract_strided_slice %26 {offsets = [15, 0], sizes = [1, 512], strides = [1, 1]} : vector<32x512xf32> to vector<1x512xf32>
    %61 = vector.extract_strided_slice %26 {offsets = [19, 0], sizes = [1, 512], strides = [1, 1]} : vector<32x512xf32> to vector<1x512xf32>
    %62 = vector.extract_strided_slice %26 {offsets = [23, 0], sizes = [1, 512], strides = [1, 1]} : vector<32x512xf32> to vector<1x512xf32>
    %63 = vector.extract_strided_slice %26 {offsets = [27, 0], sizes = [1, 512], strides = [1, 1]} : vector<32x512xf32> to vector<1x512xf32>
    %64 = vector.extract_strided_slice %26 {offsets = [31, 0], sizes = [1, 512], strides = [1, 1]} : vector<32x512xf32> to vector<1x512xf32>
    %65 = tpu.concatenate %57, %58, %59, %60, %61, %62, %63, %64 in 0 : vector<1x512xf32>, vector<1x512xf32>, vector<1x512xf32>, vector<1x512xf32>, vector<1x512xf32>, vector<1x512xf32>, vector<1x512xf32>, vector<1x512xf32> -> vector<8x512xf32>
    %66 = arith.truncf %65 : vector<8x512xf32> to vector<8x512xbf16>
    %c0_11 = arith.constant 0 : index
    %c0_12 = arith.constant 0 : index
    %67 = vector.load %arg4[%c0_11, %c0_12] : memref<512x384xbf16, #tpu.memory_space<vmem>>, vector<512x384xbf16>
    %c0_13 = arith.constant 0 : index
    %c0_14 = arith.constant 0 : index
    %68 = vector.load %arg5[%c0_13, %c0_14] : memref<512x384xbf16, #tpu.memory_space<vmem>>, vector<512x384xbf16>
    %cst_15 = arith.constant dense<0.000000e+00> : vector<8x384xf32>
    %69 = tpu.matmul %36, %67, %cst_15 {dimension_numbers = #tpu.dot_dimension_numbers<[1], [0], [0], [1], [0, 0, 1, 1], [], []>} : vector<8x512xbf16>, vector<512x384xbf16>, vector<8x384xf32> -> vector<8x384xf32>
    %cst_16 = arith.constant dense<0.000000e+00> : vector<8x384xf32>
    %70 = tpu.matmul %46, %68, %cst_16 {dimension_numbers = #tpu.dot_dimension_numbers<[1], [0], [0], [1], [0, 0, 1, 1], [], []>} : vector<8x512xbf16>, vector<512x384xbf16>, vector<8x384xf32> -> vector<8x384xf32>
    %71 = arith.addf %69, %70 : vector<8x384xf32>
    %cst_17 = arith.constant dense<0.000000e+00> : vector<8x384xf32>
    %72 = tpu.matmul %56, %67, %cst_17 {dimension_numbers = #tpu.dot_dimension_numbers<[1], [0], [0], [1], [0, 0, 1, 1], [], []>} : vector<8x512xbf16>, vector<512x384xbf16>, vector<8x384xf32> -> vector<8x384xf32>
    %cst_18 = arith.constant dense<0.000000e+00> : vector<8x384xf32>
    %73 = tpu.matmul %66, %68, %cst_18 {dimension_numbers = #tpu.dot_dimension_numbers<[1], [0], [0], [1], [0, 0, 1, 1], [], []>} : vector<8x512xbf16>, vector<512x384xbf16>, vector<8x384xf32> -> vector<8x384xf32>
    %74 = arith.addf %72, %73 : vector<8x384xf32>
    %c0_19 = arith.constant 0 : index
    %c0_20 = arith.constant 0 : index
    %75 = vector.load %arg6[%c0_19, %c0_20] : memref<1x384xf32, #tpu.memory_space<vmem>>, vector<1x384xf32>
    %76 = vector.broadcast %75 : vector<1x384xf32> to vector<8x384xf32>
    %77 = arith.addf %71, %76 : vector<8x384xf32>
    %cst_21 = arith.constant 0.000000e+00 : f32
    %78 = vector.broadcast %cst_21 : f32 to vector<8x384xf32>
    %79 = arith.maximumf %77, %78 : vector<8x384xf32>
    %c0_22 = arith.constant 0 : index
    %c0_23 = arith.constant 0 : index
    %80 = vector.load %arg6[%c0_22, %c0_23] : memref<1x384xf32, #tpu.memory_space<vmem>>, vector<1x384xf32>
    %81 = vector.broadcast %80 : vector<1x384xf32> to vector<8x384xf32>
    %82 = arith.addf %74, %81 : vector<8x384xf32>
    %cst_24 = arith.constant 0.000000e+00 : f32
    %83 = vector.broadcast %cst_24 : f32 to vector<8x384xf32>
    %84 = arith.maximumf %82, %83 : vector<8x384xf32>
    %85 = arith.addf %79, %84 : vector<8x384xf32>
    %cst_25 = arith.constant 0.000000e+00 : f32
    %86 = vector.broadcast %cst_25 : f32 to vector<2x384xf32>
    %cst_26 = arith.constant 0.000000e+00 : f32
    %87 = vector.broadcast %cst_26 : f32 to vector<2x384xf32>
    %88 = tpu.concatenate %86, %85, %87 in 0 : vector<2x384xf32>, vector<8x384xf32>, vector<2x384xf32> -> vector<12x384xf32>
    %89 = vector.extract_strided_slice %88 {offsets = [0, 0], sizes = [10, 384], strides = [1, 1]} : vector<12x384xf32> to vector<10x384xf32>
    %90 = vector.extract_strided_slice %88 {offsets = [1, 0], sizes = [10, 384], strides = [1, 1]} : vector<12x384xf32> to vector<10x384xf32>
    %91 = vector.extract_strided_slice %88 {offsets = [2, 0], sizes = [10, 384], strides = [1, 1]} : vector<12x384xf32> to vector<10x384xf32>
    %92 = tpu.concatenate %89, %90, %91 in 1 : vector<10x384xf32>, vector<10x384xf32>, vector<10x384xf32> -> vector<10x1152xf32>
    %93 = arith.truncf %92 : vector<10x1152xf32> to vector<10x1152xbf16>
    %c0_27 = arith.constant 0 : index
    %c0_28 = arith.constant 0 : index
    %94 = vector.load %arg7[%c0_27, %c0_28] : memref<1152x384xbf16, #tpu.memory_space<vmem>>, vector<1152x384xbf16>
    %cst_29 = arith.constant dense<0.000000e+00> : vector<10x384xf32>
    %95 = tpu.matmul %93, %94, %cst_29 {dimension_numbers = #tpu.dot_dimension_numbers<[1], [0], [0], [1], [0, 0, 1, 1], [], []>} : vector<10x1152xbf16>, vector<1152x384xbf16>, vector<10x384xf32> -> vector<10x384xf32>
    %c0_30 = arith.constant 0 : index
    %c0_31 = arith.constant 0 : index
    %96 = vector.load %arg8[%c0_30, %c0_31] : memref<1x384xf32, #tpu.memory_space<vmem>>, vector<1x384xf32>
    %97 = vector.broadcast %96 : vector<1x384xf32> to vector<10x384xf32>
    %98 = arith.addf %95, %97 : vector<10x384xf32>
    %cst_32 = arith.constant 0.000000e+00 : f32
    %99 = vector.broadcast %cst_32 : f32 to vector<10x384xf32>
    %100 = arith.maximumf %98, %99 : vector<10x384xf32>
    %101 = vector.extract_strided_slice %100 {offsets = [0, 0], sizes = [1, 384], strides = [1, 1]} : vector<10x384xf32> to vector<1x384xf32>
    %102 = vector.extract_strided_slice %100 {offsets = [1, 0], sizes = [1, 384], strides = [1, 1]} : vector<10x384xf32> to vector<1x384xf32>
    %103 = vector.extract_strided_slice %100 {offsets = [2, 0], sizes = [1, 384], strides = [1, 1]} : vector<10x384xf32> to vector<1x384xf32>
    %104 = vector.extract_strided_slice %100 {offsets = [3, 0], sizes = [1, 384], strides = [1, 1]} : vector<10x384xf32> to vector<1x384xf32>
    %105 = vector.extract_strided_slice %100 {offsets = [4, 0], sizes = [1, 384], strides = [1, 1]} : vector<10x384xf32> to vector<1x384xf32>
    %106 = vector.extract_strided_slice %100 {offsets = [5, 0], sizes = [1, 384], strides = [1, 1]} : vector<10x384xf32> to vector<1x384xf32>
    %107 = vector.extract_strided_slice %100 {offsets = [6, 0], sizes = [1, 384], strides = [1, 1]} : vector<10x384xf32> to vector<1x384xf32>
    %108 = vector.extract_strided_slice %100 {offsets = [7, 0], sizes = [1, 384], strides = [1, 1]} : vector<10x384xf32> to vector<1x384xf32>
    %109 = vector.extract_strided_slice %100 {offsets = [8, 0], sizes = [1, 384], strides = [1, 1]} : vector<10x384xf32> to vector<1x384xf32>
    %110 = vector.extract_strided_slice %100 {offsets = [9, 0], sizes = [1, 384], strides = [1, 1]} : vector<10x384xf32> to vector<1x384xf32>
    %111 = tpu.concatenate %101, %102, %103, %104, %105, %106, %107, %108, %109, %110 in 1 : vector<1x384xf32>, vector<1x384xf32>, vector<1x384xf32>, vector<1x384xf32>, vector<1x384xf32>, vector<1x384xf32>, vector<1x384xf32>, vector<1x384xf32>, vector<1x384xf32>, vector<1x384xf32> -> vector<1x3840xf32>
    %112 = arith.truncf %111 : vector<1x3840xf32> to vector<1x3840xbf16>
    %c0_33 = arith.constant 0 : index
    %c0_34 = arith.constant 0 : index
    %113 = vector.load %arg9[%c0_33, %c0_34] : memref<3840x128xbf16, #tpu.memory_space<vmem>>, vector<3840x128xbf16>
    %cst_35 = arith.constant dense<0.000000e+00> : vector<1x128xf32>
    %114 = tpu.matmul %112, %113, %cst_35 {dimension_numbers = #tpu.dot_dimension_numbers<[1], [0], [0], [1], [0, 0, 1, 1], [], []>} : vector<1x3840xbf16>, vector<3840x128xbf16>, vector<1x128xf32> -> vector<1x128xf32>
    %c0_36 = arith.constant 0 : index
    %c0_37 = arith.constant 0 : index
    %c0_38 = arith.constant 0 : index
    %115 = vector.load %arg10[%c0_36, %c0_37, %c0_38] : memref<1x1x128xf32, #tpu.memory_space<vmem>>, vector<1x1x128xf32>
    %116 = vector.shape_cast %115 : vector<1x1x128xf32> to vector<1x128xf32>
    %117 = vector.shape_cast %114 : vector<1x128xf32> to vector<1x1x128xf32>
    tpu.vector_store %arg10[%c0_36, %c0_37, %c0_38], %117 {strides = array<i32>} : memref<1x1x128xf32, #tpu.memory_space<vmem>>, vector<1x1x128xf32>,
    return
  }
  func.func @transform_0(%arg0: i32) -> (i32, i32, i32) {
    %c0_i32 = arith.constant 0 : i32
    %c0_i32_0 = arith.constant 0 : i32
    %c0_i32_1 = arith.constant 0 : i32
    return %arg0, %c0_i32, %c0_i32_0 : i32, i32, i32
  }
  func.func @transform_1(%arg0: i32) -> (i32, i32) {
    %c0_i32 = arith.constant 0 : i32
    %c0_i32_0 = arith.constant 0 : i32
    %c0_i32_1 = arith.constant 0 : i32
    return %c0_i32, %c0_i32_0 : i32, i32
  }
  func.func @transform_2(%arg0: i32) -> (i32, i32) {
    %c0_i32 = arith.constant 0 : i32
    %c0_i32_0 = arith.constant 0 : i32
    %c0_i32_1 = arith.constant 0 : i32
    return %c0_i32, %c0_i32_0 : i32, i32
  }
  func.func @transform_3(%arg0: i32) -> (i32, i32) {
    %c0_i32 = arith.constant 0 : i32
    %c0_i32_0 = arith.constant 0 : i32
    %c0_i32_1 = arith.constant 0 : i32
    return %c0_i32, %c0_i32_0 : i32, i32
  }
  func.func @transform_4(%arg0: i32) -> (i32, i32) {
    %c0_i32 = arith.constant 0 : i32
    %c0_i32_0 = arith.constant 0 : i32
    %c0_i32_1 = arith.constant 0 : i32
    return %c0_i32, %c0_i32_0 : i32, i32
  }
  func.func @transform_5(%arg0: i32) -> (i32, i32) {
    %c0_i32 = arith.constant 0 : i32
    %c0_i32_0 = arith.constant 0 : i32
    %c0_i32_1 = arith.constant 0 : i32
    return %c0_i32, %c0_i32_0 : i32, i32
  }
  func.func @transform_6(%arg0: i32) -> (i32, i32) {
    %c0_i32 = arith.constant 0 : i32
    %c0_i32_0 = arith.constant 0 : i32
    %c0_i32_1 = arith.constant 0 : i32
    return %c0_i32, %c0_i32_0 : i32, i32
  }
  func.func @transform_7(%arg0: i32) -> (i32, i32) {
    %c0_i32 = arith.constant 0 : i32
    %c0_i32_0 = arith.constant 0 : i32
    %c0_i32_1 = arith.constant 0 : i32
    return %c0_i32, %c0_i32_0 : i32, i32
  }
  func.func @transform_8(%arg0: i32) -> (i32, i32) {
    %c0_i32 = arith.constant 0 : i32
    %c0_i32_0 = arith.constant 0 : i32
    %c0_i32_1 = arith.constant 0 : i32
    return %c0_i32, %c0_i32_0 : i32, i32
  }
  func.func @transform_9(%arg0: i32) -> (i32, i32, i32) {
    %c0_i32 = arith.constant 0 : i32
    %c0_i32_0 = arith.constant 0 : i32
    %c0_i32_1 = arith.constant 0 : i32
    return %arg0, %c0_i32, %c0_i32_0 : i32, i32, i32
  }
}

</mosaic_0001>

<bundles_post_ra>
// kernel: _lambda_.1
= control target key start
LH: loop header
LB: loop body
LE: loop exit
PB: predicated region body
PF: predicated region fallthrough
CT: control target
= control target key end

     0   :  { %14 = vsyncpa [#allocation3], 0  ;;  %s14775_s0 = inlined_call_operand.vmem [shape: f32[2,34,128], index: 0, kind: input, shape index: {}]   ;;  %s14776_s1 = inlined_call_operand.vmem [shape: bf16[384,512], index: 1, kind: input, shape index: {}]   ;;  %s14777_s2 = inlined_call_operand.vmem [shape: f32[1,512], index: 2, kind: input, shape index: {}]   ;;  %s14778_s3 = inlined_call_operand.vmem [shape: bf16[512,384], index: 3, kind: input, shape index: {}]   ;;  %s14779_s4 = inlined_call_operand.vmem [shape: bf16[512,384], index: 4, kind: input, shape index: {}]   ;;  %s14780_s5 = inlined_call_operand.vmem [shape: f32[1,384], index: 5, kind: input, shape index: {}]   ;;  %s14781_s6 = inlined_call_operand.vmem [shape: bf16[1152,384], index: 6, kind: input, shape index: {}]   ;;  %s14782_s7 = inlined_call_operand.vmem [shape: f32[1,384], index: 7, kind: input, shape index: {}]   ;;  %s14783_s8 = inlined_call_operand.vmem [shape: bf16[3840,128], index: 8, kind: input, shape index: {}]   ;;  %s14784_s9 = inlined_call_operand.hbm [shape: f32[2,1,128], index: 9, kind: output, shape index: {}]  }
   0x1   :  { %16 = vsyncpa [#allocation3 + $0x1], 0  ;;  %s10921_s30 = smov 0   ;;  %s10923_s10 = smov 0  }
   0x2   :  { %s10925_s11 = smov 0   ;;  %s10927_s12 = smov 0  }
   0x3 LB: > { %s10942_s13 = sadd.s32 4294967295, %s10864_s12   ;;  %s8304_s14 = sadd.s32 4294967294, %s10864_s12   ;;  %s10864_s12 = sphi %s10927_s12, %s15005_s12   ;;  %s10860_s11 = sphi %s10925_s11, %s15004_s11   ;;  %s10856_s10 = sphi %s10923_s10, %s15003_s10   ;;  %s10852_s30 = sphi %s10921_s30, %s15002_s30  }
   0x4   : > { %s10946_s15 = sadd.s32 1, %s10864_s12   ;;  %s223_s16 = sadd.s32 1, %s10860_s11 }
   0x5   : > { %s220_s17 = ssub.s32 %s10864_s12, %s10946_s15  ;;  %p233_p0 = scmp.ne.s32.totalorder %s10860_s11, %s10856_s10 }
   0x6   : > { %p221_p1 = scmp.eq.s32.totalorder %s220_s17, 0  ;;  %p234_p2 = scmp.eq.s32.totalorder %s10942_s13, 1 }
   0x7   : > { %p239_p3 = scmp.ne.s32.totalorder %s10856_s10, %s10852_s30  ;;  %p240_p4 = scmp.eq.s32.totalorder %s8304_s14, 1 }
   0x8   : > { %s10957_s18 = scalar_select %p221_p1, %s10860_s11, %s223_s16  }
   0x9   : > { %p10959_p5 = por %p234_p2, %p233_p0  ;;  %p10963_p6 = por %p240_p4, %p239_p3 }
   0xa   : > { %p8307_p7 = scmp.ge.s32.totalorder %s10864_s12, 1  ;;  %p290_p8 = scmp.lt.s32.totalorder %s10864_s12, 3 }
   0xc   : > { %p291_p9 = pnand %p8307_p7, %p290_p8 }
   0xe   : > { %294 = sbr.rel (%p291_p9) target bundleno = 1950 (0x79e), region = 56 }
  0x15   : > { %v9799_v0 = vld [vmem:[%s14776_s1 + $0x4] ss:$16 sps:$4 sm:$0xff]   ;;  %v9801_v1 = vld [vmem:[%s14776_s1 + $0xc] ss:$16 sps:$4 sm:$0xff]   ;;  %v9803_v2 = vld [vmem:[%s14776_s1] ss:$16 sps:$4 sm:$0xff]  }
  0x16   : > { %973 = vmatprep.subr.bf16.mxu0 %v9799_v0  ;;  %v9804_v3 = vld [vmem:[%s14776_s1 + $0x8] ss:$16 sps:$4 sm:$0xff]   ;;  %1079 = vmatprep.subr.bf16.mxu1 %v9801_v1  ;;  %v9805_v4 = vld [vmem:[%s14776_s1 + $0x24] ss:$16 sps:$4 sm:$0xff]   ;;  %v9807_v5 = vld [vmem:[%s14776_s1 + $0x2c] ss:$16 sps:$4 sm:$0xff]  }
  0x17   : > { %974 = vmatpush1.bf16.msra.mxu0 %v9803_v2  ;;  %1080 = vmatpush1.bf16.msra.mxu1 %v9804_v3  ;;  %v9809_v6 = vld [vmem:[%s14776_s1 + $0x20] ss:$16 sps:$4 sm:$0xff]   ;;  %v9810_v7 = vld [vmem:[%s14776_s1 + $0x28] ss:$16 sps:$4 sm:$0xff]   ;;  %v9811_v8 = vld [vmem:[%s14776_s1 + $0x44] ss:$16 sps:$4 sm:$0xff]  }
  0x18   : > { %975 = vmatprep.subr.bf16.mxu0 %v9805_v4  ;;  %1081 = vmatprep.subr.bf16.mxu1 %v9807_v5  ;;  %v9813_v9 = vld [vmem:[%s14776_s1 + $0x4c] ss:$16 sps:$4 sm:$0xff]   ;;  %v9815_v10 = vld [vmem:[%s14776_s1 + $0x40] ss:$16 sps:$4 sm:$0xff]   ;;  %v9816_v11 = vld [vmem:[%s14776_s1 + $0x48] ss:$16 sps:$4 sm:$0xff]  }
  0x19   : > { %v9817_v12 = vld [vmem:[%s14776_s1 + $0x64] ss:$16 sps:$4 sm:$0xff]   ;;  %v9819_v13 = vld [vmem:[%s14776_s1 + $0x6c] ss:$16 sps:$4 sm:$0xff]   ;;  %v9821_v14 = vld [vmem:[%s14776_s1 + $0x60] ss:$16 sps:$4 sm:$0xff]  }
  0x1a   : > { %v9822_v15 = vld [vmem:[%s14776_s1 + $0x68] ss:$16 sps:$4 sm:$0xff]   ;;  %v9823_v16 = vld [vmem:[%s14776_s1 + $0x84] ss:$16 sps:$4 sm:$0xff]   ;;  %v9825_v17 = vld [vmem:[%s14776_s1 + $0x8c] ss:$16 sps:$4 sm:$0xff]  }
  0x1b   : > { %976 = vmatpush1.bf16.msra.mxu0 %v9809_v6  ;;  %1082 = vmatpush1.bf16.msra.mxu1 %v9810_v7  ;;  %v9827_v18 = vld [vmem:[%s14776_s1 + $0x80] ss:$16 sps:$4 sm:$0xff]   ;;  %v9828_v19 = vld [vmem:[%s14776_s1 + $0x88] ss:$16 sps:$4 sm:$0xff]   ;;  %v9829_v20 = vld [vmem:[%s14776_s1 + $0xa4] ss:$16 sps:$4 sm:$0xff]  }
  0x1c   : > { %977 = vmatprep.subr.bf16.mxu0 %v9811_v8  ;;  %1083 = vmatprep.subr.bf16.mxu1 %v9813_v9  ;;  %v9831_v21 = vld [vmem:[%s14776_s1 + $0xac] ss:$16 sps:$4 sm:$0xff]   ;;  %v9833_v22 = vld [vmem:[%s14776_s1 + $0xa0] ss:$16 sps:$4 sm:$0xff]   ;;  %v9834_v23 = vld [vmem:[%s14776_s1 + $0xa8] ss:$16 sps:$4 sm:$0xff]  }
  0x1d   : > { %v9835_v24 = vld [vmem:[%s14776_s1 + $0xc4] ss:$16 sps:$4 sm:$0xff]   ;;  %v9837_v25 = vld [vmem:[%s14776_s1 + $0xcc] ss:$16 sps:$4 sm:$0xff]   ;;  %v9839_v26 = vld [vmem:[%s14776_s1 + $0xc0] ss:$16 sps:$4 sm:$0xff]  }
  0x1e   : > { %v9840_v27 = vld [vmem:[%s14776_s1 + $0xc8] ss:$16 sps:$4 sm:$0xff]   ;;  %v9841_v28 = vld [vmem:[%s14776_s1 + $0xe4] ss:$16 sps:$4 sm:$0xff]   ;;  %v9843_v29 = vld [vmem:[%s14776_s1 + $0xec] ss:$16 sps:$4 sm:$0xff]  }
  0x1f   : > { %978 = vmatpush1.bf16.msra.mxu0 %v9815_v10  ;;  %1084 = vmatpush1.bf16.msra.mxu1 %v9816_v11  ;;  %v9845_v30 = vld [vmem:[%s14776_s1 + $0xe0] ss:$16 sps:$4 sm:$0xff]   ;;  %p325_p10 = scmp.lt.s32.totalorder %s10942_s13, 1  ;;  %v9846_v31 = vld [vmem:[%s14776_s1 + $0xe8] ss:$16 sps:$4 sm:$0xff]   ;;  %vm341_vm0 = vcmask 1046528  }
  0x20   : > { %979 = vmatprep.subr.bf16.mxu0 %v9817_v12  ;;  %1085 = vmatprep.subr.bf16.mxu1 %v9819_v13  ;;  %v9847_v32 = vld [vmem:[%s14776_s1 + $0x104] ss:$16 sps:$4 sm:$0xff]   ;;  %v9849_v33 = vld [vmem:[%s14776_s1 + $0x10c] ss:$16 sps:$4 sm:$0xff]   ;;  %v9851_v34 = vld [vmem:[%s14776_s1 + $0x100] ss:$16 sps:$4 sm:$0xff]  }
  0x21   : > { %v9852_v35 = vld [vmem:[%s14776_s1 + $0x108] ss:$16 sps:$4 sm:$0xff]   ;;  %s326_s21 = scalar_select %p325_p10, %s10942_s13, 1  ;;  %v9853_v36 = vld [vmem:[%s14776_s1 + $0x124] ss:$16 sps:$4 sm:$0xff]   ;;  %vm355_vm1 = vcmask 1045504  }
  0x22   : > { %v9855_v37 = vld [vmem:[%s14776_s1 + $0x12c] ss:$16 sps:$4 sm:$0xff]   ;;  %v9857_v38 = vld [vmem:[%s14776_s1 + $0x120] ss:$16 sps:$4 sm:$0xff]   ;;  %v9858_v39 = vld [vmem:[%s14776_s1 + $0x128] ss:$16 sps:$4 sm:$0xff]  }
  0x23   : > { %980 = vmatpush1.bf16.msra.mxu0 %v9821_v14  ;;  %1086 = vmatpush1.bf16.msra.mxu1 %v9822_v15  ;;  %s9755_s28 = smul.u32 40, %s326_s21  ;;  %v9859_v40 = vld [vmem:[%s14776_s1 + $0x144] ss:$16 sps:$4 sm:$0xff]   ;;  %v9861_v41 = vld [vmem:[%s14776_s1 + $0x14c] ss:$16 sps:$4 sm:$0xff]   ;;  %vm1217_vm2 = vcmask 1040384  }
  0x24   : > { %981 = vmatprep.subr.bf16.mxu0 %v9823_v16  ;;  %1087 = vmatprep.subr.bf16.mxu1 %v9825_v17  ;;  %v9863_v42 = vld [vmem:[%s14776_s1 + $0x140] ss:$16 sps:$4 sm:$0xff]   ;;  %v9864_v43 = vld [vmem:[%s14776_s1 + $0x148] ss:$16 sps:$4 sm:$0xff]   ;;  %v9865_v44 = vld [vmem:[%s14776_s1 + $0x164] ss:$16 sps:$4 sm:$0xff]  }
  0x25   : > { %s11106_s14 = scalar_lea.vmem %s14775_s0, %s9755_s28  ;;  %v9867_v45 = vld [vmem:[%s14776_s1 + $0x16c] ss:$16 sps:$4 sm:$0xff]   ;;  %v9869_v46 = vld [vmem:[%s14776_s1 + $0x160] ss:$16 sps:$4 sm:$0xff]   ;;  %v9870_v51 = vld [vmem:[%s14776_s1 + $0x168] ss:$16 sps:$4 sm:$0xff]  }
  0x26   : > { %v11118_v47 = vld [vmem:[%s11106_s14] sm:$0xff]  ;;  %v11121_v48 = vld [vmem:[%s11106_s14 + $0x8] sm:$0xff]  ;;  %v11124_v49 = vld [vmem:[%s11106_s14 + $0x10] sm:$0xff]  ;;  %s10867_s23 = smov 16   ;;  %vm1464_vm5 = vcmask 1041408   ;;  %vm1469_vm6 = vcmask 1042432  }
  0x27   : > { %982 = vmatpush1.bf16.msra.mxu0 %v9827_v18  ;;  %1088 = vmatpush1.bf16.msra.mxu1 %v9828_v19  ;;  %v342_v50 = vrot.slane %v11118_v47, 1  ;;  %v343_v52 = vrot.slane %v11121_v48, 1  ;;  %v345_v53 = vrot.slane %v11124_v49, 1  ;;  %v9871_v54 = vld [vmem:[%s14776_s1 + $0x184] ss:$16 sps:$4 sm:$0xff]   ;;  %v11186_v10 = vld [vmem:[%s11106_s14 + $0x18] sm:$0xff]  ;;  %v369_v15 = vpack.c.bf16 %v11121_v48, %v11118_v47  ;;  %vm8813_vm9 = vmneg %vm1464_vm5 }
  0x28   : > { %983 = vmatprep.subr.bf16.mxu0 %v9829_v20  ;;  %1089 = vmatprep.subr.bf16.mxu1 %v9831_v21  ;;  %v9873_v55 = vld [vmem:[%s14776_s1 + $0x18c] ss:$16 sps:$4 sm:$0xff]   ;;  %v9875_v58 = vld [vmem:[%s14776_s1 + $0x180] ss:$16 sps:$4 sm:$0xff]   ;;  %v9876_v59 = vld [vmem:[%s14776_s1 + $0x188] ss:$16 sps:$4 sm:$0xff]  }
  0x29   : > { %v344_v56 = vsel %vm341_vm0, %v342_v50, %v343_v52  ;;  %v346_v57 = vsel %vm341_vm0, %v343_v52, %v345_v53  ;;  %v9877_v61 = vld [vmem:[%s14776_s1 + $0x1a4] ss:$16 sps:$4 sm:$0xff]   ;;  %v9879_v62 = vld [vmem:[%s14776_s1 + $0x1ac] ss:$16 sps:$4 sm:$0xff]   ;;  %v9881_v63 = vld [vmem:[%s14776_s1 + $0x1a0] ss:$16 sps:$4 sm:$0xff]  }
  0x2a   : > { %v370_v60 = vpack.c.bf16 %v346_v57, %v344_v56  ;;  %v9882_v0 = vld [vmem:[%s14776_s1 + $0x1a8] ss:$16 sps:$4 sm:$0xff]   ;;  %v9883_v1 = vld [vmem:[%s14776_s1 + $0x1c4] ss:$16 sps:$4 sm:$0xff]   ;;  %v9885_v2 = vld [vmem:[%s14776_s1 + $0x1cc] ss:$16 sps:$4 sm:$0xff]  }
  0x2b   : > { %984 = vmatpush1.bf16.msra.mxu0 %v9833_v22  ;;  %1090 = vmatpush1.bf16.msra.mxu1 %v9834_v23  ;;  %v9887_v3 = vld [vmem:[%s14776_s1 + $0x1c0] ss:$16 sps:$4 sm:$0xff]   ;;  %v9888_v4 = vld [vmem:[%s14776_s1 + $0x1c8] ss:$16 sps:$4 sm:$0xff]   ;;  %v9889_v5 = vld [vmem:[%s14776_s1 + $0x1e4] ss:$16 sps:$4 sm:$0xff]  }
  0x2c   : > { %985 = vmatprep.subr.bf16.mxu0 %v9835_v24  ;;  %1091 = vmatprep.subr.bf16.mxu1 %v9837_v25  ;;  %v9891_v6 = vld [vmem:[%s14776_s1 + $0x1ec] ss:$16 sps:$4 sm:$0xff]   ;;  %v9893_v7 = vld [vmem:[%s14776_s1 + $0x1e0] ss:$16 sps:$4 sm:$0xff]   ;;  %v9894_v8 = vld [vmem:[%s14776_s1 + $0x1e8] ss:$16 sps:$4 sm:$0xff]  }
  0x2d   : > { %1005 = vmatprep.mubr.bf16.mxu0 %v370_v60  ;;  %1111 = vmatprep.mubr.bf16.mxu1 %v370_v60  ;;  %v9897_v9 = vld [vmem:[%s14776_s1 + $0x204] ss:$16 sps:$4 sm:$0xff]   ;;  %v11189_v11 = vld [vmem:[%s11106_s14 + $0x20] sm:$0x3]  ;;  %v9900_v12 = vld [vmem:[%s14776_s1 + $0x20c] ss:$16 sps:$4 sm:$0xff]  }
  0x2e   : > { %v347_v13 = vrot.slane %v11186_v10, 1  ;;  %v349_v14 = vrot.slane %v11189_v11, 1  ;;  %v9895_v18 = vld [vmem:[%s14776_s1 + $0x200] ss:$16 sps:$4 sm:$0xff]   ;;  %v9898_v19 = vld [vmem:[%s14776_s1 + $0x208] ss:$16 sps:$4 sm:$0xff]   ;;  %vm13376_vm10 = vmpackc.low %vm1464_vm5, %vm8813_vm9 }
  0x2f   : > { %986 = vmatpush1.bf16.msra.mxu0 %v9839_v26  ;;  %1092 = vmatpush1.bf16.msra.mxu1 %v9840_v27  ;;  %v9903_v20 = vld [vmem:[%s14776_s1 + $0x224] ss:$16 sps:$4 sm:$0xff]   ;;  %v9906_v21 = vld [vmem:[%s14776_s1 + $0x22c] ss:$16 sps:$4 sm:$0xff]   ;;  %v9901_v22 = vld [vmem:[%s14776_s1 + $0x220] ss:$16 sps:$4 sm:$0xff]  }
  0x30   : > { %987 = vmatprep.subr.bf16.mxu0 %v9841_v28  ;;  %1093 = vmatprep.subr.bf16.mxu1 %v9843_v29  ;;  %v348_v16 = vsel %vm341_vm0, %v345_v53, %v347_v13  ;;  %v350_v17 = vsel %vm341_vm0, %v347_v13, %v349_v14  ;;  %v9904_v23 = vld [vmem:[%s14776_s1 + $0x228] ss:$16 sps:$4 sm:$0xff]   ;;  %v9909_v25 = vld [vmem:[%s14776_s1 + $0x244] ss:$16 sps:$4 sm:$0xff]   ;;  %v9912_v26 = vld [vmem:[%s14776_s1 + $0x24c] ss:$16 sps:$4 sm:$0xff]  }
  0x31   : > { %v373_v24 = vpack.c.bf16 %v350_v17, %v348_v16  ;;  %v9907_v27 = vld [vmem:[%s14776_s1 + $0x240] ss:$16 sps:$4 sm:$0xff]   ;;  %v9910_v28 = vld [vmem:[%s14776_s1 + $0x248] ss:$16 sps:$4 sm:$0xff]   ;;  %v9915_v29 = vld [vmem:[%s14776_s1 + $0x264] ss:$16 sps:$4 sm:$0xff]  }
  0x32   : > { %v359_v50 = vrot.slane %v11124_v49, 2  ;;  %v9934_v52 = vld [vmem:[%s14776_s1 + $0x2c8] ss:$16 sps:$4 sm:$0xff]   ;;  %v9939_v53 = vld [vmem:[%s14776_s1 + $0x2e4] ss:$16 sps:$4 sm:$0xff]   ;;  %vm1474_vm7 = vcmask 1043456  }
  0x33   : > { %988 = vmatpush1.bf16.msra.mxu0 %v9845_v30  ;;  %1094 = vmatpush1.bf16.msra.mxu1 %v9846_v31  ;;  %v9918_v30 = vld [vmem:[%s14776_s1 + $0x26c] ss:$16 sps:$4 sm:$0xff]   ;;  %v372_v31 = vpack.c.bf16 %v11186_v10, %v11124_v49  ;;  %v363_v49 = vrot.slane %v11189_v11, 2  ;;  %v9964_v13 = vld [vmem:[%s14779_s4 + $0x1c8] ss:$12 sps:$4 sm:$0xff]   ;;  %vm1479_vm8 = vcmask 1044480  }
  0x34   : > { %989 = vmatprep.subr.bf16.mxu0 %v9847_v32  ;;  %1095 = vmatprep.subr.bf16.mxu1 %v9849_v33  ;;  %v9913_v32 = vld [vmem:[%s14776_s1 + $0x260] ss:$16 sps:$4 sm:$0xff]   ;;  %v9916_v33 = vld [vmem:[%s14776_s1 + $0x268] ss:$16 sps:$4 sm:$0xff]   ;;  %vm10869_vm11 = vmmov 0   ;;  %s323_s25 = sand.u32 1, %s10856_s10  }
  0x35   : > { %v9966_v11 = vld [vmem:[%s14779_s4 + $0x1cc] ss:$12 sps:$4 sm:$0xff]   ;;  %v9969_v14 = vld [vmem:[%s14779_s4 + $0x64] ss:$12 sps:$4 sm:$0xff]   ;;  %s9077_s28 = sshll.u32 %s10942_s13, 4  ;;  %s8237_s14 = scalar_lea.sflag [#allocation3], %s323_s25 }
  0x36   : > { %v9967_v16 = vld [vmem:[%s14779_s4 + $0x60] ss:$12 sps:$4 sm:$0xff]   ;;  %s14733_s29 = scalar_lea.hbm %s14784_s9, %s9077_s28  ;;  %s10870_s13 = smov [#allocation2]  }
  0x37   : > { %990 = vmatpush1.bf16.msra.mxu0 %v9851_v34  ;;  %1096 = vmatpush1.bf16.msra.mxu1 %v9852_v35  ;;  %v9921_v34 = vld [vmem:[%s14776_s1 + $0x284] ss:$16 sps:$4 sm:$0xff]   ;;  %v9924_v35 = vld [vmem:[%s14776_s1 + $0x28c] ss:$16 sps:$4 sm:$0xff]   ;;  %s10806_s17 = sshll.u32 %s10870_s13, 4  ;;  %s10807_s17 = int_to_ptr.vmem [resolvable:$false] %s10806_s17 }
  0x38   : > { %991 = vmatprep.subr.bf16.mxu0 %v9853_v36  ;;  %1097 = vmatprep.subr.bf16.mxu1 %v9855_v37  ;;  %v9919_v36 = vld [vmem:[%s14776_s1 + $0x280] ss:$16 sps:$4 sm:$0xff]   ;;  %v9922_v37 = vld [vmem:[%s14776_s1 + $0x288] ss:$16 sps:$4 sm:$0xff]   ;;  %s10808_s22 = scalar_lea.vmem %s10807_s17, 32 }
  0x39   : > { %v9970_v17 = vld [vmem:[%s14779_s4 + $0x1e0] ss:$12 sps:$4 sm:$0xff]  }
  0x3b   : > { %992 = vmatpush1.bf16.msra.mxu0 %v9857_v38  ;;  %1098 = vmatpush1.bf16.msra.mxu1 %v9858_v39  ;;  %v14785_v38 = vmov 0   ;;  %v9927_v39 = vld [vmem:[%s14776_s1 + $0x2a4] ss:$16 sps:$4 sm:$0xff]  }
  0x3c   : > { %993 = vmatprep.subr.bf16.mxu0 %v9859_v40  ;;  %1099 = vmatprep.subr.bf16.mxu1 %v9861_v41  ;;  %v9930_v40 = vld [vmem:[%s14776_s1 + $0x2ac] ss:$16 sps:$4 sm:$0xff]   ;;  %v9925_v41 = vld [vmem:[%s14776_s1 + $0x2a0] ss:$16 sps:$4 sm:$0xff]  }
  0x3f   : > { %994 = vmatpush1.bf16.msra.mxu0 %v9863_v42  ;;  %1100 = vmatpush1.bf16.msra.mxu1 %v9864_v43  ;;  %v9928_v42 = vld [vmem:[%s14776_s1 + $0x2a8] ss:$16 sps:$4 sm:$0xff]   ;;  %v9933_v43 = vld [vmem:[%s14776_s1 + $0x2c4] ss:$16 sps:$4 sm:$0xff]  }
  0x40   : > { %995 = vmatprep.subr.bf16.mxu0 %v9865_v44  ;;  %1101 = vmatprep.subr.bf16.mxu1 %v9867_v45  ;;  %v9936_v44 = vld [vmem:[%s14776_s1 + $0x2cc] ss:$16 sps:$4 sm:$0xff]   ;;  %v356_v45 = vrot.slane %v11118_v47, 2 }
  0x41   : > { %v9942_v47 = vld [vmem:[%s14776_s1 + $0x2ec] ss:$16 sps:$4 sm:$0xff]  }
  0x43   : > { %996 = vmatpush1.bf16.msra.mxu0 %v9869_v46  ;;  %1102 = vmatpush1.bf16.msra.mxu1 %v9870_v51  ;;  %v357_v46 = vrot.slane %v11121_v48, 2  ;;  %v9931_v51 = vld [vmem:[%s14776_s1 + $0x2c0] ss:$16 sps:$4 sm:$0xff]   ;;  %v361_v48 = vrot.slane %v11186_v10, 2  ;;  %v9963_v10 = vld [vmem:[%s14779_s4 + $0x4c] ss:$12 sps:$4 sm:$0xff]  }
  0x44   : > { %997 = vmatprep.subr.bf16.mxu0 %v9871_v54  ;;  %1103 = vmatprep.subr.bf16.mxu1 %v9873_v55  ;;  %v9937_v54 = vld [vmem:[%s14776_s1 + $0x2e0] ss:$16 sps:$4 sm:$0xff]   ;;  %v9940_v55 = vld [vmem:[%s14776_s1 + $0x2e8] ss:$16 sps:$4 sm:$0xff]  }
  0x45   : > { %v358_v56 = vsel %vm355_vm1, %v356_v45, %v357_v46  ;;  %v360_v57 = vsel %vm355_vm1, %v357_v46, %v359_v50  ;;  %v364_v60 = vsel %vm355_vm1, %v361_v48, %v363_v49 }
  0x47   : > { %998 = vmatpush1.bf16.msra.mxu0 %v9875_v58  ;;  %1104 = vmatpush1.bf16.msra.mxu1 %v9876_v59  ;;  %v371_v58 = vpack.c.bf16 %v360_v57, %v358_v56  ;;  %v362_v59 = vsel %vm355_vm1, %v359_v50, %v361_v48 }
  0x48   : > { %999 = vmatprep.subr.bf16.mxu0 %v9877_v61  ;;  %1105 = vmatprep.subr.bf16.mxu1 %v9879_v62  ;;  %v374_v61 = vpack.c.bf16 %v364_v60, %v362_v59  ;;  %v9943_v62 = vld [vmem:[%s14779_s4] ss:$12 sps:$4 sm:$0xff]  }
  0x4b   : > { %1000 = vmatpush1.bf16.msra.mxu0 %v9881_v63  ;;  %1106 = vmatpush1.bf16.msra.mxu1 %v9882_v0  ;;  %v9945_v63 = vld [vmem:[%s14779_s4 + $0x4] ss:$12 sps:$4 sm:$0xff]   ;;  %v9946_v0 = vld [vmem:[%s14779_s4 + $0x180] ss:$12 sps:$4 sm:$0xff]  }
  0x4c   : > { %1001 = vmatprep.subr.bf16.mxu0 %v9883_v1  ;;  %1107 = vmatprep.subr.bf16.mxu1 %v9885_v2  ;;  %v9948_v1 = vld [vmem:[%s14779_s4 + $0x184] ss:$12 sps:$4 sm:$0xff]   ;;  %v9951_v2 = vld [vmem:[%s14779_s4 + $0x1c] ss:$12 sps:$4 sm:$0xff]  }
  0x4f   : > { %1002 = vmatpush1.bf16.msra.mxu0 %v9887_v3  ;;  %1108 = vmatpush1.bf16.msra.mxu1 %v9888_v4  ;;  %v9954_v3 = vld [vmem:[%s14779_s4 + $0x19c] ss:$12 sps:$4 sm:$0xff]   ;;  %v9949_v4 = vld [vmem:[%s14779_s4 + $0x18] ss:$12 sps:$4 sm:$0xff]  }
  0x50   : > { %1003 = vmatprep.subr.bf16.mxu0 %v9889_v5  ;;  %1109 = vmatprep.subr.bf16.mxu1 %v9891_v6  ;;  %v9952_v5 = vld [vmem:[%s14779_s4 + $0x198] ss:$12 sps:$4 sm:$0xff]   ;;  %v9957_v6 = vld [vmem:[%s14779_s4 + $0x34] ss:$12 sps:$4 sm:$0xff]  }
  0x53   : > { %1004 = vmatpush1.bf16.msra.mxu0 %v9893_v7  ;;  %1110 = vmatpush1.bf16.msra.mxu1 %v9894_v8  ;;  %v9960_v7 = vld [vmem:[%s14779_s4 + $0x1b4] ss:$12 sps:$4 sm:$0xff]   ;;  %v9955_v8 = vld [vmem:[%s14779_s4 + $0x30] ss:$12 sps:$4 sm:$0xff]  }
  0x54   : > { %1026 = vmatprep.subr.bf16.mxu0 %v9897_v9  ;;  %1132 = vmatprep.subr.bf16.mxu1 %v9900_v12  ;;  %v9958_v9 = vld [vmem:[%s14779_s4 + $0x1b0] ss:$12 sps:$4 sm:$0xff]   ;;  %v9961_v12 = vld [vmem:[%s14779_s4 + $0x48] ss:$12 sps:$4 sm:$0xff]  }
  0x56   : > { %1006 = vmatmul.mubr.bf16.vlgmr.msra.gmra.mrb[0].mxu0 %v369_v15  ;;  %1112 = vmatmul.mubr.bf16.vlgmr.msra.gmra.mrb[0].mxu1 %v369_v15  ;;  %v9972_v15 = vld [vmem:[%s14779_s4 + $0x1e4] ss:$12 sps:$4 sm:$0xff]  }
  0x57   : > { %1027 = vmatpush1.bf16.msra.mxu0 %v9895_v18  ;;  %1133 = vmatpush1.bf16.msra.mxu1 %v9898_v19  ;;  %v9975_v18 = vld [vmem:[%s14779_s4 + $0x7c] ss:$12 sps:$4 sm:$0xff]  }
  0x58   : > { %1028 = vmatprep.subr.bf16.mxu0 %v9903_v20  ;;  %1134 = vmatprep.subr.bf16.mxu1 %v9906_v21  ;;  %v9978_v19 = vld [vmem:[%s14779_s4 + $0x1fc] ss:$12 sps:$4 sm:$0xff]   ;;  %v9973_v20 = vld [vmem:[%s14779_s4 + $0x78] ss:$12 sps:$4 sm:$0xff]   ;;  %v473_v21 = vlaneseq }
  0x59   : > { %1015 = vmatprep.mubr.bf16.mxu0 %v373_v24  ;;  %1121 = vmatprep.mubr.bf16.mxu1 %v373_v24  ;;  %v9979_v24 = vld [vmem:[%s14779_s4 + $0x90] ss:$12 sps:$4 sm:$0xff]  }
  0x5b   : > { %1029 = vmatpush1.bf16.msra.mxu0 %v9901_v22  ;;  %1135 = vmatpush1.bf16.msra.mxu1 %v9904_v23  ;;  %v9976_v22 = vld [vmem:[%s14779_s4 + $0x1f8] ss:$12 sps:$4 sm:$0xff]   ;;  %v9981_v23 = vld [vmem:[%s14779_s4 + $0x94] ss:$12 sps:$4 sm:$0xff]  }
  0x5c   : > { %1030 = vmatprep.subr.bf16.mxu0 %v9909_v25  ;;  %1136 = vmatprep.subr.bf16.mxu1 %v9912_v26  ;;  %v474_v25 = vshrl.u32 %v473_v21, 7 }
  0x5e   : > { %1016 = vmatmul.mubr.bf16.gmra.mrb[4].mxu0 %v372_v31  ;;  %1122 = vmatmul.mubr.bf16.gmra.mrb[4].mxu1 %v372_v31  ;;  %v11384_v26 = vsub.s32 0, %v474_v25 }
  0x5f   : > { %1031 = vmatpush1.bf16.msra.mxu0 %v9907_v27  ;;  %1137 = vmatpush1.bf16.msra.mxu1 %v9910_v28  ;;  %v11386_v27 = vsub.s32 2, %v474_v25  ;;  %v11388_v28 = vsub.s32 1, %v474_v25 }
  0x60   : > { %1032 = vmatprep.subr.bf16.mxu0 %v9915_v29  ;;  %1138 = vmatprep.subr.bf16.mxu1 %v9918_v30  ;;  %14859 = vst [vmem:[#allocation5_spill] sm:$0xff] %v11384_v26  ;;  %v487_v29 = vsub.s32 3, %v474_v25  ;;  %v471_v30 = vld [vmem:[%s14777_s2] sm:$0xf] }
  0x61   : > { %1058 = vmatprep.mubr.bf16.mxu0 %v14785_v38  ;;  %1164 = vmatprep.mubr.bf16.mxu1 %v14785_v38  ;;  %14860 = vst [vmem:[#allocation6_spill] sm:$0xff] %v11386_v27  ;;  %14861 = vst [vmem:[#allocation7_spill] sm:$0xff] %v11388_v28  ;;  %v11394_v31 = vrot.slane %v471_v30, %v11384_v26  ;;  %v12409_v26 = vld [vmem:[%s14778_s3 + $0x22c] ss:$12 sps:$4 sm:$0xff]  }
  0x62   : > { %14868 = vst [vmem:[#allocation14_spill] sm:$0xff] %v12409_v26 }
  0x63   : > { %1033 = vmatpush1.bf16.msra.mxu0 %v9913_v32  ;;  %1139 = vmatpush1.bf16.msra.mxu1 %v9916_v33  ;;  %v11397_v32 = vrot.slane %v471_v30, %v11386_v27  ;;  %v11400_v33 = vrot.slane %v471_v30, %v11388_v28  ;;  %v12397_v27 = vld [vmem:[%s14778_s3 + $0x210] ss:$12 sps:$4 sm:$0xff]   ;;  %v12404_v28 = vld [vmem:[%s14778_s3 + $0xa8] ss:$12 sps:$4 sm:$0xff]  }
  0x64   : > { %1034 = vmatprep.subr.bf16.mxu0 %v9921_v34  ;;  %1140 = vmatprep.subr.bf16.mxu1 %v9924_v35  ;;  %v11402_v34 = vrot.slane %v471_v30, %v487_v29  ;;  %14866 = vst [vmem:[#allocation12_spill] sm:$0xff] %v12397_v27  ;;  %14867 = vst [vmem:[#allocation13_spill] sm:$0xff] %v12404_v28 }
  0x67   : > { %1035 = vmatpush1.bf16.msra.mxu0 %v9919_v36  ;;  %1141 = vmatpush1.bf16.msra.mxu1 %v9922_v37 }
  0x68   : > { %1036 = vmatprep.subr.bf16.mxu0 %v9927_v39  ;;  %1142 = vmatprep.subr.bf16.mxu1 %v9930_v40 }
  0x6b   : > { %1037 = vmatpush1.bf16.msra.mxu0 %v9925_v41  ;;  %1143 = vmatpush1.bf16.msra.mxu1 %v9928_v42  ;;  %v9982_v42 = vld [vmem:[%s14779_s4 + $0x210] ss:$12 sps:$4 sm:$0xff]  }
  0x6c   : > { %1038 = vmatprep.subr.bf16.mxu0 %v9933_v43  ;;  %1144 = vmatprep.subr.bf16.mxu1 %v9936_v44  ;;  %v9984_v43 = vld [vmem:[%s14779_s4 + $0x214] ss:$12 sps:$4 sm:$0xff]  }
  0x6f   : > { %1039 = vmatpush1.bf16.msra.mxu0 %v9931_v51  ;;  %1145 = vmatpush1.bf16.msra.mxu1 %v9934_v52 }
  0x70   : > { %1040 = vmatprep.subr.bf16.mxu0 %v9939_v53  ;;  %1146 = vmatprep.subr.bf16.mxu1 %v9942_v47 }
  0x73   : > { %1041 = vmatpush1.bf16.msra.mxu0 %v9937_v54  ;;  %1147 = vmatpush1.bf16.msra.mxu1 %v9940_v55 }
  0x74   : > { %2496 = vmatprep.subr.bf16.mxu0 %v9945_v63  ;;  %2537 = vmatprep.subr.bf16.mxu1 %v9948_v1  ;;  %v9987_v1 = vld [vmem:[%s14779_s4 + $0xac] ss:$12 sps:$4 sm:$0xff]  }
  0x76   : > { %1059 = vmatmul.mubr.bf16.vlgmr.msra.gmra.mrb[0].mxu0 %v371_v58  ;;  %1165 = vmatmul.mubr.bf16.vlgmr.msra.gmra.mrb[0].mxu1 %v371_v58 }
  0x77   : > { %1068 = vmatprep.mubr.bf16.mxu0 %v14785_v38  ;;  %1174 = vmatprep.mubr.bf16.mxu1 %v14785_v38  ;;  %v12391_v38 = vld [vmem:[%s14778_s3 + $0xac] ss:$12 sps:$4 sm:$0xff]  }
  0x78   : > { %2497 = vmatpush1.bf16.msra.mxu0 %v9943_v62  ;;  %2538 = vmatpush1.bf16.msra.mxu1 %v9946_v0  ;;  %14865 = vst [vmem:[#allocation11_spill] sm:$0xff] %v12391_v38 }
  0x79   : > { %2498 = vmatprep.subr.bf16.mxu0 %v9951_v2  ;;  %2539 = vmatprep.subr.bf16.mxu1 %v9954_v3 }
  0x7c   : > { %2499 = vmatpush1.bf16.msra.mxu0 %v9949_v4  ;;  %2540 = vmatpush1.bf16.msra.mxu1 %v9952_v5 }
  0x7d   : > { %2500 = vmatprep.subr.bf16.mxu0 %v9957_v6  ;;  %2541 = vmatprep.subr.bf16.mxu1 %v9960_v7  ;;  %v9985_v6 = vld [vmem:[%s14779_s4 + $0xa8] ss:$12 sps:$4 sm:$0xff]  }
  0x7e   : > { %1069 = vmatmul.mubr.bf16.gmra.mrb[4].mxu0 %v374_v61  ;;  %1175 = vmatmul.mubr.bf16.gmra.mrb[4].mxu1 %v374_v61 }
  0x80   : > { %2501 = vmatpush1.bf16.msra.mxu0 %v9955_v8  ;;  %2542 = vmatpush1.bf16.msra.mxu1 %v9958_v9 }
  0x81   : > { %2502 = vmatprep.subr.bf16.mxu0 %v9963_v10  ;;  %2543 = vmatprep.subr.bf16.mxu1 %v9966_v11 }
  0x84   : > { %2503 = vmatpush1.bf16.msra.mxu0 %v9961_v12  ;;  %2544 = vmatpush1.bf16.msra.mxu1 %v9964_v13 }
  0x85   : > { %2504 = vmatprep.subr.bf16.mxu0 %v9969_v14  ;;  %2545 = vmatprep.subr.bf16.mxu1 %v9972_v15 }
  0x88   : > { %2505 = vmatpush1.bf16.msra.mxu0 %v9967_v16  ;;  %2546 = vmatpush1.bf16.msra.mxu1 %v9970_v17 }
  0x89   : > { %2506 = vmatprep.subr.bf16.mxu0 %v9975_v18  ;;  %2547 = vmatprep.subr.bf16.mxu1 %v9978_v19  ;;  %v9988_v19 = vld [vmem:[%s14779_s4 + $0x228] ss:$12 sps:$4 sm:$0xff]  }
  0x8c   : > { %2507 = vmatpush1.bf16.msra.mxu0 %v9973_v20  ;;  %2548 = vmatpush1.bf16.msra.mxu1 %v9976_v22  ;;  %v9990_v20 = vld [vmem:[%s14779_s4 + $0x22c] ss:$12 sps:$4 sm:$0xff]  }
  0x8d   : > { %2508 = vmatprep.subr.bf16.mxu0 %v9981_v23  ;;  %2549 = vmatprep.subr.bf16.mxu1 %v9984_v43 }
  0x90   : > { %2509 = vmatpush1.bf16.msra.mxu0 %v9979_v24  ;;  %2550 = vmatpush1.bf16.msra.mxu1 %v9982_v42 }
  0x91   : > { %2510 = vmatprep.subr.bf16.mxu0 %v9987_v1  ;;  %2551 = vmatprep.subr.bf16.mxu1 %v9990_v20 }
  0x94   : > { %2511 = vmatpush1.bf16.msra.mxu0 %v9985_v6  ;;  %2552 = vmatpush1.bf16.msra.mxu1 %v9988_v19 }
 0x149   : > { %v1060_v35 = vpop.f32.mrb[0].mxu0  ;;  %v1166_v36 = vpop.f32.mrb[0].mxu1 }
 0x14a   : > { %v11405_v37 = vadd.f32 %v1060_v35, %v11394_v31  ;;  %v9711_v39 = vadd.f32 %v1166_v36, %v11397_v32  ;;  %v1062_v40 = vpop.f32.mrb[1].mxu0  ;;  %v1168_v41 = vpop.f32.mrb[1].mxu1  ;;  %v9993_v35 = vld [vmem:[%s14779_s4 + $0xc4] ss:$12 sps:$4 sm:$0xff]  }
 0x14b   : > { %v11415_v44 = vadd.f32 %v1062_v40, %v11400_v33  ;;  %v11418_v45 = vadd.f32 %v1168_v41, %v11402_v34  ;;  %v1064_v46 = vpop.f32.mrb[2].mxu0  ;;  %v1170_v50 = vpop.f32.mrb[2].mxu1  ;;  %2512 = vmatprep.subr.bf16.mxu0 %v9993_v35 }
 0x14c   : > { %v1185_v51 = vmax.f32 %v11405_v37, 0.0  ;;  %v1187_v52 = vmax.f32 %v9711_v39, 0.0  ;;  %v9705_v53 = vadd.f32 %v1064_v46, %v11394_v31  ;;  %v9713_v47 = vadd.f32 %v1170_v50, %v11397_v32  ;;  %v1066_v48 = vpop.f32.mrb[3].mxu0  ;;  %v1172_v49 = vpop.f32.mrb[3].mxu1  ;;  %v9991_v46 = vld [vmem:[%s14779_s4 + $0xc0] ss:$12 sps:$4 sm:$0xff]  }
 0x14d   : > { %v1186_v54 = vmax.f32 %v11415_v44, 0.0  ;;  %v1188_v55 = vmax.f32 %v11418_v45, 0.0  ;;  %v9706_v56 = vadd.f32 %v1066_v48, %v11400_v33  ;;  %v9714_v57 = vadd.f32 %v1172_v49, %v11402_v34  ;;  %v9994_v48 = vld [vmem:[%s14779_s4 + $0x240] ss:$12 sps:$4 sm:$0xff]   ;;  %v9996_v49 = vld [vmem:[%s14779_s4 + $0x244] ss:$12 sps:$4 sm:$0xff]   ;;  %2513 = vmatpush1.bf16.msra.mxu0 %v9991_v46 }
 0x14e   : > { %v1218_v58 = vrot.slane %v1185_v51, 7  ;;  %v1220_v59 = vrot.slane %v1187_v52, 7  ;;  %v1189_v60 = vmax.f32 %v9705_v53, 0.0  ;;  %v1191_v61 = vmax.f32 %v9713_v47, 0.0  ;;  %2553 = vmatprep.subr.bf16.mxu1 %v9996_v49  ;;  %v10005_v45 = vld [vmem:[%s14779_s4 + $0xf4] ss:$12 sps:$4 sm:$0xff]  }
 0x14f   : > { %v1219_v62 = vrot.slane %v1186_v54, 7  ;;  %v1190_v63 = vmax.f32 %v9706_v56, 0.0  ;;  %v1192_v0 = vmax.f32 %v9714_v57, 0.0  ;;  %v1221_v3 = vrot.slane %v1188_v55, 7  ;;  %2554 = vmatpush1.bf16.msra.mxu1 %v9994_v48  ;;  %v10014_v44 = vld [vmem:[%s14779_s4 + $0x28c] ss:$12 sps:$4 sm:$0xff]  }
 0x150   : > { %v1264_v2 = vsel %vm1217_vm2, 0.0, %v1220_v59  ;;  %v1222_v4 = vrot.slane %v1189_v60, 7  ;;  %v11437_v5 = vrot.slane %v1191_v61, 7  ;;  %v1262_v12 = vsel %vm1217_vm2, 0.0, %v1218_v58  ;;  %v10018_v48 = vld [vmem:[%s14779_s4 + $0x2a0] ss:$12 sps:$4 sm:$0xff]  }
 0x151   : > { %v11443_v7 = vsel %vm1217_vm2, 0.0, %v1219_v62  ;;  %v11445_v8 = vrot.slane %v1190_v63, 7  ;;  %v11447_v9 = vrot.slane %v1192_v0, 7  ;;  %v1070_v10 = vpop.f32.mrb[4].mxu0  ;;  %v1176_v11 = vpop.f32.mrb[4].mxu1  ;;  %v11450_v13 = vadd.f32 %v1264_v2, %v1187_v52 }
 0x152   : > { %v1223_v14 = vsel %vm1217_vm2, %v1218_v58, %v1222_v4  ;;  %v1227_v15 = vsel %vm1217_vm2, %v1220_v59, %v11437_v5  ;;  %v9707_v16 = vadd.f32 %v1070_v10, %v11394_v31  ;;  %v1072_v17 = vpop.f32.mrb[5].mxu0  ;;  %v1178_v18 = vpop.f32.mrb[5].mxu1  ;;  %v9715_v41 = vadd.f32 %v1176_v11, %v11397_v32  ;;  %v10023_v49 = vld [vmem:[%s14779_s4 + $0x13c] ss:$12 sps:$4 sm:$0xff]  }
 0x153   : > { %v11462_v22 = vadd.f32 %v1223_v14, %v1189_v60  ;;  %v11464_v23 = vadd.f32 %v1227_v15, %v1191_v61  ;;  %v1225_v24 = vsel %vm1217_vm2, %v1219_v62, %v11445_v8  ;;  %v1229_v25 = vsel %vm1217_vm2, %v1221_v3, %v11447_v9  ;;  %v1074_v29 = vpop.f32.mrb[6].mxu0  ;;  %v1180_v30 = vpop.f32.mrb[6].mxu1  ;;  %v9999_v62 = vld [vmem:[%s14779_s4 + $0xdc] ss:$12 sps:$4 sm:$0xff]  }
 0x154   : > { %v11473_v36 = vadd.f32 %v1225_v24, %v1190_v63  ;;  %v11475_v39 = vadd.f32 %v1229_v25, %v1192_v0  ;;  %v1193_v40 = vmax.f32 %v9707_v16, 0.0  ;;  %v1182_v42 = vpop.f32.mrb[7].mxu1  ;;  %v1076_v43 = vpop.f32.mrb[7].mxu0  ;;  %v9708_v50 = vadd.f32 %v1072_v17, %v11400_v33  ;;  %2514 = vmatprep.subr.bf16.mxu0 %v9999_v62  ;;  %v10002_v15 = vld [vmem:[%s14779_s4 + $0x25c] ss:$12 sps:$4 sm:$0xff]  }
 0x155   : > { %v9716_v52 = vadd.f32 %v1178_v18, %v11402_v34  ;;  %v9709_v53 = vadd.f32 %v1074_v29, %v11394_v31  ;;  %v9717_v47 = vadd.f32 %v1180_v30, %v11397_v32  ;;  %v1195_v57 = vmax.f32 %v9715_v41, 0.0  ;;  %2555 = vmatprep.subr.bf16.mxu1 %v10002_v15  ;;  %v10033_v62 = vld [vmem:[%s14779_s4 + $0x168] ss:$12 sps:$4 sm:$0xff]  }
 0x156   : > { %v1230_v56 = vrot.slane %v1193_v40, 7  ;;  %v11493_v58 = vadd.f32 %v1262_v12, %v1185_v51  ;;  %v9718_v59 = vadd.f32 %v1182_v42, %v11402_v34  ;;  %v1194_v31 = vmax.f32 %v9708_v50, 0.0  ;;  %v9997_v51 = vld [vmem:[%s14779_s4 + $0xd8] ss:$12 sps:$4 sm:$0xff]  }
 0x157   : > { %v1196_v32 = vmax.f32 %v9716_v52, 0.0  ;;  %v1197_v60 = vmax.f32 %v9709_v53, 0.0  ;;  %v1199_v61 = vmax.f32 %v9717_v47, 0.0  ;;  %v1234_v0 = vrot.slane %v1195_v57, 7  ;;  %2515 = vmatpush1.bf16.msra.mxu0 %v9997_v51  ;;  %v10017_v50 = vld [vmem:[%s14779_s4 + $0x124] ss:$12 sps:$4 sm:$0xff]  }
 0x158   : > { %v1231_v63 = vsel %vm1217_vm2, %v1222_v4, %v1230_v56  ;;  %1282 = vrot.lane.b32.xlu0 %v11493_v58, %s10867_s23  ;;  %v1200_v37 = vmax.f32 %v9718_v59, 0.0  ;;  %v1265_v34 = vsel %vm1217_vm2, 0.0, %v1221_v3  ;;  %v1232_v2 = vrot.slane %v1194_v31, 7  ;;  %v10000_v4 = vld [vmem:[%s14779_s4 + $0x258] ss:$12 sps:$4 sm:$0xff]   ;;  %2516 = vmatprep.subr.bf16.mxu0 %v10005_v45 }
 0x159   : > { %v11506_v1 = vadd.f32 %v1231_v63, %v1193_v40  ;;  %v1236_v6 = vrot.slane %v1196_v32, 7  ;;  %v1238_v10 = vrot.slane %v1197_v60, 7  ;;  %v1235_v11 = vsel %vm1217_vm2, %v11437_v5, %v1234_v0  ;;  %2556 = vmatpush1.bf16.msra.mxu1 %v10000_v4  ;;  %v10006_v40 = vld [vmem:[%s14779_s4 + $0x270] ss:$12 sps:$4 sm:$0xff]   ;;  %v10015_v53 = vld [vmem:[%s14779_s4 + $0x120] ss:$12 sps:$4 sm:$0xff]  }
 0x15a   : > { %v1242_v12 = vrot.slane %v1199_v61, 7  ;;  %v1244_v3 = vrot.slane %v1200_v37, 7  ;;  %v11515_v14 = vadd.f32 %v1265_v34, %v1188_v55  ;;  %v11520_v16 = vadd.f32 %v1235_v11, %v1195_v57  ;;  %v10020_v47 = vld [vmem:[%s14779_s4 + $0x2a4] ss:$12 sps:$4 sm:$0xff]   ;;  %v10026_v57 = vld [vmem:[%s14779_s4 + $0x2bc] ss:$12 sps:$4 sm:$0xff]  }
 0x15b   : > { %v1233_v17 = vsel %vm1217_vm2, %v11445_v8, %v1232_v2  ;;  %v1237_v18 = vsel %vm1217_vm2, %v11447_v9, %v1236_v6  ;;  %v1239_v5 = vsel %vm1217_vm2, %v1230_v56, %v1238_v10  ;;  %v10003_v8 = vld [vmem:[%s14779_s4 + $0xf0] ss:$12 sps:$4 sm:$0xff]   ;;  %v10008_v9 = vld [vmem:[%s14779_s4 + $0x274] ss:$12 sps:$4 sm:$0xff]   ;;  %v9710_v30 = vadd.f32 %v1076_v43, %v11400_v33  ;;  %v10011_v33 = vld [vmem:[%s14779_s4 + $0x10c] ss:$12 sps:$4 sm:$0xff]  }
 0x15c   : > { %v11530_v55 = vadd.f32 %v1233_v17, %v1194_v31  ;;  %v11532_v19 = vadd.f32 %v1237_v18, %v1196_v32  ;;  %v11534_v20 = vadd.f32 %v1239_v5, %v1197_v60  ;;  %v1243_v24 = vsel %vm1217_vm2, %v1234_v0, %v1242_v12  ;;  %1306 = vrot.lane.b32.xlu1 %v11515_v14, %s10867_s23  ;;  %v10009_v43 = vld [vmem:[%s14779_s4 + $0x108] ss:$12 sps:$4 sm:$0xff]   ;;  %v10021_v56 = vld [vmem:[%s14779_s4 + $0x138] ss:$12 sps:$4 sm:$0xff]   ;;  %v10027_v32 = vld [vmem:[%s14779_s4 + $0x150] ss:$12 sps:$4 sm:$0xff]  }
 0x15d   : > { %v11545_v25 = vadd.f32 %v1243_v24, %v1199_v61  ;;  %v1245_v29 = vsel %vm1217_vm2, %v1236_v6, %v1244_v3  ;;  %1298 = vrot.lane.b32.xlu0 %v11450_v13, %s10867_s23  ;;  %v11559_v41 = vadd.f32 %v11443_v7, %v1186_v54  ;;  %v1198_v42 = vmax.f32 %v9710_v30, 0.0  ;;  %2517 = vmatpush1.bf16.msra.mxu0 %v10003_v8  ;;  %v10012_v7 = vld [vmem:[%s14779_s4 + $0x288] ss:$12 sps:$4 sm:$0xff]   ;;  %v10024_v59 = vld [vmem:[%s14779_s4 + $0x2b8] ss:$12 sps:$4 sm:$0xff]  }
 0x15e   : > { %v11551_v35 = vadd.f32 %v1245_v29, %v1200_v37  ;;  %2557 = vmatprep.subr.bf16.mxu1 %v10008_v9  ;;  %2518 = vmatprep.subr.bf16.mxu0 %v10011_v33  ;;  %v10029_v31 = vld [vmem:[%s14779_s4 + $0x154] ss:$12 sps:$4 sm:$0xff]   ;;  %v10030_v61 = vld [vmem:[%s14779_s4 + $0x2d0] ss:$12 sps:$4 sm:$0xff]   ;;  %v10035_v63 = vld [vmem:[%s14779_s4 + $0x16c] ss:$12 sps:$4 sm:$0xff]  }
 0x15f   : > { %v1240_v54 = vrot.slane %v1198_v42, 7  ;;  %2558 = vmatpush1.bf16.msra.mxu1 %v10006_v40  ;;  %v10032_v60 = vld [vmem:[%s14779_s4 + $0x2d4] ss:$12 sps:$4 sm:$0xff]   ;;  %v10038_v0 = vld [vmem:[%s14779_s4 + $0x2ec] ss:$12 sps:$4 sm:$0xff]  }
 0x160   : > { %1284 = vrot.lane.b32.xlu1 %v11462_v22, %s10867_s23  ;;  %2559 = vmatprep.subr.bf16.mxu1 %v10014_v44  ;;  %v10036_v37 = vld [vmem:[%s14779_s4 + $0x2e8] ss:$12 sps:$4 sm:$0xff]  }
 0x161   : > { %1290 = vrot.lane.b32.xlu0 %v11559_v41, %s10867_s23  ;;  %v1241_v46 = vsel %vm1217_vm2, %v1232_v2, %v1240_v54  ;;  %2519 = vmatpush1.bf16.msra.mxu0 %v10009_v43  ;;  %v10039_v34 = vld [vmem:[%s14779_s4 + $0xc8] ss:$12 sps:$4 sm:$0xff]   ;;  %v11657_v2 = vand.u32 127, %v473_v21 }
 0x162   : > { %v11581_v52 = vadd.f32 %v1241_v46, %v1198_v42  ;;  %2520 = vmatprep.subr.bf16.mxu0 %v10017_v50  ;;  %v10041_v51 = vld [vmem:[%s14779_s4 + $0x248] ss:$12 sps:$4 sm:$0xff]  }
 0x163   : > { %2560 = vmatpush1.bf16.msra.mxu1 %v10012_v7  ;;  %vm1316_vm3 = vcmp.lt.s32.totalorder %v11657_v2, 16  ;;  %vm1336_vm4 = vcmp.ge.s32.totalorder %v11657_v2, 16 }
 0x164   : > { %1300 = vrot.lane.b32.xlu1 %v11464_v23, %s10867_s23  ;;  %2561 = vmatprep.subr.bf16.mxu1 %v10020_v47 }
 0x165   : > { %1292 = vrot.lane.b32.xlu0 %v11473_v36, %s10867_s23  ;;  %2521 = vmatpush1.bf16.msra.mxu0 %v10015_v53 }
 0x166   : > { %2522 = vmatprep.subr.bf16.mxu0 %v10023_v49 }
 0x167   : > { %2562 = vmatpush1.bf16.msra.mxu1 %v10018_v48 }
 0x168   : > { %1308 = vrot.lane.b32.xlu1 %v11475_v39, %s10867_s23  ;;  %2563 = vmatprep.subr.bf16.mxu1 %v10026_v57 }
 0x169   : > { %1294 = vrot.lane.b32.xlu0 %v11530_v55, %s10867_s23  ;;  %2523 = vmatpush1.bf16.msra.mxu0 %v10021_v56 }
 0x16a   : > { %2524 = vmatprep.subr.bf16.mxu0 %v10029_v31 }
 0x16b   : > { %2564 = vmatpush1.bf16.msra.mxu1 %v10024_v59 }
 0x16c   : > { %1286 = vrot.lane.b32.xlu1 %v11506_v1, %s10867_s23  ;;  %2565 = vmatprep.subr.bf16.mxu1 %v10032_v60 }
 0x16d   : > { %1310 = vrot.lane.b32.xlu0 %v11532_v19, %s10867_s23  ;;  %2525 = vmatpush1.bf16.msra.mxu0 %v10027_v32 }
 0x16e   : > { %2526 = vmatprep.subr.bf16.mxu0 %v10035_v63 }
 0x16f   : > { %2566 = vmatpush1.bf16.msra.mxu1 %v10030_v61 }
 0x170   : > { %1302 = vrot.lane.b32.xlu1 %v11520_v16, %s10867_s23  ;;  %2567 = vmatprep.subr.bf16.mxu1 %v10038_v0 }
 0x171   : > { %1296 = vrot.lane.b32.xlu0 %v11581_v52, %s10867_s23  ;;  %2527 = vmatpush1.bf16.msra.mxu0 %v10033_v62 }
 0x172   : > { %9080 = vmatprep.subr.bf16.mxu0 %v10039_v34 }
 0x173   : > { %2568 = vmatpush1.bf16.msra.mxu1 %v10036_v37 }
 0x174   : > { %1288 = vrot.lane.b32.xlu1 %v11534_v20, %s10867_s23  ;;  %9102 = vmatprep.subr.bf16.mxu1 %v10041_v51 }
 0x175   : > { %1312 = vrot.lane.b32.xlu0 %v11551_v35, %s10867_s23 }
 0x178   : > { %1304 = vrot.lane.b32.xlu1 %v11545_v25, %s10867_s23  ;;  %s324_s23 = scalar_lea.vmem [#allocation2], %s323_s25 }
 0x179   : > { %s8249_s21 = sshll.u32 %s324_s23, 4  ;;  %s14735_s21 = int_to_ptr.vmem [resolvable:$true] %s8249_s21 }
 0x17a   : > { %s10802_s16 = scalar_lea.vmem %s14735_s21, 16  ;;  %p10809_p0 = scmp.lt.s32.totalorder %s14735_s21, %s10807_s17 }
 0x17b   : > { %p10803_p11 = scmp.ne.s32.totalorder %s14735_s21, %s10802_s16  ;;  %p10810_p1 = scmp.lt.s32.totalorder %s10808_s22, %s10802_s16 }
 0x17d   : > { %p10804_p12 = pnand %p10803_p11, %p10959_p5  ;;  %p10811_p2 = por %p10810_p1, %p10809_p0 }
 0x17f   : > { %p10805_p13 = pneg %p10804_p12 }
 0x181   : > { %p10812_p3 = pnand %p10811_p2, %p10805_p13 }
 0x1ca   : > { %v1283_v6 = vpop.permute.xlu0 %1282 }
 0x1ce   : > { %v1307_v10 = vpop.permute.xlu1 %1306 }
 0x1cf   : > { %v1329_v4 = vsel %vm1316_vm3, %v1307_v10, %v1283_v6  ;;  %v1299_v11 = vpop.permute.xlu0 %1298 }
 0x1d0   : > { %v1340_v12 = vsel %vm1336_vm4, %v1329_v4, 0.0  ;;  %v1317_v3 = vsel %vm1316_vm3, %v1299_v11, %v1307_v10 }
 0x1d1   : > { %v1356_v15 = vadd.f32 %v1340_v12, %v11493_v58  ;;  %v1359_v21 = vadd.f32 %v1317_v3, %v11515_v14 }
 0x1d2   : > { %v1285_v17 = vpop.permute.xlu1 %1284 }
 0x1d3   : > { %v1291_v18 = vpop.permute.xlu0 %1290  ;;  %v11673_v24 = vmul.f32 0.25, %v1356_v15  ;;  %v11677_v29 = vmul.f32 0.25, %v1359_v21 }
 0x1d4   : > { %v1321_v5 = vsel %vm1316_vm3, %v1291_v18, %v1299_v11  ;;  %v1325_v45 = vsel %vm1316_vm3, %v1283_v6, %v1291_v18 }
 0x1d5   : > { %v1357_v8 = vadd.f32 %v1325_v45, %v11559_v41  ;;  %v1358_v9 = vadd.f32 %v1321_v5, %v11450_v13  ;;  %v1496_v43 = vrot.slane %v11673_v24, 1  ;;  %v1504_v41 = vrot.slane %v11673_v24, 4 }
 0x1d6   : > { %v1301_v30 = vpop.permute.xlu1 %1300  ;;  %v1499_v50 = vrot.slane %v11677_v29, 1  ;;  %v1507_v53 = vrot.slane %v11677_v29, 4  ;;  %v1395_v60 = vrot.slane %v11677_v29, 3  ;;  %v1392_v61 = vrot.slane %v11673_v24, 3 }
 0x1d7   : > { %v11679_v58 = vmul.f32 0.25, %v1358_v9  ;;  %v1293_v14 = vpop.permute.xlu0 %1292  ;;  %v11681_v40 = vmul.f32 0.25, %v1357_v8  ;;  %v1552_v37 = vsel %vm1217_vm2, %v1496_v43, %v1504_v41 }
 0x1d8   : > { %v1322_v42 = vsel %vm1316_vm3, %v1293_v14, %v1301_v30  ;;  %v1326_v33 = vsel %vm1316_vm3, %v1285_v17, %v1293_v14  ;;  %v1555_v10 = vsel %vm1217_vm2, %v1499_v50, %v1507_v53  ;;  %v11755_v50 = vsel %vm1217_vm2, %v11673_v24, %v1392_v61 }
 0x1d9   : > { %v1361_v13 = vadd.f32 %v1326_v33, %v11473_v36  ;;  %v1362_v44 = vadd.f32 %v1322_v42, %v11464_v23  ;;  %v1498_v54 = vrot.slane %v11679_v58, 1  ;;  %v1506_v7 = vrot.slane %v11679_v58, 4 }
 0x1da   : > { %v1309_v46 = vpop.permute.xlu1 %1308  ;;  %v1497_v59 = vrot.slane %v11681_v40, 1  ;;  %v1505_v31 = vrot.slane %v11681_v40, 4 }
 0x1db   : > { %v11695_v47 = vmul.f32 0.25, %v1361_v13  ;;  %v11697_v48 = vmul.f32 0.25, %v1362_v44  ;;  %v1318_v49 = vsel %vm1316_vm3, %v1301_v30, %v1309_v46  ;;  %v1330_v23 = vsel %vm1316_vm3, %v1309_v46, %v1285_v17  ;;  %v1295_v36 = vpop.permute.xlu0 %1294 }
 0x1dc   : > { %v1344_v56 = vsel %vm1336_vm4, %v1330_v23, 0.0  ;;  %v1363_v57 = vadd.f32 %v1318_v49, %v11475_v39  ;;  %v1393_v39 = vrot.slane %v11681_v40, 3  ;;  %v1553_v12 = vsel %vm1217_vm2, %v1497_v59, %v1505_v31 }
 0x1dd   : > { %v1360_v32 = vadd.f32 %v1344_v56, %v11462_v22  ;;  %v1514_v62 = vrot.slane %v11697_v48, 7  ;;  %v1513_v6 = vrot.slane %v11695_v47, 7  ;;  %v1554_v3 = vsel %vm1217_vm2, %v1498_v54, %v1506_v7 }
 0x1de   : > { %v11712_v63 = vmul.f32 0.25, %v1363_v57  ;;  %v1287_v0 = vpop.permute.xlu1 %1286  ;;  %v1521_v21 = vrot.slane %v11695_v47, 2  ;;  %v1522_v9 = vrot.slane %v11697_v48, 2  ;;  %v1405_v46 = vrot.slane %v11695_v47, 6 }
 0x1df   : > { %v11716_v34 = vmul.f32 0.25, %v1360_v32  ;;  %v1327_v51 = vsel %vm1316_vm3, %v1287_v0, %v1295_v36  ;;  %v1311_v22 = vpop.permute.xlu0 %1310  ;;  %v1557_v33 = vsel %vm1464_vm5, %v1553_v12, %v1513_v6  ;;  %v1558_v43 = vsel %vm1464_vm5, %v1554_v3, %v1514_v62 }
 0x1e0   : > { %v1365_v4 = vadd.f32 %v1327_v51, %v11530_v55  ;;  %v1331_v11 = vsel %vm1316_vm3, %v1311_v22, %v1287_v0  ;;  %v1515_v18 = vrot.slane %v11712_v63, 7  ;;  %v1523_v44 = vrot.slane %v11712_v63, 2 }
 0x1e1   : > { %v1348_v15 = vsel %vm1336_vm4, %v1331_v11, 0.0  ;;  %v1512_v17 = vrot.slane %v11716_v34, 7  ;;  %v1520_v8 = vrot.slane %v11716_v34, 2  ;;  %v1413_v23 = vrot.slane %v11695_v47, 1 }
 0x1e2   : > { %v11732_v5 = vmul.f32 0.25, %v1365_v4  ;;  %v1364_v55 = vadd.f32 %v1348_v15, %v11506_v1  ;;  %v1303_v45 = vpop.permute.xlu1 %1302  ;;  %v1559_v7 = vsel %vm1464_vm5, %v1555_v10, %v1515_v18  ;;  %v1561_v57 = vsel %vm1469_vm6, %v1557_v33, %v1521_v21 }
 0x1e3   : > { %v1319_v30 = vsel %vm1316_vm3, %v1303_v45, %v1311_v22  ;;  %v1323_v14 = vsel %vm1316_vm3, %v1295_v36, %v1303_v45  ;;  %v1297_v42 = vpop.permute.xlu0 %1296  ;;  %v1556_v54 = vsel %vm1464_vm5, %v1552_v37, %v1512_v17  ;;  %v1562_v31 = vsel %vm1469_vm6, %v1558_v43, %v1522_v9 }
 0x1e4   : > { %v11743_v41 = vmul.f32 0.25, %v1364_v55  ;;  %v1366_v1 = vadd.f32 %v1323_v14, %v11520_v16  ;;  %v1367_v13 = vadd.f32 %v1319_v30, %v11532_v19  ;;  %v1529_v19 = vrot.slane %v11732_v5, 5 }
 0x1e5   : > { %v1560_v0 = vsel %vm1469_vm6, %v1556_v54, %v1520_v8  ;;  %v1563_v37 = vsel %vm1469_vm6, %v1559_v7, %v1523_v44  ;;  %v1425_v6 = vrot.slane %v11732_v5, 4  ;;  %v1433_v10 = vrot.slane %v11732_v5, 7 }
 0x1e6   : > { %v11757_v53 = vmul.f32 0.25, %v1366_v1  ;;  %v11759_v49 = vmul.f32 0.25, %v1367_v13  ;;  %v1289_v16 = vpop.permute.xlu1 %1288  ;;  %v1528_v59 = vrot.slane %v11743_v41, 5  ;;  %v1565_v12 = vsel %vm1474_vm7, %v1561_v57, %v1529_v19 }
 0x1e7   : > { %v1328_v36 = vsel %vm1316_vm3, %v1289_v16, %v1297_v42  ;;  %v1313_v56 = vpop.permute.xlu0 %1312  ;;  %v1461_v18 = vsel %vm1217_vm2, %v11681_v40, %v1393_v39  ;;  %v1569_v2 = vsel %vm1479_vm8, %v1565_v12, %v11732_v5  ;;  %v10045_v12 = vld [vmem:[%s14779_s4 + $0x260] ss:$12 sps:$4 sm:$0xff]  }
 0x1e8   : > { %v1369_v32 = vadd.f32 %v1328_v36, %v11581_v52  ;;  %v1332_v62 = vsel %vm1316_vm3, %v1313_v56, %v1289_v16  ;;  %v1531_v22 = vrot.slane %v11759_v49, 5  ;;  %v1530_v3 = vrot.slane %v11757_v53, 5 }
 0x1e9   : > { %v1352_v51 = vsel %vm1336_vm4, %v1332_v62, 0.0  ;;  %v1564_v17 = vsel %vm1474_vm7, %v1560_v0, %v1528_v59  ;;  %v1466_v14 = vsel %vm1464_vm5, %v1461_v18, %v1405_v46  ;;  %v10047_v18 = vld [vmem:[%s14779_s4 + $0xf8] ss:$12 sps:$4 sm:$0xff]  }
 0x1ea   : > { %v11778_v4 = vmul.f32 0.25, %v1369_v32  ;;  %v1368_v52 = vadd.f32 %v1352_v51, %v11534_v20  ;;  %v1305_v11 = vpop.permute.xlu1 %1304  ;;  %v1567_v30 = vsel %vm1474_vm7, %v1563_v37, %v1531_v22  ;;  %v1568_v13 = vsel %vm1479_vm8, %v1564_v17, %v11743_v41  ;;  %v10042_v37 = vld [vmem:[%s14779_s4 + $0x188] ss:$12 sps:$4 sm:$0xff]  }
 0x1eb   : > { %v1320_v15 = vsel %vm1316_vm3, %v1305_v11, %v1313_v56  ;;  %v1324_v21 = vsel %vm1316_vm3, %v1297_v42, %v1305_v11  ;;  %v1566_v44 = vsel %vm1474_vm7, %v1562_v31, %v1530_v3  ;;  %v1571_v36 = vsel %vm1479_vm8, %v1567_v30, %v11759_v49  ;;  %v10040_v56 = vld [vmem:[%s14779_s4 + $0x8] ss:$12 sps:$4 sm:$0xff]   ;;  %v10043_v31 = vld [vmem:[%s14779_s4 + $0xe0] ss:$12 sps:$4 sm:$0xff]  }
 0x1ec   : > { %v11792_v55 = vmul.f32 0.25, %v1368_v52  ;;  %v1370_v20 = vadd.f32 %v1324_v21, %v11545_v25  ;;  %v1371_v45 = vadd.f32 %v1320_v15, %v11551_v35  ;;  %v1537_v8 = vrot.slane %v11778_v4, 3  ;;  %v10044_v11 = vld [vmem:[%s14779_s4 + $0x20] ss:$12 sps:$4 sm:$0xff]  }
 0x1ed   : > { %v1545_v9 = vrot.slane %v11778_v4, 6  ;;  %v1570_v0 = vsel %vm1479_vm8, %v1566_v44, %v11757_v53  ;;  %v1407_v51 = vrot.slane %v11712_v63, 6  ;;  %v1445_v3 = vrot.slane %v11778_v4, 2 }
 0x1ee   : > { %v11802_v42 = vmul.f32 0.25, %v1370_v20  ;;  %v11804_v33 = vmul.f32 0.25, %v1371_v45  ;;  %v1573_v43 = vsel %vm355_vm1, %v1569_v2, %v1537_v8  ;;  %v1536_v25 = vrot.slane %v11792_v55, 3 }
 0x1ef   : > { %v1577_v35 = vsel %vm341_vm0, %v1573_v43, %v1545_v9  ;;  %v1544_v1 = vrot.slane %v11792_v55, 6  ;;  %v1471_v15 = vsel %vm1469_vm6, %v1466_v14, %v1413_v23  ;;  %v1453_v20 = vrot.slane %v11778_v4, 5  ;;  %v10046_v14 = vld [vmem:[%s14779_s4 + $0x1a0] ss:$12 sps:$4 sm:$0xff]  }
 0x1f0   : > { %v1581_v54 = vpack.c.bf16 %v1577_v35, %v1577_v35  ;;  %v1572_v7 = vsel %vm355_vm1, %v1568_v13, %v1536_v25  ;;  %v1539_v46 = vrot.slane %v11804_v33, 3  ;;  %v1547_v16 = vrot.slane %v11804_v33, 6  ;;  %v10049_v13 = vld [vmem:[%s14779_s4 + $0x278] ss:$12 sps:$4 sm:$0xff]  }
 0x1f1   : > { %v1576_v19 = vsel %vm341_vm0, %v1572_v7, %v1544_v1  ;;  %v1538_v57 = vrot.slane %v11802_v42, 3  ;;  %v1546_v59 = vrot.slane %v11802_v42, 6  ;;  %v1415_v45 = vrot.slane %v11712_v63, 1 }
 0x1f2   : > { %2528 = vmatprep.mubr.bf16.mxu0 %v1581_v54  ;;  %v11827_v32 = vpack.c.bf16 %v1576_v19, %v1576_v19  ;;  %v1575_v62 = vsel %vm355_vm1, %v1571_v36, %v1539_v46  ;;  %v1476_v9 = vsel %vm1474_vm7, %v1471_v15, %v1425_v6  ;;  %v1404_v2 = vrot.slane %v11716_v34, 6  ;;  %v10048_v6 = vld [vmem:[%s14779_s4 + $0x38] ss:$12 sps:$4 sm:$0xff]  }
 0x1f3   : > { %v1579_v22 = vsel %vm341_vm0, %v1575_v62, %v1547_v16  ;;  %v1574_v52 = vsel %vm355_vm1, %v1570_v0, %v1538_v57  ;;  %v1412_v30 = vrot.slane %v11716_v34, 1  ;;  %v1427_v43 = vrot.slane %v11759_v49, 4  ;;  %v11885_v16 = vld [vmem:[%s14779_s4 + $0x110] ss:$12 sps:$4 sm:$0xff]   ;;  %v11902_v0 = vld [vmem:[%s14779_s4 + $0x1b8] ss:$12 sps:$4 sm:$0xff]  }
 0x1f4   : > { %2529 = vmatmul.mubr.bf16.vlgmr.msra.gmra.mrb[8].mxu0 %v11827_v32  ;;  %v1583_v21 = vpack.c.bf16 %v1579_v22, %v1579_v22  ;;  %v1578_v17 = vsel %vm341_vm0, %v1574_v52, %v1546_v59  ;;  %v1435_v25 = vrot.slane %v11759_v49, 7  ;;  %v1424_v35 = vrot.slane %v11743_v41, 4 }
 0x1f5   : > { %9081 = vmatpush3.bf16.msra.mxu0 %v10040_v56  ;;  %v11855_v8 = vpack.c.bf16 %v1578_v17, %v1578_v17  ;;  %2610 = vmatprep.mubr.bf16.mxu0 %v1581_v54  ;;  %v1432_v1 = vrot.slane %v11743_v41, 7  ;;  %v1463_v44 = vsel %vm1217_vm2, %v11677_v29, %v1395_v60  ;;  %v1444_v54 = vrot.slane %v11792_v55, 2 }
 0x1f6   : > { %2569 = vmatprep.mubr.bf16.mxu1 %v1583_v21  ;;  %9082 = vmatprep.subr.bf16.mxu0 %v10043_v31  ;;  %v1465_v7 = vsel %vm1464_vm5, %v11755_v50, %v1404_v2  ;;  %v1394_v46 = vrot.slane %v11679_v58, 3  ;;  %v1481_v19 = vsel %vm1479_vm8, %v1476_v9, %v1433_v10  ;;  %v1452_v36 = vrot.slane %v11792_v55, 5 }
 0x1f7   : > { %2570 = vmatmul.mubr.bf16.vlgmr.msra.gmra.mrb[8].mxu1 %v11855_v8  ;;  %v1470_v56 = vsel %vm1469_vm6, %v1465_v7, %v1412_v30  ;;  %v1406_v50 = vrot.slane %v11697_v48, 6  ;;  %v1485_v57 = vsel %vm355_vm1, %v1481_v19, %v1445_v3  ;;  %v1455_v59 = vrot.slane %v11804_v33, 5  ;;  %v11918_v3 = vld [vmem:[%s14779_s4 + $0x290] ss:$12 sps:$4 sm:$0xff]  }
 0x1f8   : > { %9103 = vmatpush3.bf16.msra.mxu1 %v10042_v37  ;;  %2650 = vmatprep.mubr.bf16.mxu1 %v1583_v21  ;;  %v1475_v31 = vsel %vm1474_vm7, %v1470_v56, %v1424_v35  ;;  %v1414_v62 = vrot.slane %v11697_v48, 1  ;;  %v1468_v37 = vsel %vm1464_vm5, %v1463_v44, %v1407_v51  ;;  %v1426_v52 = vrot.slane %v11757_v53, 4  ;;  %v11952_v56 = vld [vmem:[%s14779_s4 + $0x1d0] ss:$12 sps:$4 sm:$0xff]  }
 0x1f9   : > { %9083 = vmatpush3.bf16.msra.mxu0 %v10044_v11  ;;  %9104 = vmatprep.subr.bf16.mxu1 %v10045_v12  ;;  %v1480_v22 = vsel %vm1479_vm8, %v1475_v31, %v1432_v1  ;;  %v1434_v11 = vrot.slane %v11757_v53, 7  ;;  %v11913_v12 = vld [vmem:[%s14779_s4 + $0x50] ss:$12 sps:$4 sm:$0xff]   ;;  %v1446_v15 = vrot.slane %v11802_v42, 2  ;;  %v1462_v21 = vsel %vm1217_vm2, %v11679_v58, %v1394_v46 }
 0x1fa   : > { %9084 = vmatprep.subr.bf16.mxu0 %v10047_v18  ;;  %v1484_v51 = vsel %vm355_vm1, %v1480_v22, %v1444_v54  ;;  %v1673_v17 = vrot.slane %v11681_v40, 6  ;;  %v11930_v18 = vld [vmem:[%s14779_s4 + $0x128] ss:$12 sps:$4 sm:$0xff]   ;;  %v1454_v2 = vrot.slane %v11802_v42, 5  ;;  %v1467_v35 = vsel %vm1464_vm5, %v1462_v21, %v1406_v50 }
 0x1fb   : > { %v11935_v9 = vsel %vm341_vm0, %v1484_v51, %v1452_v36  ;;  %v1681_v44 = vrot.slane %v11695_v47, 4  ;;  %v1689_v54 = vrot.slane %v11732_v5, 2  ;;  %v1675_v19 = vrot.slane %v11677_v29, 6  ;;  %v11968_v22 = vld [vmem:[%s14779_s4 + $0x2a8] ss:$12 sps:$4 sm:$0xff]  }
 0x1fc   : > { %9105 = vmatpush3.bf16.msra.mxu1 %v10046_v14  ;;  %v1472_v14 = vsel %vm1469_vm6, %v1467_v35, %v1414_v62  ;;  %v1697_v7 = vsel %vm1217_vm2, %v1393_v39, %v1673_v17  ;;  %v1683_v50 = vrot.slane %v11712_v63, 4  ;;  %v1691_v31 = vrot.slane %v11759_v49, 2  ;;  %v11963_v39 = vld [vmem:[%s14779_s4 + $0x68] ss:$12 sps:$4 sm:$0xff]   ;;  %v11982_v17 = vld [vmem:[%s14779_s4 + $0x140] ss:$12 sps:$4 sm:$0xff]  }
 0x1fd   : > { %9085 = vmatpush3.bf16.msra.mxu0 %v10048_v6  ;;  %9106 = vmatprep.subr.bf16.mxu1 %v10049_v13  ;;  %v1477_v6 = vsel %vm1474_vm7, %v1472_v14, %v1426_v52  ;;  %v1701_v13 = vsel %vm1464_vm5, %v1697_v7, %v1413_v23  ;;  %v1699_v51 = vsel %vm1217_vm2, %v1395_v60, %v1675_v19  ;;  %v1672_v21 = vrot.slane %v11673_v24, 6 }
 0x1fe   : > { %9086 = vmatprep.subr.bf16.mxu0 %v11885_v16  ;;  %v1482_v52 = vsel %vm1479_vm8, %v1477_v6, %v1434_v11  ;;  %v1705_v23 = vsel %vm1469_vm6, %v1701_v13, %v1681_v44  ;;  %v1703_v44 = vsel %vm1464_vm5, %v1699_v51, %v1415_v45  ;;  %v1680_v60 = vrot.slane %v11716_v34, 4  ;;  %v12006_v6 = vld [vmem:[%s14779_s4 + $0x1e8] ss:$12 sps:$4 sm:$0xff]  }
 0x1ff   : > { %v1486_v35 = vsel %vm355_vm1, %v1482_v52, %v1446_v15  ;;  %v1709_v14 = vsel %vm1474_vm7, %v1705_v23, %v1433_v10  ;;  %v1707_v19 = vsel %vm1469_vm6, %v1703_v44, %v1683_v50  ;;  %v1688_v10 = vrot.slane %v11743_v41, 2  ;;  %v12023_v23 = vld [vmem:[%s14779_s4 + $0x80] ss:$12 sps:$4 sm:$0xff]  }
 0x200   : > { %9107 = vmatpush3.bf16.msra.mxu1 %v11902_v0  ;;  %v11997_v7 = vsel %vm341_vm0, %v1486_v35, %v1454_v2  ;;  %v1713_v15 = vsel %vm1479_vm8, %v1709_v14, %v1689_v54  ;;  %v1489_v13 = vsel %vm341_vm0, %v1485_v57, %v1453_v20  ;;  %v1711_v54 = vsel %vm1474_vm7, %v1707_v19, %v1435_v25  ;;  %v12028_v57 = vld [vmem:[%s14779_s4 + $0x2c0] ss:$12 sps:$4 sm:$0xff]   ;;  %v12043_v35 = vld [vmem:[%s14779_s4 + $0x158] ss:$12 sps:$4 sm:$0xff]  }
 0x201   : > { %9087 = vmatpush3.bf16.msra.mxu0 %v11913_v12  ;;  %9108 = vmatprep.subr.bf16.mxu1 %v11918_v3  ;;  %v1717_v52 = vsel %vm355_vm1, %v1713_v15, %v1453_v20  ;;  %v1696_v50 = vsel %vm1217_vm2, %v1392_v61, %v1672_v21  ;;  %v1715_v51 = vsel %vm1479_vm8, %v1711_v54, %v1691_v31  ;;  %v1674_v21 = vrot.slane %v11679_v58, 6  ;;  %v12070_v19 = vld [vmem:[%s14779_s4 + $0x200] ss:$12 sps:$4 sm:$0xff]  }
 0x202   : > { %9088 = vmatprep.subr.bf16.mxu0 %v11930_v18  ;;  %v12032_v20 = vsel %vm341_vm0, %v1717_v52, %v11778_v4  ;;  %v1700_v61 = vsel %vm1464_vm5, %v1696_v50, %v1412_v30  ;;  %v1473_v14 = vsel %vm1469_vm6, %v1468_v37, %v1415_v45  ;;  %v1719_v31 = vsel %vm355_vm1, %v1715_v51, %v1455_v59  ;;  %v12088_v51 = vld [vmem:[%s14779_s4 + $0x2d8] ss:$12 sps:$4 sm:$0xff]  }
 0x203   : > { %v1704_v44 = vsel %vm1469_vm6, %v1700_v61, %v1680_v60  ;;  %v1682_v30 = vrot.slane %v11697_v48, 4  ;;  %v12057_v15 = vsel %vm341_vm0, %v1719_v31, %v11804_v33  ;;  %v1690_v37 = vrot.slane %v11757_v53, 2 }
 0x204   : > { %9109 = vmatpush3.bf16.msra.mxu1 %v11952_v56  ;;  %v1708_v45 = vsel %vm1474_vm7, %v1704_v44, %v1432_v1  ;;  %v1698_v60 = vsel %vm1217_vm2, %v1394_v46, %v1674_v21  ;;  %v1478_v52 = vsel %vm1474_vm7, %v1473_v14, %v1427_v43  ;;  %v1585_v50 = vrot.slane %v11681_v40, 2  ;;  %v12083_v46 = vld [vmem:[%s14779_s4 + $0x98] ss:$12 sps:$4 sm:$0xff]   ;;  %v12101_v21 = vld [vmem:[%s14779_s4 + $0x170] ss:$12 sps:$4 sm:$0xff]  }
 0x205   : > { %9089 = vmatpush3.bf16.msra.mxu0 %v11963_v39  ;;  %9110 = vmatprep.subr.bf16.mxu1 %v11968_v22  ;;  %v1712_v54 = vsel %vm1479_vm8, %v1708_v45, %v1688_v10  ;;  %v1702_v1 = vsel %vm1464_vm5, %v1698_v60, %v1414_v62  ;;  %v12090_v61 = vpack.c.bf16 %v1489_v13, %v1489_v13  ;;  %v1593_v10 = vrot.slane %v11681_v40, 5 }
 0x206   : > { %9090 = vmatprep.subr.bf16.mxu0 %v11982_v17  ;;  %v1716_v43 = vsel %vm355_vm1, %v1712_v54, %v1452_v36  ;;  %v1706_v62 = vsel %vm1469_vm6, %v1702_v1, %v1682_v30  ;;  %v1447_v14 = vrot.slane %v11804_v33, 2  ;;  %v1601_v31 = vrot.slane %v11695_v47, 3 }
 0x207   : > { %v12106_v13 = vsel %vm341_vm0, %v1716_v43, %v11792_v55  ;;  %v1710_v36 = vsel %vm1474_vm7, %v1706_v62, %v1434_v11  ;;  %v1483_v40 = vsel %vm1479_vm8, %v1478_v52, %v1435_v25  ;;  %v1609_v30 = vrot.slane %v11732_v5, 6 }
 0x208   : > { %9111 = vmatpush3.bf16.msra.mxu1 %v12006_v6  ;;  %v1714_v44 = vsel %vm1479_vm8, %v1710_v36, %v1690_v37  ;;  %v1617_v45 = vrot.slane %v11732_v5, 1  ;;  %v1641_v60 = vsel %vm1217_vm2, %v1585_v50, %v1593_v10  ;;  %v1587_v54 = vrot.slane %v11677_v29, 2  ;;  %v12155_v10 = vld [vmem:[%s14779_s4 + $0x2f0] ss:$12 sps:$4 sm:$0xff]  }
 0x209   : > { %9091 = vmatpush3.bf16.msra.mxu0 %v12023_v23  ;;  %9112 = vmatprep.subr.bf16.mxu1 %v12028_v57  ;;  %v1718_v11 = vsel %vm355_vm1, %v1714_v44, %v1454_v2  ;;  %v1595_v1 = vrot.slane %v11677_v29, 5  ;;  %v1625_v37 = vrot.slane %v11778_v4, 4  ;;  %v1645_v5 = vsel %vm1464_vm5, %v1641_v60, %v11695_v47  ;;  %v12139_v2 = vld [vmem:[%s14779_s4 + $0x218] ss:$12 sps:$4 sm:$0xff]   ;;  %v12150_v47 = vld [vmem:[%s14779_s4 + $0xb0] ss:$12 sps:$4 sm:$0xff]  }
 0x20a   : > { %9092 = vmatprep.subr.bf16.mxu0 %v12043_v35  ;;  %v12129_v25 = vsel %vm341_vm0, %v1718_v11, %v11802_v42  ;;  %v1603_v52 = vrot.slane %v11712_v63, 3  ;;  %v1487_v29 = vsel %vm355_vm1, %v1483_v40, %v1447_v14  ;;  %v1633_v50 = vrot.slane %v11778_v4, 7  ;;  %v12165_v40 = vld [vmem:[%s14778_s3 + $0x4] ss:$12 sps:$4 sm:$0xff]  }
 0x20b   : > { %v1649_v43 = vsel %vm1469_vm6, %v1645_v5, %v1601_v31  ;;  %v1611_v62 = vrot.slane %v11759_v49, 6  ;;  %v1619_v14 = vrot.slane %v11759_v49, 1  ;;  %v1643_v36 = vsel %vm1217_vm2, %v1587_v54, %v1595_v1 }
 0x20c   : > { %9113 = vmatpush3.bf16.msra.mxu1 %v12070_v19  ;;  %v1653_v4 = vsel %vm1474_vm7, %v1649_v43, %v1609_v30  ;;  %v1584_v31 = vrot.slane %v11673_v24, 2  ;;  %v1627_v11 = vrot.slane %v11804_v33, 4  ;;  %v1647_v30 = vsel %vm1464_vm5, %v1643_v36, %v11712_v63  ;;  %v12195_v43 = vld [vmem:[%s14778_s3] ss:$12 sps:$4 sm:$0xff]  }
 0x20d   : > { %9093 = vmatpush3.bf16.msra.mxu0 %v12083_v46  ;;  %9114 = vmatprep.subr.bf16.mxu1 %v12088_v51  ;;  %v1657_v44 = vsel %vm1479_vm8, %v1653_v4, %v1617_v45  ;;  %v1592_v49 = vrot.slane %v11673_v24, 5  ;;  %v1635_v54 = vrot.slane %v11804_v33, 7  ;;  %v1651_v1 = vsel %vm1469_vm6, %v1647_v30, %v1603_v52  ;;  %v12180_v45 = vld [vmem:[%s14779_s4 + $0x230] ss:$12 sps:$4 sm:$0xff]  }
 0x20e   : > { %9094 = vmatprep.subr.bf16.mxu0 %v12101_v21  ;;  %v1661_v60 = vsel %vm355_vm1, %v1657_v44, %v1625_v37  ;;  %v1600_v5 = vrot.slane %v11716_v34, 3  ;;  %v1491_v63 = vsel %vm341_vm0, %v1487_v29, %v1455_v59  ;;  %v1655_v37 = vsel %vm1474_vm7, %v1651_v1, %v1611_v62  ;;  %v12205_v62 = vld [vmem:[%s14778_s3 + $0x184] ss:$12 sps:$4 sm:$0xff]   ;;  %v12210_v4 = vld [vmem:[%s14778_s3 + $0x1c] ss:$12 sps:$4 sm:$0xff]  }
 0x20f   : > { %v12186_v24 = vsel %vm341_vm0, %v1661_v60, %v1633_v50  ;;  %v1608_v52 = vrot.slane %v11743_v41, 6  ;;  %v1659_v33 = vsel %vm1479_vm8, %v1655_v37, %v1619_v14  ;;  %v1616_v59 = vrot.slane %v11743_v41, 1 }
 0x210   : > { %9115 = vmatpush3.bf16.msra.mxu1 %v12139_v2  ;;  %v1640_v29 = vsel %vm1217_vm2, %v1584_v31, %v1592_v49  ;;  %v1586_v50 = vrot.slane %v11679_v58, 2  ;;  %v1663_v14 = vsel %vm355_vm1, %v1659_v33, %v1627_v11  ;;  %v1624_v41 = vrot.slane %v11792_v55, 4  ;;  %v12228_v11 = vld [vmem:[%s14778_s3 + $0x180] ss:$12 sps:$4 sm:$0xff]  }
 0x211   : > { %9095 = vmatpush3.bf16.msra.mxu0 %v12150_v47  ;;  %9116 = vmatprep.subr.bf16.mxu1 %v12155_v10  ;;  %v1644_v36 = vsel %vm1464_vm5, %v1640_v29, %v11716_v34  ;;  %v1594_v31 = vrot.slane %v11679_v58, 5  ;;  %v12218_v44 = vsel %vm341_vm0, %v1663_v14, %v1635_v54  ;;  %v1632_v30 = vrot.slane %v11792_v55, 7  ;;  %v12237_v55 = vld [vmem:[%s14778_s3 + $0x18] ss:$12 sps:$4 sm:$0xff]  }
 0x212   : > { %3170 = vmatprep.subr.bf16.mxu0 %v12165_v40  ;;  %v1648_v49 = vsel %vm1469_vm6, %v1644_v36, %v1600_v5  ;;  %v1602_v60 = vrot.slane %v11697_v48, 3  ;;  %v1610_v34 = vrot.slane %v11757_v53, 6  ;;  %v1618_v1 = vrot.slane %v11757_v53, 1  ;;  %v12271_v14 = vld [vmem:[%s14778_s3 + $0x198] ss:$12 sps:$4 sm:$0xff]  }
 0x213   : > { %v1652_v58 = vsel %vm1474_vm7, %v1648_v49, %v1608_v52  ;;  %v1642_v5 = vsel %vm1217_vm2, %v1586_v50, %v1594_v31  ;;  %v12248_v37 = vpack.c.bf16 %v1491_v63, %v1491_v63  ;;  %v12254_v52 = vld [vmem:[%s14778_s3 + $0x34] ss:$12 sps:$4 sm:$0xff]   ;;  %v1626_v29 = vrot.slane %v11802_v42, 4  ;;  %v12291_v36 = vld [vmem:[%s14778_s3 + $0x4c] ss:$12 sps:$4 sm:$0xff]  }
 0x214   : > { %9117 = vmatpush3.bf16.msra.mxu1 %v12180_v45  ;;  %2611 = vmatmul.mubr.bf16.vlgmr.msra.gmra.mrb[12].mxu0 %v11827_v32  ;;  %v12242_v32 = vld [vmem:[%s14778_s3 + $0x19c] ss:$12 sps:$4 sm:$0xff]   ;;  %v1656_v54 = vsel %vm1479_vm8, %v1652_v58, %v1616_v59  ;;  %v1646_v53 = vsel %vm1464_vm5, %v1642_v5, %v11697_v48  ;;  %v1634_v63 = vrot.slane %v11802_v42, 7  ;;  %v12313_v58 = vld [vmem:[%s14778_s3 + $0x1cc] ss:$12 sps:$4 sm:$0xff]  }
 0x215   : > { %3171 = vmatpush1.bf16.msra.mxu0 %v12195_v43  ;;  %3202 = vmatprep.mubr.bf16.mxu0 %v12090_v61  ;;  %v1660_v33 = vsel %vm355_vm1, %v1656_v54, %v1624_v41  ;;  %v1650_v50 = vsel %vm1469_vm6, %v1646_v53, %v1602_v60  ;;  %v12279_v42 = vld [vmem:[%s14778_s3 + $0x30] ss:$12 sps:$4 sm:$0xff]   ;;  %v12308_v60 = vld [vmem:[%s14778_s3 + $0x48] ss:$12 sps:$4 sm:$0xff]   ;;  %v12356_v53 = vld [vmem:[%s14778_s3 + $0x78] ss:$12 sps:$4 sm:$0xff]  }
 0x216   : > { %3211 = vmatprep.subr.bf16.mxu1 %v12205_v62  ;;  %3172 = vmatprep.subr.bf16.mxu0 %v12210_v4  ;;  %v12262_v59 = vsel %vm341_vm0, %v1660_v33, %v1632_v30  ;;  %v1654_v48 = vsel %vm1474_vm7, %v1650_v50, %v1610_v34  ;;  %v12301_v49 = vld [vmem:[%s14778_s3 + $0x1b0] ss:$12 sps:$4 sm:$0xff]   ;;  %v12325_v54 = vld [vmem:[%s14778_s3 + $0x1c8] ss:$12 sps:$4 sm:$0xff]  }
 0x217   : > { %2651 = vmatmul.mubr.bf16.vlgmr.msra.gmra.mrb[12].mxu1 %v11855_v8  ;;  %14862 = vst [vmem:[#allocation8_spill] sm:$0xff] %v12262_v59  ;;  %v12284_v8 = vld [vmem:[%s14778_s3 + $0x1b4] ss:$12 sps:$4 sm:$0xff]   ;;  %v1658_v41 = vsel %vm1479_vm8, %v1654_v48, %v1618_v1  ;;  %v12319_v34 = vld [vmem:[%s14778_s3 + $0x64] ss:$12 sps:$4 sm:$0xff]  }
 0x218   : > { %3212 = vmatpush1.bf16.msra.mxu1 %v12228_v11  ;;  %3243 = vmatprep.mubr.bf16.mxu1 %v12248_v37  ;;  %v1662_v31 = vsel %vm355_vm1, %v1658_v41, %v1626_v29  ;;  %v12332_v1 = vld [vmem:[%s14778_s3 + $0x60] ss:$12 sps:$4 sm:$0xff]   ;;  %v12337_v5 = vld [vmem:[%s14778_s3 + $0x1e4] ss:$12 sps:$4 sm:$0xff]   ;;  %v12343_v33 = vld [vmem:[%s14778_s3 + $0x7c] ss:$12 sps:$4 sm:$0xff]  }
 0x219   : > { %3173 = vmatpush1.bf16.msra.mxu0 %v12237_v55  ;;  %3213 = vmatprep.subr.bf16.mxu1 %v12242_v32  ;;  %v12295_v30 = vsel %vm341_vm0, %v1662_v31, %v1634_v63  ;;  %v12349_v29 = vld [vmem:[%s14778_s3 + $0x1e0] ss:$12 sps:$4 sm:$0xff]   ;;  %v12361_v63 = vld [vmem:[%s14778_s3 + $0x1fc] ss:$12 sps:$4 sm:$0xff]   ;;  %v12373_v48 = vld [vmem:[%s14778_s3 + $0x1f8] ss:$12 sps:$4 sm:$0xff]  }
 0x21a   : > { %3174 = vmatprep.subr.bf16.mxu0 %v12254_v52  ;;  %14863 = vst [vmem:[#allocation9_spill] sm:$0xff] %v12295_v30  ;;  %v12367_v50 = vld [vmem:[%s14778_s3 + $0x94] ss:$12 sps:$4 sm:$0xff]   ;;  %v12380_v41 = vld [vmem:[%s14778_s3 + $0x90] ss:$12 sps:$4 sm:$0xff]  }
 0x21b   : > { %v12385_v31 = vld [vmem:[%s14778_s3 + $0x214] ss:$12 sps:$4 sm:$0xff]   ;;  %v12415_v30 = vld [vmem:[%s14778_s3 + $0xc4] ss:$12 sps:$4 sm:$0xff]  }
 0x21c   : > { %3214 = vmatpush1.bf16.msra.mxu1 %v12271_v14  ;;  %14864 = vst [vmem:[#allocation10_spill] sm:$0xff] %v12385_v31  ;;  %14869 = vst [vmem:[#allocation15_spill] sm:$0xff] %v12415_v30  ;;  %v12421_v59 = vld [vmem:[%s14778_s3 + $0x228] ss:$12 sps:$4 sm:$0xff]  }
 0x21d   : > { %3175 = vmatpush1.bf16.msra.mxu0 %v12279_v42  ;;  %3215 = vmatprep.subr.bf16.mxu1 %v12284_v8  ;;  %14870 = vst [vmem:[#allocation16_spill] sm:$0xff] %v12421_v59 }
 0x21e   : > { %3176 = vmatprep.subr.bf16.mxu0 %v12291_v36 }
 0x220   : > { %3216 = vmatpush1.bf16.msra.mxu1 %v12301_v49 }
 0x221   : > { %3177 = vmatpush1.bf16.msra.mxu0 %v12308_v60  ;;  %3217 = vmatprep.subr.bf16.mxu1 %v12313_v58 }
 0x222   : > { %3178 = vmatprep.subr.bf16.mxu0 %v12319_v34 }
 0x224   : > { %3218 = vmatpush1.bf16.msra.mxu1 %v12325_v54 }
 0x225   : > { %3179 = vmatpush1.bf16.msra.mxu0 %v12332_v1  ;;  %3219 = vmatprep.subr.bf16.mxu1 %v12337_v5 }
 0x226   : > { %3180 = vmatprep.subr.bf16.mxu0 %v12343_v33 }
 0x228   : > { %3220 = vmatpush1.bf16.msra.mxu1 %v12349_v29 }
 0x229   : > { %3181 = vmatpush1.bf16.msra.mxu0 %v12356_v53  ;;  %3221 = vmatprep.subr.bf16.mxu1 %v12361_v63 }
 0x22a   : > { %3182 = vmatprep.subr.bf16.mxu0 %v12367_v50 }
 0x22c   : > { %3222 = vmatpush1.bf16.msra.mxu1 %v12373_v48 }
 0x22d   : > { %3183 = vmatpush1.bf16.msra.mxu0 %v12380_v41  ;;  %3223 = vmatprep.subr.bf16.mxu1 %v12385_v31  ;;  %v12433_v31 = vld [vmem:[%s14778_s3 + $0x244] ss:$12 sps:$4 sm:$0xff]  }
 0x22e   : > { %3184 = vmatprep.subr.bf16.mxu0 %v12391_v38  ;;  %v12428_v38 = vld [vmem:[%s14778_s3 + $0xc0] ss:$12 sps:$4 sm:$0xff]   ;;  %14872 = vst [vmem:[#allocation18_spill] sm:$0xff] %v12433_v31 }
 0x22f   : > { %14871 = vst [vmem:[#allocation17_spill] sm:$0xff] %v12428_v38 }
 0x230   : > { %3224 = vmatpush1.bf16.msra.mxu1 %v12397_v27  ;;  %v12439_v27 = vld [vmem:[%s14778_s3 + $0xdc] ss:$12 sps:$4 sm:$0xff]  }
 0x231   : > { %3185 = vmatpush1.bf16.msra.mxu0 %v12404_v28  ;;  %3225 = vmatprep.subr.bf16.mxu1 %v12409_v26  ;;  %14873 = vst [vmem:[#allocation19_spill] sm:$0xff] %v12439_v27  ;;  %v12445_v26 = vld [vmem:[%s14778_s3 + $0x240] ss:$12 sps:$4 sm:$0xff]   ;;  %v12457_v28 = vld [vmem:[%s14778_s3 + $0x25c] ss:$12 sps:$4 sm:$0xff]  }
 0x232   : > { %3186 = vmatprep.subr.bf16.mxu0 %v12415_v30  ;;  %14874 = vst [vmem:[#allocation20_spill] sm:$0xff] %v12445_v26  ;;  %v12452_v30 = vld [vmem:[%s14778_s3 + $0xd8] ss:$12 sps:$4 sm:$0xff]   ;;  %14876 = vst [vmem:[#allocation22_spill] sm:$0xff] %v12457_v28 }
 0x233   : > { %14875 = vst [vmem:[#allocation21_spill] sm:$0xff] %v12452_v30 }
 0x234   : > { %3226 = vmatpush1.bf16.msra.mxu1 %v12421_v59  ;;  %v12463_v59 = vld [vmem:[%s14778_s3 + $0xf4] ss:$12 sps:$4 sm:$0xff]  }
 0x235   : > { %3187 = vmatpush1.bf16.msra.mxu0 %v12428_v38  ;;  %3227 = vmatprep.subr.bf16.mxu1 %v12433_v31  ;;  %14877 = vst [vmem:[#allocation23_spill] sm:$0xff] %v12463_v59  ;;  %v12469_v31 = vld [vmem:[%s14778_s3 + $0x258] ss:$12 sps:$4 sm:$0xff]   ;;  %v12481_v38 = vld [vmem:[%s14778_s3 + $0x274] ss:$12 sps:$4 sm:$0xff]  }
 0x236   : > { %3188 = vmatprep.subr.bf16.mxu0 %v12439_v27  ;;  %14878 = vst [vmem:[#allocation24_spill] sm:$0xff] %v12469_v31  ;;  %v12476_v27 = vld [vmem:[%s14778_s3 + $0xf0] ss:$12 sps:$4 sm:$0xff]   ;;  %14880 = vst [vmem:[#allocation26_spill] sm:$0xff] %v12481_v38 }
 0x237   : > { %14879 = vst [vmem:[#allocation25_spill] sm:$0xff] %v12476_v27 }
 0x238   : > { %3228 = vmatpush1.bf16.msra.mxu1 %v12445_v26  ;;  %v12487_v26 = vld [vmem:[%s14778_s3 + $0x10c] ss:$12 sps:$4 sm:$0xff]  }
 0x239   : > { %3189 = vmatpush1.bf16.msra.mxu0 %v12452_v30  ;;  %3229 = vmatprep.subr.bf16.mxu1 %v12457_v28  ;;  %14881 = vst [vmem:[#allocation27_spill] sm:$0xff] %v12487_v26  ;;  %v12493_v28 = vld [vmem:[%s14778_s3 + $0x270] ss:$12 sps:$4 sm:$0xff]   ;;  %v12505_v30 = vld [vmem:[%s14778_s3 + $0x28c] ss:$12 sps:$4 sm:$0xff]  }
 0x23a   : > { %3190 = vmatprep.subr.bf16.mxu0 %v12463_v59  ;;  %14882 = vst [vmem:[#allocation28_spill] sm:$0xff] %v12493_v28  ;;  %v12500_v59 = vld [vmem:[%s14778_s3 + $0x108] ss:$12 sps:$4 sm:$0xff]   ;;  %14884 = vst [vmem:[#allocation30_spill] sm:$0xff] %v12505_v30 }
 0x23b   : > { %14883 = vst [vmem:[#allocation29_spill] sm:$0xff] %v12500_v59 }
 0x23c   : > { %3230 = vmatpush1.bf16.msra.mxu1 %v12469_v31  ;;  %v12511_v31 = vld [vmem:[%s14778_s3 + $0x124] ss:$12 sps:$4 sm:$0xff]  }
 0x23d   : > { %3191 = vmatpush1.bf16.msra.mxu0 %v12476_v27  ;;  %3231 = vmatprep.subr.bf16.mxu1 %v12481_v38  ;;  %14885 = vst [vmem:[#allocation31_spill] sm:$0xff] %v12511_v31  ;;  %v12517_v38 = vld [vmem:[%s14778_s3 + $0x288] ss:$12 sps:$4 sm:$0xff]   ;;  %v12529_v27 = vld [vmem:[%s14778_s3 + $0x2a4] ss:$12 sps:$4 sm:$0xff]  }
 0x23e   : > { %3192 = vmatprep.subr.bf16.mxu0 %v12487_v26  ;;  %14886 = vst [vmem:[#allocation32_spill] sm:$0xff] %v12517_v38  ;;  %v12524_v26 = vld [vmem:[%s14778_s3 + $0x120] ss:$12 sps:$4 sm:$0xff]   ;;  %14888 = vst [vmem:[#allocation34_spill] sm:$0xff] %v12529_v27 }
 0x23f   : > { %14887 = vst [vmem:[#allocation33_spill] sm:$0xff] %v12524_v26 }
 0x240   : > { %3232 = vmatpush1.bf16.msra.mxu1 %v12493_v28  ;;  %v12535_v28 = vld [vmem:[%s14778_s3 + $0x13c] ss:$12 sps:$4 sm:$0xff]  }
 0x241   : > { %3193 = vmatpush1.bf16.msra.mxu0 %v12500_v59  ;;  %3233 = vmatprep.subr.bf16.mxu1 %v12505_v30  ;;  %14889 = vst [vmem:[#allocation35_spill] sm:$0xff] %v12535_v28  ;;  %v12541_v30 = vld [vmem:[%s14778_s3 + $0x2a0] ss:$12 sps:$4 sm:$0xff]   ;;  %v12553_v59 = vld [vmem:[%s14778_s3 + $0x2bc] ss:$12 sps:$4 sm:$0xff]  }
 0x242   : > { %3194 = vmatprep.subr.bf16.mxu0 %v12511_v31  ;;  %14890 = vst [vmem:[#allocation36_spill] sm:$0xff] %v12541_v30  ;;  %v12548_v31 = vld [vmem:[%s14778_s3 + $0x138] ss:$12 sps:$4 sm:$0xff]   ;;  %14892 = vst [vmem:[#allocation38_spill] sm:$0xff] %v12553_v59 }
 0x243   : > { %14891 = vst [vmem:[#allocation37_spill] sm:$0xff] %v12548_v31 }
 0x244   : > { %3234 = vmatpush1.bf16.msra.mxu1 %v12517_v38  ;;  %v12559_v38 = vld [vmem:[%s14778_s3 + $0x154] ss:$12 sps:$4 sm:$0xff]  }
 0x245   : > { %3195 = vmatpush1.bf16.msra.mxu0 %v12524_v26  ;;  %3235 = vmatprep.subr.bf16.mxu1 %v12529_v27  ;;  %14893 = vst [vmem:[#allocation39_spill] sm:$0xff] %v12559_v38  ;;  %v12565_v27 = vld [vmem:[%s14778_s3 + $0x2b8] ss:$12 sps:$4 sm:$0xff]   ;;  %v12577_v26 = vld [vmem:[%s14778_s3 + $0x2d4] ss:$12 sps:$4 sm:$0xff]  }
 0x246   : > { %3196 = vmatprep.subr.bf16.mxu0 %v12535_v28  ;;  %14894 = vst [vmem:[#allocation40_spill] sm:$0xff] %v12565_v27  ;;  %v12572_v28 = vld [vmem:[%s14778_s3 + $0x150] ss:$12 sps:$4 sm:$0xff]   ;;  %14896 = vst [vmem:[#allocation42_spill] sm:$0xff] %v12577_v26 }
 0x247   : > { %14895 = vst [vmem:[#allocation41_spill] sm:$0xff] %v12572_v28 }
 0x248   : > { %3236 = vmatpush1.bf16.msra.mxu1 %v12541_v30  ;;  %v12583_v30 = vld [vmem:[%s14778_s3 + $0x16c] ss:$12 sps:$4 sm:$0xff]  }
 0x249   : > { %3197 = vmatpush1.bf16.msra.mxu0 %v12548_v31  ;;  %3237 = vmatprep.subr.bf16.mxu1 %v12553_v59  ;;  %14897 = vst [vmem:[#allocation43_spill] sm:$0xff] %v12583_v30  ;;  %v12589_v59 = vld [vmem:[%s14778_s3 + $0x2d0] ss:$12 sps:$4 sm:$0xff]   ;;  %v12601_v31 = vld [vmem:[%s14778_s3 + $0x2ec] ss:$12 sps:$4 sm:$0xff]  }
 0x24a   : > { %3198 = vmatprep.subr.bf16.mxu0 %v12559_v38  ;;  %14898 = vst [vmem:[#allocation44_spill] sm:$0xff] %v12589_v59  ;;  %v12596_v38 = vld [vmem:[%s14778_s3 + $0x168] ss:$12 sps:$4 sm:$0xff]   ;;  %14900 = vst [vmem:[#allocation46_spill] sm:$0xff] %v12601_v31 }
 0x24b   : > { %14899 = vst [vmem:[#allocation45_spill] sm:$0xff] %v12596_v38 }
 0x24c   : > { %3238 = vmatpush1.bf16.msra.mxu1 %v12565_v27  ;;  %v12607_v27 = vld [vmem:[%s14778_s3 + $0xc8] ss:$12 sps:$4 sm:$0xff]  }
 0x24d   : > { %3199 = vmatpush1.bf16.msra.mxu0 %v12572_v28  ;;  %3239 = vmatprep.subr.bf16.mxu1 %v12577_v26  ;;  %14901 = vst [vmem:[#allocation47_spill] sm:$0xff] %v12607_v27  ;;  %v12613_v26 = vld [vmem:[%s14778_s3 + $0x2e8] ss:$12 sps:$4 sm:$0xff]   ;;  %v12624_v28 = vpack.c.bf16 %v11935_v9, %v11935_v9 }
 0x24e   : > { %3200 = vmatprep.subr.bf16.mxu0 %v12583_v30  ;;  %14902 = vst [vmem:[#allocation48_spill] sm:$0xff] %v12613_v26  ;;  %v12620_v30 = vld [vmem:[%s14778_s3 + $0x8] ss:$12 sps:$4 sm:$0xff]  }
 0x24f   : > { %v12642_v9 = vld [vmem:[%s14778_s3 + $0x188] ss:$12 sps:$4 sm:$0xff]  }
 0x250   : > { %3240 = vmatpush1.bf16.msra.mxu1 %v12589_v59  ;;  %v12630_v59 = vld [vmem:[%s14778_s3 + $0x248] ss:$12 sps:$4 sm:$0xff]   ;;  %14904 = vst [vmem:[#allocation50_spill] sm:$0xff] %v12642_v9 }
 0x251   : > { %3201 = vmatpush1.bf16.msra.mxu0 %v12596_v38  ;;  %3241 = vmatprep.subr.bf16.mxu1 %v12601_v31  ;;  %v12635_v31 = vld [vmem:[%s14778_s3 + $0xe0] ss:$12 sps:$4 sm:$0xff]  }
 0x252   : > { %9124 = vmatprep.subr.bf16.mxu0 %v12607_v27  ;;  %14903 = vst [vmem:[#allocation49_spill] sm:$0xff] %v12635_v31  ;;  %v12646_v27 = vpack.c.bf16 %v11997_v7, %v11997_v7  ;;  %v12653_v38 = vld [vmem:[%s14778_s3 + $0x20] ss:$12 sps:$4 sm:$0xff]   ;;  %v12665_v7 = vld [vmem:[%s14778_s3 + $0xf8] ss:$12 sps:$4 sm:$0xff]  }
 0x253   : > { %14905 = vst [vmem:[#allocation51_spill] sm:$0xff] %v12653_v38  ;;  %14907 = vst [vmem:[#allocation53_spill] sm:$0xff] %v12665_v7 }
 0x254   : > { %3242 = vmatpush1.bf16.msra.mxu1 %v12613_v26  ;;  %3203 = vmatmul.mubr.bf16.vlgmr.msra.gmra.mrb[16].mxu0 %v12624_v28  ;;  %v12658_v26 = vld [vmem:[%s14778_s3 + $0x260] ss:$12 sps:$4 sm:$0xff]  }
 0x255   : > { %9125 = vmatpush3.bf16.msra.mxu0 %v12620_v30  ;;  %3284 = vmatprep.mubr.bf16.mxu0 %v12090_v61  ;;  %14906 = vst [vmem:[#allocation52_spill] sm:$0xff] %v12658_v26  ;;  %v12673_v61 = vld [vmem:[%s14778_s3 + $0x1a0] ss:$12 sps:$4 sm:$0xff]  }
 0x256   : > { %9146 = vmatprep.subr.bf16.mxu1 %v12630_v59  ;;  %9126 = vmatprep.subr.bf16.mxu0 %v12635_v31  ;;  %14908 = vst [vmem:[#allocation54_spill] sm:$0xff] %v12673_v61  ;;  %v12680_v31 = vld [vmem:[%s14778_s3 + $0x38] ss:$12 sps:$4 sm:$0xff]  }
 0x257   : > { %3244 = vmatmul.mubr.bf16.vlgmr.msra.gmra.mrb[16].mxu1 %v12646_v27  ;;  %14909 = vst [vmem:[#allocation55_spill] sm:$0xff] %v12680_v31 }
 0x258   : > { %9147 = vmatpush3.bf16.msra.mxu1 %v12642_v9  ;;  %3324 = vmatprep.mubr.bf16.mxu1 %v12248_v37  ;;  %v12685_v9 = vld [vmem:[%s14778_s3 + $0x278] ss:$12 sps:$4 sm:$0xff]   ;;  %v12691_v37 = vld [vmem:[%s14778_s3 + $0x110] ss:$12 sps:$4 sm:$0xff]  }
 0x259   : > { %9127 = vmatpush3.bf16.msra.mxu0 %v12653_v38  ;;  %9148 = vmatprep.subr.bf16.mxu1 %v12658_v26  ;;  %14910 = vst [vmem:[#allocation56_spill] sm:$0xff] %v12685_v9  ;;  %14911 = vst [vmem:[#allocation57_spill] sm:$0xff] %v12691_v37  ;;  %v12697_v26 = vld [vmem:[%s14778_s3 + $0x1b8] ss:$12 sps:$4 sm:$0xff]   ;;  %v12709_v38 = vld [vmem:[%s14778_s3 + $0x290] ss:$12 sps:$4 sm:$0xff]  }
 0x25a   : > { %9128 = vmatprep.subr.bf16.mxu0 %v12665_v7  ;;  %14912 = vst [vmem:[#allocation58_spill] sm:$0xff] %v12697_v26  ;;  %v12704_v7 = vld [vmem:[%s14778_s3 + $0x50] ss:$12 sps:$4 sm:$0xff]   ;;  %14914 = vst [vmem:[#allocation60_spill] sm:$0xff] %v12709_v38 }
 0x25b   : > { %14913 = vst [vmem:[#allocation59_spill] sm:$0xff] %v12704_v7 }
 0x25c   : > { %9149 = vmatpush3.bf16.msra.mxu1 %v12673_v61  ;;  %v12715_v61 = vld [vmem:[%s14778_s3 + $0x128] ss:$12 sps:$4 sm:$0xff]  }
 0x25d   : > { %9129 = vmatpush3.bf16.msra.mxu0 %v12680_v31  ;;  %9150 = vmatprep.subr.bf16.mxu1 %v12685_v9  ;;  %14915 = vst [vmem:[#allocation61_spill] sm:$0xff] %v12715_v61  ;;  %v12721_v9 = vld [vmem:[%s14778_s3 + $0x1d0] ss:$12 sps:$4 sm:$0xff]   ;;  %v12733_v31 = vld [vmem:[%s14778_s3 + $0x2a8] ss:$12 sps:$4 sm:$0xff]  }
 0x25e   : > { %9130 = vmatprep.subr.bf16.mxu0 %v12691_v37  ;;  %14916 = vst [vmem:[#allocation62_spill] sm:$0xff] %v12721_v9  ;;  %v12728_v37 = vld [vmem:[%s14778_s3 + $0x68] ss:$12 sps:$4 sm:$0xff]   ;;  %14918 = vst [vmem:[#allocation64_spill] sm:$0xff] %v12733_v31 }
 0x25f   : > { %14917 = vst [vmem:[#allocation63_spill] sm:$0xff] %v12728_v37 }
 0x260   : > { %9151 = vmatpush3.bf16.msra.mxu1 %v12697_v26  ;;  %v12739_v26 = vld [vmem:[%s14778_s3 + $0x140] ss:$12 sps:$4 sm:$0xff]  }
 0x261   : > { %9131 = vmatpush3.bf16.msra.mxu0 %v12704_v7  ;;  %9152 = vmatprep.subr.bf16.mxu1 %v12709_v38  ;;  %14919 = vst [vmem:[#allocation65_spill] sm:$0xff] %v12739_v26  ;;  %v12745_v38 = vld [vmem:[%s14778_s3 + $0x1e8] ss:$12 sps:$4 sm:$0xff]   ;;  %v12757_v7 = vld [vmem:[%s14778_s3 + $0x2c0] ss:$12 sps:$4 sm:$0xff]  }
 0x262   : > { %9132 = vmatprep.subr.bf16.mxu0 %v12715_v61  ;;  %14920 = vst [vmem:[#allocation66_spill] sm:$0xff] %v12745_v38  ;;  %v12752_v61 = vld [vmem:[%s14778_s3 + $0x80] ss:$12 sps:$4 sm:$0xff]   ;;  %14922 = vst [vmem:[#allocation68_spill] sm:$0xff] %v12757_v7 }
 0x263   : > { %14921 = vst [vmem:[#allocation67_spill] sm:$0xff] %v12752_v61 }
 0x264   : > { %9153 = vmatpush3.bf16.msra.mxu1 %v12721_v9  ;;  %v12763_v9 = vld [vmem:[%s14778_s3 + $0x158] ss:$12 sps:$4 sm:$0xff]  }
 0x265   : > { %9133 = vmatpush3.bf16.msra.mxu0 %v12728_v37  ;;  %9154 = vmatprep.subr.bf16.mxu1 %v12733_v31  ;;  %14923 = vst [vmem:[#allocation69_spill] sm:$0xff] %v12763_v9  ;;  %v12769_v31 = vld [vmem:[%s14778_s3 + $0x200] ss:$12 sps:$4 sm:$0xff]   ;;  %v12781_v37 = vld [vmem:[%s14778_s3 + $0x2d8] ss:$12 sps:$4 sm:$0xff]  }
 0x266   : > { %9134 = vmatprep.subr.bf16.mxu0 %v12739_v26  ;;  %14924 = vst [vmem:[#allocation70_spill] sm:$0xff] %v12769_v31  ;;  %v12776_v26 = vld [vmem:[%s14778_s3 + $0x98] ss:$12 sps:$4 sm:$0xff]   ;;  %14926 = vst [vmem:[#allocation72_spill] sm:$0xff] %v12781_v37 }
 0x267   : > { %14925 = vst [vmem:[#allocation71_spill] sm:$0xff] %v12776_v26 }
 0x268   : > { %9155 = vmatpush3.bf16.msra.mxu1 %v12745_v38  ;;  %v12787_v38 = vld [vmem:[%s14778_s3 + $0x170] ss:$12 sps:$4 sm:$0xff]  }
 0x269   : > { %9135 = vmatpush3.bf16.msra.mxu0 %v12752_v61  ;;  %9156 = vmatprep.subr.bf16.mxu1 %v12757_v7  ;;  %v12793_v7 = vld [vmem:[%s14778_s3 + $0x218] ss:$12 sps:$4 sm:$0xff]   ;;  %v12805_v61 = vld [vmem:[%s14778_s3 + $0x2f0] ss:$12 sps:$4 sm:$0xff]  }
 0x26a   : > { %9136 = vmatprep.subr.bf16.mxu0 %v12763_v9  ;;  %14927 = vst [vmem:[#allocation73_spill] sm:$0xff] %v12793_v7  ;;  %v12800_v9 = vld [vmem:[%s14778_s3 + $0xb0] ss:$12 sps:$4 sm:$0xff]   ;;  %14928 = vst [vmem:[#allocation74_spill] sm:$0xff] %v12805_v61 }
 0x26c   : > { %9157 = vmatpush3.bf16.msra.mxu1 %v12769_v31  ;;  %v12821_v31 = vpack.c.bf16 %v12032_v20, %v12032_v20  ;;  %v12834_v20 = vpack.c.bf16 %v12057_v15, %v12057_v15  ;;  %v10733_v15 = vld [vmem:[%s14779_s4 + $0x19c] ss:$12 sps:$4 sm:$0xff]  }
 0x26d   : > { %9137 = vmatpush3.bf16.msra.mxu0 %v12776_v26  ;;  %9158 = vmatprep.subr.bf16.mxu1 %v12781_v37  ;;  %v12812_v26 = vld [vmem:[%s14778_s3 + $0x230] ss:$12 sps:$4 sm:$0xff]  }
 0x26e   : > { %9138 = vmatprep.subr.bf16.mxu0 %v12787_v38  ;;  %v10727_v37 = vld [vmem:[%s14779_s4 + $0x4] ss:$12 sps:$4 sm:$0xff]  }
 0x270   : > { %9159 = vmatpush3.bf16.msra.mxu1 %v12793_v7  ;;  %v10728_v7 = vld [vmem:[%s14779_s4] ss:$12 sps:$4 sm:$0xff]  }
 0x271   : > { %9139 = vmatpush3.bf16.msra.mxu0 %v12800_v9  ;;  %9160 = vmatprep.subr.bf16.mxu1 %v12805_v61  ;;  %v10729_v61 = vld [vmem:[%s14779_s4 + $0x184] ss:$12 sps:$4 sm:$0xff]  }
 0x272   : > { %3332 = vmatprep.subr.bf16.mxu0 %v10727_v37  ;;  %v10735_v37 = vld [vmem:[%s14779_s4 + $0x198] ss:$12 sps:$4 sm:$0xff]  }
 0x274   : > { %9161 = vmatpush3.bf16.msra.mxu1 %v12812_v26  ;;  %3285 = vmatmul.mubr.bf16.vlgmr.msra.gmra.mrb[20].mxu0 %v12624_v28  ;;  %v10730_v28 = vld [vmem:[%s14779_s4 + $0x1c] ss:$12 sps:$4 sm:$0xff]  }
 0x275   : > { %3333 = vmatpush1.bf16.msra.mxu0 %v10728_v7  ;;  %3364 = vmatprep.mubr.bf16.mxu0 %v12821_v31  ;;  %v10731_v7 = vld [vmem:[%s14779_s4 + $0x180] ss:$12 sps:$4 sm:$0xff]  }
 0x276   : > { %3373 = vmatprep.subr.bf16.mxu1 %v10729_v61  ;;  %3334 = vmatprep.subr.bf16.mxu0 %v10730_v28  ;;  %v10732_v61 = vld [vmem:[%s14779_s4 + $0x18] ss:$12 sps:$4 sm:$0xff]   ;;  %v10736_v28 = vld [vmem:[%s14779_s4 + $0x30] ss:$12 sps:$4 sm:$0xff]  }
 0x277   : > { %3325 = vmatmul.mubr.bf16.vlgmr.msra.gmra.mrb[20].mxu1 %v12646_v27  ;;  %v10734_v27 = vld [vmem:[%s14779_s4 + $0x34] ss:$12 sps:$4 sm:$0xff]  }
 0x278   : > { %3374 = vmatpush1.bf16.msra.mxu1 %v10731_v7  ;;  %3405 = vmatprep.mubr.bf16.mxu1 %v12834_v20  ;;  %v10737_v7 = vld [vmem:[%s14779_s4 + $0x1b4] ss:$12 sps:$4 sm:$0xff]  }
 0x279   : > { %3335 = vmatpush1.bf16.msra.mxu0 %v10732_v61  ;;  %3375 = vmatprep.subr.bf16.mxu1 %v10733_v15  ;;  %v10738_v61 = vld [vmem:[%s14779_s4 + $0x4c] ss:$12 sps:$4 sm:$0xff]   ;;  %v10739_v15 = vld [vmem:[%s14779_s4 + $0x1b0] ss:$12 sps:$4 sm:$0xff]  }
 0x27a   : > { %3336 = vmatprep.subr.bf16.mxu0 %v10734_v27  ;;  %v10740_v27 = vld [vmem:[%s14779_s4 + $0x48] ss:$12 sps:$4 sm:$0xff]  }
 0x27c   : > { %3376 = vmatpush1.bf16.msra.mxu1 %v10735_v37  ;;  %v10741_v37 = vld [vmem:[%s14779_s4 + $0x1cc] ss:$12 sps:$4 sm:$0xff]  }
 0x27d   : > { %3337 = vmatpush1.bf16.msra.mxu0 %v10736_v28  ;;  %3377 = vmatprep.subr.bf16.mxu1 %v10737_v7  ;;  %v10742_v28 = vld [vmem:[%s14779_s4 + $0x64] ss:$12 sps:$4 sm:$0xff]   ;;  %v10743_v7 = vld [vmem:[%s14779_s4 + $0x1c8] ss:$12 sps:$4 sm:$0xff]  }
 0x27e   : > { %3338 = vmatprep.subr.bf16.mxu0 %v10738_v61  ;;  %v10744_v61 = vld [vmem:[%s14779_s4 + $0x60] ss:$12 sps:$4 sm:$0xff]  }
 0x280   : > { %3378 = vmatpush1.bf16.msra.mxu1 %v10739_v15  ;;  %v10745_v15 = vld [vmem:[%s14779_s4 + $0x1e4] ss:$12 sps:$4 sm:$0xff]  }
 0x281   : > { %3339 = vmatpush1.bf16.msra.mxu0 %v10740_v27  ;;  %3379 = vmatprep.subr.bf16.mxu1 %v10741_v37  ;;  %v10746_v27 = vld [vmem:[%s14779_s4 + $0x7c] ss:$12 sps:$4 sm:$0xff]   ;;  %v10747_v37 = vld [vmem:[%s14779_s4 + $0x1e0] ss:$12 sps:$4 sm:$0xff]  }
 0x282   : > { %3340 = vmatprep.subr.bf16.mxu0 %v10742_v28  ;;  %v10748_v28 = vld [vmem:[%s14779_s4 + $0x78] ss:$12 sps:$4 sm:$0xff]  }
 0x284   : > { %3380 = vmatpush1.bf16.msra.mxu1 %v10743_v7  ;;  %v10749_v7 = vld [vmem:[%s14779_s4 + $0x1fc] ss:$12 sps:$4 sm:$0xff]  }
 0x285   : > { %3341 = vmatpush1.bf16.msra.mxu0 %v10744_v61  ;;  %3381 = vmatprep.subr.bf16.mxu1 %v10745_v15  ;;  %v10750_v61 = vld [vmem:[%s14779_s4 + $0x94] ss:$12 sps:$4 sm:$0xff]   ;;  %v10751_v15 = vld [vmem:[%s14779_s4 + $0x1f8] ss:$12 sps:$4 sm:$0xff]  }
 0x286   : > { %3342 = vmatprep.subr.bf16.mxu0 %v10746_v27  ;;  %v10752_v27 = vld [vmem:[%s14779_s4 + $0x90] ss:$12 sps:$4 sm:$0xff]  }
 0x288   : > { %3382 = vmatpush1.bf16.msra.mxu1 %v10747_v37  ;;  %v10753_v37 = vld [vmem:[%s14779_s4 + $0x214] ss:$12 sps:$4 sm:$0xff]  }
 0x289   : > { %3343 = vmatpush1.bf16.msra.mxu0 %v10748_v28  ;;  %3383 = vmatprep.subr.bf16.mxu1 %v10749_v7  ;;  %v10754_v28 = vld [vmem:[%s14779_s4 + $0xac] ss:$12 sps:$4 sm:$0xff]   ;;  %v10755_v7 = vld [vmem:[%s14779_s4 + $0x210] ss:$12 sps:$4 sm:$0xff]  }
 0x28a   : > { %3344 = vmatprep.subr.bf16.mxu0 %v10750_v61  ;;  %v10756_v61 = vld [vmem:[%s14779_s4 + $0xa8] ss:$12 sps:$4 sm:$0xff]  }
 0x28c   : > { %3384 = vmatpush1.bf16.msra.mxu1 %v10751_v15  ;;  %v10757_v15 = vld [vmem:[%s14779_s4 + $0x22c] ss:$12 sps:$4 sm:$0xff]  }
 0x28d   : > { %3345 = vmatpush1.bf16.msra.mxu0 %v10752_v27  ;;  %3385 = vmatprep.subr.bf16.mxu1 %v10753_v37  ;;  %v10758_v27 = vld [vmem:[%s14779_s4 + $0xc4] ss:$12 sps:$4 sm:$0xff]   ;;  %v10759_v37 = vld [vmem:[%s14779_s4 + $0x228] ss:$12 sps:$4 sm:$0xff]  }
 0x28e   : > { %3346 = vmatprep.subr.bf16.mxu0 %v10754_v28  ;;  %v10760_v28 = vld [vmem:[%s14779_s4 + $0xc0] ss:$12 sps:$4 sm:$0xff]  }
 0x290   : > { %3386 = vmatpush1.bf16.msra.mxu1 %v10755_v7  ;;  %v10761_v7 = vld [vmem:[%s14779_s4 + $0x244] ss:$12 sps:$4 sm:$0xff]  }
 0x291   : > { %3347 = vmatpush1.bf16.msra.mxu0 %v10756_v61  ;;  %3387 = vmatprep.subr.bf16.mxu1 %v10757_v15  ;;  %v10762_v61 = vld [vmem:[%s14779_s4 + $0xdc] ss:$12 sps:$4 sm:$0xff]   ;;  %v10763_v15 = vld [vmem:[%s14779_s4 + $0x240] ss:$12 sps:$4 sm:$0xff]  }
 0x292   : > { %3348 = vmatprep.subr.bf16.mxu0 %v10758_v27  ;;  %v10764_v27 = vld [vmem:[%s14779_s4 + $0xd8] ss:$12 sps:$4 sm:$0xff]  }
 0x294   : > { %3388 = vmatpush1.bf16.msra.mxu1 %v10759_v37  ;;  %v10765_v37 = vld [vmem:[%s14779_s4 + $0x25c] ss:$12 sps:$4 sm:$0xff]  }
 0x295   : > { %3349 = vmatpush1.bf16.msra.mxu0 %v10760_v28  ;;  %3389 = vmatprep.subr.bf16.mxu1 %v10761_v7  ;;  %v10766_v28 = vld [vmem:[%s14779_s4 + $0xf4] ss:$12 sps:$4 sm:$0xff]   ;;  %v10767_v7 = vld [vmem:[%s14779_s4 + $0x258] ss:$12 sps:$4 sm:$0xff]  }
 0x296   : > { %3350 = vmatprep.subr.bf16.mxu0 %v10762_v61  ;;  %v10768_v61 = vld [vmem:[%s14779_s4 + $0xf0] ss:$12 sps:$4 sm:$0xff]  }
 0x298   : > { %3390 = vmatpush1.bf16.msra.mxu1 %v10763_v15  ;;  %v10769_v15 = vld [vmem:[%s14779_s4 + $0x274] ss:$12 sps:$4 sm:$0xff]  }
 0x299   : > { %3351 = vmatpush1.bf16.msra.mxu0 %v10764_v27  ;;  %3391 = vmatprep.subr.bf16.mxu1 %v10765_v37  ;;  %v10770_v27 = vld [vmem:[%s14779_s4 + $0x10c] ss:$12 sps:$4 sm:$0xff]   ;;  %v10771_v37 = vld [vmem:[%s14779_s4 + $0x270] ss:$12 sps:$4 sm:$0xff]  }
 0x29a   : > { %3352 = vmatprep.subr.bf16.mxu0 %v10766_v28  ;;  %v10772_v28 = vld [vmem:[%s14779_s4 + $0x108] ss:$12 sps:$4 sm:$0xff]  }
 0x29c   : > { %3392 = vmatpush1.bf16.msra.mxu1 %v10767_v7  ;;  %v10773_v7 = vld [vmem:[%s14779_s4 + $0x28c] ss:$12 sps:$4 sm:$0xff]  }
 0x29d   : > { %3353 = vmatpush1.bf16.msra.mxu0 %v10768_v61  ;;  %3393 = vmatprep.subr.bf16.mxu1 %v10769_v15  ;;  %v10774_v61 = vld [vmem:[%s14779_s4 + $0x124] ss:$12 sps:$4 sm:$0xff]   ;;  %v10775_v15 = vld [vmem:[%s14779_s4 + $0x288] ss:$12 sps:$4 sm:$0xff]  }
 0x29e   : > { %3354 = vmatprep.subr.bf16.mxu0 %v10770_v27  ;;  %v10776_v27 = vld [vmem:[%s14779_s4 + $0x120] ss:$12 sps:$4 sm:$0xff]  }
 0x2a0   : > { %3394 = vmatpush1.bf16.msra.mxu1 %v10771_v37  ;;  %v10777_v37 = vld [vmem:[%s14779_s4 + $0x2a4] ss:$12 sps:$4 sm:$0xff]  }
 0x2a1   : > { %3355 = vmatpush1.bf16.msra.mxu0 %v10772_v28  ;;  %3395 = vmatprep.subr.bf16.mxu1 %v10773_v7  ;;  %v10778_v28 = vld [vmem:[%s14779_s4 + $0x13c] ss:$12 sps:$4 sm:$0xff]   ;;  %v10779_v7 = vld [vmem:[%s14779_s4 + $0x2a0] ss:$12 sps:$4 sm:$0xff]  }
 0x2a2   : > { %3356 = vmatprep.subr.bf16.mxu0 %v10774_v61  ;;  %v10780_v61 = vld [vmem:[%s14779_s4 + $0x138] ss:$12 sps:$4 sm:$0xff]  }
 0x2a4   : > { %3396 = vmatpush1.bf16.msra.mxu1 %v10775_v15  ;;  %v10781_v15 = vld [vmem:[%s14779_s4 + $0x2bc] ss:$12 sps:$4 sm:$0xff]  }
 0x2a5   : > { %3357 = vmatpush1.bf16.msra.mxu0 %v10776_v27  ;;  %3397 = vmatprep.subr.bf16.mxu1 %v10777_v37  ;;  %v10782_v27 = vld [vmem:[%s14779_s4 + $0x154] ss:$12 sps:$4 sm:$0xff]   ;;  %v10783_v37 = vld [vmem:[%s14779_s4 + $0x2b8] ss:$12 sps:$4 sm:$0xff]  }
 0x2a6   : > { %3358 = vmatprep.subr.bf16.mxu0 %v10778_v28  ;;  %v10784_v28 = vld [vmem:[%s14779_s4 + $0x150] ss:$12 sps:$4 sm:$0xff]  }
 0x2a8   : > { %3398 = vmatpush1.bf16.msra.mxu1 %v10779_v7  ;;  %v10785_v7 = vld [vmem:[%s14779_s4 + $0x2d4] ss:$12 sps:$4 sm:$0xff]  }
 0x2a9   : > { %3359 = vmatpush1.bf16.msra.mxu0 %v10780_v61  ;;  %3399 = vmatprep.subr.bf16.mxu1 %v10781_v15  ;;  %v10786_v61 = vld [vmem:[%s14779_s4 + $0x16c] ss:$12 sps:$4 sm:$0xff]   ;;  %v10787_v15 = vld [vmem:[%s14779_s4 + $0x2d0] ss:$12 sps:$4 sm:$0xff]  }
 0x2aa   : > { %3360 = vmatprep.subr.bf16.mxu0 %v10782_v27  ;;  %v10788_v27 = vld [vmem:[%s14779_s4 + $0x168] ss:$12 sps:$4 sm:$0xff]  }
 0x2ac   : > { %3400 = vmatpush1.bf16.msra.mxu1 %v10783_v37  ;;  %v10789_v37 = vld [vmem:[%s14779_s4 + $0x2ec] ss:$12 sps:$4 sm:$0xff]  }
 0x2ad   : > { %3361 = vmatpush1.bf16.msra.mxu0 %v10784_v28  ;;  %3401 = vmatprep.subr.bf16.mxu1 %v10785_v7  ;;  %v1724_v28 = vpack.c.bf16 %v12106_v13, %v12106_v13  ;;  %v10790_v7 = vld [vmem:[%s14779_s4 + $0xc8] ss:$12 sps:$4 sm:$0xff]  }
 0x2ae   : > { %3362 = vmatprep.subr.bf16.mxu0 %v10786_v61  ;;  %v10791_v61 = vld [vmem:[%s14779_s4 + $0x2e8] ss:$12 sps:$4 sm:$0xff]  }
 0x2af   : > { %v10793_v13 = vld [vmem:[%s14779_s4 + $0x248] ss:$12 sps:$4 sm:$0xff]  }
 0x2b0   : > { %3402 = vmatpush1.bf16.msra.mxu1 %v10787_v15  ;;  %v1726_v15 = vpack.c.bf16 %v12129_v25, %v12129_v25  ;;  %v10795_v25 = vld [vmem:[%s14779_s4 + $0x188] ss:$12 sps:$4 sm:$0xff]  }
 0x2b1   : > { %3363 = vmatpush1.bf16.msra.mxu0 %v10788_v27  ;;  %3403 = vmatprep.subr.bf16.mxu1 %v10789_v37  ;;  %v10792_v27 = vld [vmem:[%s14779_s4 + $0x8] ss:$12 sps:$4 sm:$0xff]   ;;  %v10794_v37 = vld [vmem:[%s14779_s4 + $0xe0] ss:$12 sps:$4 sm:$0xff]  }
 0x2b2   : > { %9168 = vmatprep.subr.bf16.mxu0 %v10790_v7  ;;  %v10797_v7 = vld [vmem:[%s14779_s4 + $0x260] ss:$12 sps:$4 sm:$0xff]  }
 0x2b4   : > { %3404 = vmatpush1.bf16.msra.mxu1 %v10791_v61  ;;  %3365 = vmatmul.mubr.bf16.vlgmr.msra.gmra.mrb[24].mxu0 %v1724_v28  ;;  %v10798_v61 = vld [vmem:[%s14779_s4 + $0xf8] ss:$12 sps:$4 sm:$0xff]  }
 0x2b5   : > { %9169 = vmatpush3.bf16.msra.mxu0 %v10792_v27  ;;  %3446 = vmatprep.mubr.bf16.mxu0 %v12821_v31  ;;  %v10796_v31 = vld [vmem:[%s14779_s4 + $0x20] ss:$12 sps:$4 sm:$0xff]  }
 0x2b6   : > { %9190 = vmatprep.subr.bf16.mxu1 %v10793_v13  ;;  %9170 = vmatprep.subr.bf16.mxu0 %v10794_v37  ;;  %v10799_v27 = vld [vmem:[%s14779_s4 + $0x1a0] ss:$12 sps:$4 sm:$0xff]   ;;  %v10801_v13 = vld [vmem:[%s14779_s4 + $0x278] ss:$12 sps:$4 sm:$0xff]  }
 0x2b7   : > { %3406 = vmatmul.mubr.bf16.vlgmr.msra.gmra.mrb[24].mxu1 %v1726_v15 }
 0x2b8   : > { %9191 = vmatpush3.bf16.msra.mxu1 %v10795_v25  ;;  %3486 = vmatprep.mubr.bf16.mxu1 %v12834_v20  ;;  %v10800_v20 = vld [vmem:[%s14779_s4 + $0x38] ss:$12 sps:$4 sm:$0xff]  }
 0x2b9   : > { %9171 = vmatpush3.bf16.msra.mxu0 %v10796_v31  ;;  %9192 = vmatprep.subr.bf16.mxu1 %v10797_v7  ;;  %v14958_v25 = vld [vmem:[#allocation39_spill] sm:$0xff]  ;;  %v14959_v31 = vld [vmem:[#allocation40_spill] sm:$0xff]  ;;  %v14960_v7 = vld [vmem:[#allocation41_spill] sm:$0xff] }
 0x2ba   : > { %9172 = vmatprep.subr.bf16.mxu0 %v10798_v61  ;;  %v14961_v61 = vld [vmem:[#allocation42_spill] sm:$0xff] }
 0x2bc   : > { %9193 = vmatpush3.bf16.msra.mxu1 %v10799_v27  ;;  %v14962_v27 = vld [vmem:[#allocation43_spill] sm:$0xff] }
 0x2bd   : > { %9173 = vmatpush3.bf16.msra.mxu0 %v10800_v20  ;;  %9194 = vmatprep.subr.bf16.mxu1 %v10801_v13  ;;  %v14963_v20 = vld [vmem:[#allocation44_spill] sm:$0xff]  ;;  %v14964_v13 = vld [vmem:[#allocation45_spill] sm:$0xff] }
 0x2be   : > { %9174 = vmatprep.subr.bf16.mxu0 %v11885_v16 }
 0x2c0   : > { %9195 = vmatpush3.bf16.msra.mxu1 %v11902_v0 }
 0x2c1   : > { %9175 = vmatpush3.bf16.msra.mxu0 %v11913_v12  ;;  %9196 = vmatprep.subr.bf16.mxu1 %v11918_v3 }
 0x2c2   : > { %9176 = vmatprep.subr.bf16.mxu0 %v11930_v18 }
 0x2c4   : > { %9197 = vmatpush3.bf16.msra.mxu1 %v11952_v56 }
 0x2c5   : > { %9177 = vmatpush3.bf16.msra.mxu0 %v11963_v39  ;;  %9198 = vmatprep.subr.bf16.mxu1 %v11968_v22 }
 0x2c6   : > { %9178 = vmatprep.subr.bf16.mxu0 %v11982_v17 }
 0x2c7   : > { %v2530_v37 = vpop.f32.mrb[8].mxu0 }
 0x2c8   : > { %9199 = vmatpush3.bf16.msra.mxu1 %v12006_v6  ;;  %v2532_v16 = vpop.f32.mrb[9].mxu0  ;;  %v13087_v6 = vpack.c.bf16 %v12186_v24, %v12186_v24 }
 0x2c9   : > { %9179 = vmatpush3.bf16.msra.mxu0 %v12023_v23  ;;  %9200 = vmatprep.subr.bf16.mxu1 %v12028_v57  ;;  %v2534_v0 = vpop.f32.mrb[10].mxu0  ;;  %v13095_v23 = vpack.c.bf16 %v12218_v44, %v12218_v44  ;;  %v14933_v44 = vld [vmem:[#allocation14_spill] sm:$0xff] }
 0x2ca   : > { %v2571_v12 = vpop.f32.mrb[8].mxu1  ;;  %v2535_v3 = vpop.f32.mrb[11].mxu0  ;;  %9180 = vmatprep.subr.bf16.mxu0 %v12043_v35 }
 0x2cb   : > { %v13073_v18 = vadd.f32 %v2571_v12, %v2530_v37  ;;  %v2573_v56 = vpop.f32.mrb[9].mxu1  ;;  %v14965_v37 = vld [vmem:[#allocation46_spill] sm:$0xff]  ;;  %v14967_v12 = vld [vmem:[#allocation47_spill] sm:$0xff]  ;;  %v14968_v3 = vld [vmem:[#allocation48_spill] sm:$0xff] }
 0x2cc   : > { %v13075_v39 = vadd.f32 %v2573_v56, %v2532_v16  ;;  %9201 = vmatpush3.bf16.msra.mxu1 %v12070_v19  ;;  %v2575_v22 = vpop.f32.mrb[10].mxu1  ;;  %v14966_v16 = vld [vmem:[#allocation8_spill] sm:$0xff]  ;;  %v14969_v56 = vld [vmem:[#allocation9_spill] sm:$0xff] }
 0x2cd   : > { %v2576_v17 = vpop.f32.mrb[11].mxu1  ;;  %9181 = vmatpush3.bf16.msra.mxu0 %v12083_v46  ;;  %9202 = vmatprep.subr.bf16.mxu1 %v12088_v51  ;;  %v1668_v0 = vpack.c.bf16 %v14966_v16, %v14966_v16  ;;  %v1670_v22 = vpack.c.bf16 %v14969_v56, %v14969_v56  ;;  %v10214_v16 = vld [vmem:[%s14781_s6 + $0x78] ss:$12 sps:$4 sm:$0xff]  }
 0x2ce   : > { %9182 = vmatprep.subr.bf16.mxu0 %v12101_v21  ;;  %v14970_v17 = vld [vmem:[#allocation49_spill] sm:$0xff] }
 0x2d0   : > { %9203 = vmatpush3.bf16.msra.mxu1 %v12139_v2 }
 0x2d1   : > { %9183 = vmatpush3.bf16.msra.mxu0 %v12150_v47  ;;  %9204 = vmatprep.subr.bf16.mxu1 %v12155_v10 }
 0x2d2   : > { %3494 = vmatprep.subr.bf16.mxu0 %v12165_v40 }
 0x2d4   : > { %9205 = vmatpush3.bf16.msra.mxu1 %v12180_v45  ;;  %3447 = vmatmul.mubr.bf16.vlgmr.msra.gmra.mrb[28].mxu0 %v1724_v28  ;;  %v14929_v45 = vld [vmem:[#allocation10_spill] sm:$0xff]  ;;  %v14956_v28 = vld [vmem:[#allocation37_spill] sm:$0xff] }
 0x2d5   : > { %3495 = vmatpush1.bf16.msra.mxu0 %v12195_v43  ;;  %3526 = vmatprep.mubr.bf16.mxu0 %v13087_v6  ;;  %v14930_v43 = vld [vmem:[#allocation11_spill] sm:$0xff] }
 0x2d6   : > { %3535 = vmatprep.subr.bf16.mxu1 %v12205_v62  ;;  %3496 = vmatprep.subr.bf16.mxu0 %v12210_v4  ;;  %v14931_v62 = vld [vmem:[#allocation12_spill] sm:$0xff]  ;;  %v14932_v4 = vld [vmem:[#allocation13_spill] sm:$0xff] }
 0x2d7   : > { %3487 = vmatmul.mubr.bf16.vlgmr.msra.gmra.mrb[28].mxu1 %v1726_v15  ;;  %v14957_v15 = vld [vmem:[#allocation38_spill] sm:$0xff] }
 0x2d8   : > { %3536 = vmatpush1.bf16.msra.mxu1 %v12228_v11  ;;  %3567 = vmatprep.mubr.bf16.mxu1 %v13095_v23  ;;  %v14934_v11 = vld [vmem:[#allocation15_spill] sm:$0xff] }
 0x2d9   : > { %3497 = vmatpush1.bf16.msra.mxu0 %v12237_v55  ;;  %3537 = vmatprep.subr.bf16.mxu1 %v12242_v32  ;;  %v14935_v55 = vld [vmem:[#allocation16_spill] sm:$0xff]  ;;  %v14936_v32 = vld [vmem:[#allocation17_spill] sm:$0xff] }
 0x2da   : > { %3498 = vmatprep.subr.bf16.mxu0 %v12254_v52  ;;  %v14937_v52 = vld [vmem:[#allocation18_spill] sm:$0xff] }
 0x2dc   : > { %3538 = vmatpush1.bf16.msra.mxu1 %v12271_v14  ;;  %v14938_v14 = vld [vmem:[#allocation19_spill] sm:$0xff] }
 0x2dd   : > { %3499 = vmatpush1.bf16.msra.mxu0 %v12279_v42  ;;  %3539 = vmatprep.subr.bf16.mxu1 %v12284_v8  ;;  %v14939_v42 = vld [vmem:[#allocation20_spill] sm:$0xff]  ;;  %v14940_v8 = vld [vmem:[#allocation21_spill] sm:$0xff] }
 0x2de   : > { %3500 = vmatprep.subr.bf16.mxu0 %v12291_v36  ;;  %v14941_v36 = vld [vmem:[#allocation22_spill] sm:$0xff] }
 0x2e0   : > { %3540 = vmatpush1.bf16.msra.mxu1 %v12301_v49  ;;  %v14942_v49 = vld [vmem:[#allocation23_spill] sm:$0xff] }
 0x2e1   : > { %3501 = vmatpush1.bf16.msra.mxu0 %v12308_v60  ;;  %3541 = vmatprep.subr.bf16.mxu1 %v12313_v58  ;;  %v14943_v60 = vld [vmem:[#allocation24_spill] sm:$0xff]  ;;  %v14944_v58 = vld [vmem:[#allocation25_spill] sm:$0xff] }
 0x2e2   : > { %3502 = vmatprep.subr.bf16.mxu0 %v12319_v34  ;;  %v14945_v34 = vld [vmem:[#allocation26_spill] sm:$0xff] }
 0x2e4   : > { %3542 = vmatpush1.bf16.msra.mxu1 %v12325_v54  ;;  %v14946_v54 = vld [vmem:[#allocation27_spill] sm:$0xff] }
 0x2e5   : > { %3503 = vmatpush1.bf16.msra.mxu0 %v12332_v1  ;;  %3543 = vmatprep.subr.bf16.mxu1 %v12337_v5  ;;  %v14947_v1 = vld [vmem:[#allocation28_spill] sm:$0xff]  ;;  %v14948_v5 = vld [vmem:[#allocation29_spill] sm:$0xff] }
 0x2e6   : > { %3504 = vmatprep.subr.bf16.mxu0 %v12343_v33  ;;  %v14949_v33 = vld [vmem:[#allocation30_spill] sm:$0xff] }
 0x2e7   : > { %v9096_v57 = vpop.f32.mrb[12].mxu0 }
 0x2e8   : > { %3544 = vmatpush1.bf16.msra.mxu1 %v12349_v29  ;;  %v9097_v35 = vpop.f32.mrb[13].mxu0  ;;  %v14950_v29 = vld [vmem:[#allocation31_spill] sm:$0xff] }
 0x2e9   : > { %v9098_v19 = vadd.f32 %v9097_v35, %v9096_v57  ;;  %v9099_v46 = vpop.f32.mrb[14].mxu0  ;;  %3505 = vmatpush1.bf16.msra.mxu0 %v12356_v53  ;;  %3545 = vmatprep.subr.bf16.mxu1 %v12361_v63  ;;  %v14951_v53 = vld [vmem:[#allocation32_spill] sm:$0xff]  ;;  %v14952_v63 = vld [vmem:[#allocation33_spill] sm:$0xff]  ;;  %v14971_v57 = vld [vmem:[#allocation50_spill] sm:$0xff] }
 0x2ea   : > { %v9118_v51 = vpop.f32.mrb[12].mxu1  ;;  %v9100_v21 = vpop.f32.mrb[15].mxu0  ;;  %3506 = vmatprep.subr.bf16.mxu0 %v12367_v50  ;;  %v14953_v50 = vld [vmem:[#allocation34_spill] sm:$0xff]  ;;  %v14972_v35 = vld [vmem:[#allocation51_spill] sm:$0xff]  ;;  %v14974_v46 = vld [vmem:[#allocation53_spill] sm:$0xff] }
 0x2eb   : > { %v9119_v2 = vpop.f32.mrb[13].mxu1  ;;  %v14979_v21 = vld [vmem:[#allocation58_spill] sm:$0xff] }
 0x2ec   : > { %v9120_v47 = vadd.f32 %v9119_v2, %v9118_v51  ;;  %v9121_v10 = vpop.f32.mrb[14].mxu1  ;;  %3546 = vmatpush1.bf16.msra.mxu1 %v12373_v48  ;;  %v14954_v48 = vld [vmem:[#allocation35_spill] sm:$0xff]  ;;  %v14975_v51 = vld [vmem:[#allocation54_spill] sm:$0xff] }
 0x2ed   : > { %v9122_v40 = vpop.f32.mrb[15].mxu1  ;;  %3507 = vmatpush1.bf16.msra.mxu0 %v12380_v41  ;;  %3547 = vmatprep.subr.bf16.mxu1 %v14929_v45  ;;  %v14955_v41 = vld [vmem:[#allocation36_spill] sm:$0xff]  ;;  %v14980_v2 = vld [vmem:[#allocation59_spill] sm:$0xff]  ;;  %v14983_v10 = vld [vmem:[#allocation62_spill] sm:$0xff] }
 0x2ee   : > { %v13122_v24 = vadd.f32 %v9120_v47, %v9098_v19  ;;  %3508 = vmatprep.subr.bf16.mxu0 %v14930_v43  ;;  %v14973_v19 = vld [vmem:[#allocation52_spill] sm:$0xff]  ;;  %v14984_v40 = vld [vmem:[#allocation63_spill] sm:$0xff]  ;;  %v14986_v43 = vld [vmem:[#allocation65_spill] sm:$0xff] }
 0x2ef   : > { %v14981_v47 = vld [vmem:[#allocation60_spill] sm:$0xff] }
 0x2f0   : > { %3548 = vmatpush1.bf16.msra.mxu1 %v14931_v62  ;;  %v14985_v45 = vld [vmem:[#allocation64_spill] sm:$0xff] }
 0x2f1   : > { %3509 = vmatpush1.bf16.msra.mxu0 %v14932_v4  ;;  %3549 = vmatprep.subr.bf16.mxu1 %v14933_v44  ;;  %v14987_v4 = vld [vmem:[#allocation66_spill] sm:$0xff] }
 0x2f2   : > { %3510 = vmatprep.subr.bf16.mxu0 %v14934_v11 }
 0x2f4   : > { %3550 = vmatpush1.bf16.msra.mxu1 %v14935_v55 }
 0x2f5   : > { %3511 = vmatpush1.bf16.msra.mxu0 %v14936_v32  ;;  %3551 = vmatprep.subr.bf16.mxu1 %v14937_v52  ;;  %v14988_v52 = vld [vmem:[#allocation67_spill] sm:$0xff] }
 0x2f6   : > { %3512 = vmatprep.subr.bf16.mxu0 %v14938_v14  ;;  %v14989_v14 = vld [vmem:[#allocation68_spill] sm:$0xff] }
 0x2f8   : > { %3552 = vmatpush1.bf16.msra.mxu1 %v14939_v42 }
 0x2f9   : > { %3513 = vmatpush1.bf16.msra.mxu0 %v14940_v8  ;;  %3553 = vmatprep.subr.bf16.mxu1 %v14941_v36  ;;  %v14990_v36 = vld [vmem:[#allocation69_spill] sm:$0xff] }
 0x2fa   : > { %3514 = vmatprep.subr.bf16.mxu0 %v14942_v49 }
 0x2fc   : > { %3554 = vmatpush1.bf16.msra.mxu1 %v14943_v60 }
 0x2fd   : > { %3515 = vmatpush1.bf16.msra.mxu0 %v14944_v58  ;;  %3555 = vmatprep.subr.bf16.mxu1 %v14945_v34 }
 0x2fe   : > { %3516 = vmatprep.subr.bf16.mxu0 %v14946_v54  ;;  %v14991_v54 = vld [vmem:[#allocation70_spill] sm:$0xff] }
 0x300   : > { %3556 = vmatpush1.bf16.msra.mxu1 %v14947_v1  ;;  %v14992_v1 = vld [vmem:[#allocation71_spill] sm:$0xff] }
 0x301   : > { %3517 = vmatpush1.bf16.msra.mxu0 %v14948_v5  ;;  %3557 = vmatprep.subr.bf16.mxu1 %v14949_v33  ;;  %v10201_v5 = vld [vmem:[%s14781_s6 + $0x4] ss:$12 sps:$4 sm:$0xff]  }
 0x302   : > { %3518 = vmatprep.subr.bf16.mxu0 %v14950_v29  ;;  %v14994_v33 = vld [vmem:[#allocation73_spill] sm:$0xff]  ;;  %v14995_v29 = vld [vmem:[#allocation74_spill] sm:$0xff] }
 0x304   : > { %3558 = vmatpush1.bf16.msra.mxu1 %v14951_v53  ;;  %v10199_v53 = vld [vmem:[%s14781_s6] ss:$12 sps:$4 sm:$0xff]  }
 0x305   : > { %3519 = vmatpush1.bf16.msra.mxu0 %v14952_v63  ;;  %3559 = vmatprep.subr.bf16.mxu1 %v14953_v50  ;;  %v10204_v63 = vld [vmem:[%s14781_s6 + $0x1c] ss:$12 sps:$4 sm:$0xff]  }
 0x306   : > { %3520 = vmatprep.subr.bf16.mxu0 %v14954_v48  ;;  %v10227_v50 = vld [vmem:[%s14781_s6 + $0x8] ss:$12 sps:$4 sm:$0xff]  }
 0x307   : > { %v10207_v48 = vld [vmem:[%s14781_s6 + $0x34] ss:$12 sps:$4 sm:$0xff]  }
 0x308   : > { %3560 = vmatpush1.bf16.msra.mxu1 %v14955_v41  ;;  %v10232_v41 = vld [vmem:[%s14781_s6 + $0x20] ss:$12 sps:$4 sm:$0xff]  }
 0x309   : > { %3521 = vmatpush1.bf16.msra.mxu0 %v14956_v28  ;;  %3561 = vmatprep.subr.bf16.mxu1 %v14957_v15  ;;  %v10205_v28 = vld [vmem:[%s14781_s6 + $0x30] ss:$12 sps:$4 sm:$0xff]   ;;  %v10236_v15 = vld [vmem:[%s14781_s6 + $0xf8] ss:$12 sps:$4 sm:$0xff]  }
 0x30a   : > { %3522 = vmatprep.subr.bf16.mxu0 %v14958_v25  ;;  %v10210_v25 = vld [vmem:[%s14781_s6 + $0x4c] ss:$12 sps:$4 sm:$0xff]  }
 0x30c   : > { %3562 = vmatpush1.bf16.msra.mxu1 %v14959_v31  ;;  %v10237_v31 = vld [vmem:[%s14781_s6 + $0x38] ss:$12 sps:$4 sm:$0xff]  }
 0x30d   : > { %3523 = vmatpush1.bf16.msra.mxu0 %v14960_v7  ;;  %3563 = vmatprep.subr.bf16.mxu1 %v14961_v61  ;;  %v10208_v7 = vld [vmem:[%s14781_s6 + $0x48] ss:$12 sps:$4 sm:$0xff]   ;;  %v10241_v61 = vld [vmem:[%s14781_s6 + $0x110] ss:$12 sps:$4 sm:$0xff]  }
 0x30e   : > { %3524 = vmatprep.subr.bf16.mxu0 %v14962_v27  ;;  %v10213_v27 = vld [vmem:[%s14781_s6 + $0x64] ss:$12 sps:$4 sm:$0xff]  }
 0x310   : > { %3564 = vmatpush1.bf16.msra.mxu1 %v14963_v20  ;;  %v10242_v20 = vld [vmem:[%s14781_s6 + $0x50] ss:$12 sps:$4 sm:$0xff]  }
 0x311   : > { %3525 = vmatpush1.bf16.msra.mxu0 %v14964_v13  ;;  %3565 = vmatprep.subr.bf16.mxu1 %v14965_v37  ;;  %v10211_v13 = vld [vmem:[%s14781_s6 + $0x60] ss:$12 sps:$4 sm:$0xff]   ;;  %v10216_v37 = vld [vmem:[%s14781_s6 + $0x7c] ss:$12 sps:$4 sm:$0xff]  }
 0x312   : > { %9212 = vmatprep.subr.bf16.mxu0 %v14967_v12 }
 0x314   : > { %3566 = vmatpush1.bf16.msra.mxu1 %v14968_v3  ;;  %3527 = vmatmul.mubr.bf16.vlgmr.msra.gmra.mrb[32].mxu0 %v1668_v0 }
 0x315   : > { %9213 = vmatpush3.bf16.msra.mxu0 %v12620_v30  ;;  %3608 = vmatprep.mubr.bf16.mxu0 %v13087_v6  ;;  %v14976_v30 = vld [vmem:[#allocation55_spill] sm:$0xff]  ;;  %v14977_v6 = vld [vmem:[#allocation56_spill] sm:$0xff] }
 0x316   : > { %9234 = vmatprep.subr.bf16.mxu1 %v12630_v59  ;;  %9214 = vmatprep.subr.bf16.mxu0 %v14970_v17  ;;  %v14978_v59 = vld [vmem:[#allocation57_spill] sm:$0xff]  ;;  %v10217_v17 = vld [vmem:[%s14781_s6 + $0x90] ss:$12 sps:$4 sm:$0xff]  }
 0x317   : > { %3568 = vmatmul.mubr.bf16.vlgmr.msra.gmra.mrb[32].mxu1 %v1670_v22 }
 0x318   : > { %9235 = vmatpush3.bf16.msra.mxu1 %v14971_v57  ;;  %3648 = vmatprep.mubr.bf16.mxu1 %v13095_v23  ;;  %v14982_v23 = vld [vmem:[#allocation61_spill] sm:$0xff] }
 0x319   : > { %9215 = vmatpush3.bf16.msra.mxu0 %v14972_v35  ;;  %9236 = vmatprep.subr.bf16.mxu1 %v14973_v19  ;;  %v10222_v19 = vld [vmem:[%s14781_s6 + $0xac] ss:$12 sps:$4 sm:$0xff]  }
 0x31a   : > { %9216 = vmatprep.subr.bf16.mxu0 %v14974_v46 }
 0x31c   : > { %9237 = vmatpush3.bf16.msra.mxu1 %v14975_v51 }
 0x31d   : > { %9217 = vmatpush3.bf16.msra.mxu0 %v14976_v30  ;;  %9238 = vmatprep.subr.bf16.mxu1 %v14977_v6 }
 0x31e   : > { %9218 = vmatprep.subr.bf16.mxu0 %v14978_v59 }
 0x320   : > { %9239 = vmatpush3.bf16.msra.mxu1 %v14979_v21  ;;  %v10220_v21 = vld [vmem:[%s14781_s6 + $0xa8] ss:$12 sps:$4 sm:$0xff]  }
 0x321   : > { %9219 = vmatpush3.bf16.msra.mxu0 %v14980_v2  ;;  %9240 = vmatprep.subr.bf16.mxu1 %v14981_v47  ;;  %v10225_v47 = vld [vmem:[%s14781_s6 + $0xc4] ss:$12 sps:$4 sm:$0xff]  }
 0x322   : > { %9220 = vmatprep.subr.bf16.mxu0 %v14982_v23  ;;  %v10230_v23 = vld [vmem:[%s14781_s6 + $0xdc] ss:$12 sps:$4 sm:$0xff]  }
 0x324   : > { %9241 = vmatpush3.bf16.msra.mxu1 %v14983_v10  ;;  %v10228_v10 = vld [vmem:[%s14781_s6 + $0xd8] ss:$12 sps:$4 sm:$0xff]  }
 0x325   : > { %9221 = vmatpush3.bf16.msra.mxu0 %v14984_v40  ;;  %9242 = vmatprep.subr.bf16.mxu1 %v14985_v45  ;;  %v10235_v40 = vld [vmem:[%s14781_s6 + $0xf4] ss:$12 sps:$4 sm:$0xff]   ;;  %v10233_v45 = vld [vmem:[%s14781_s6 + $0xf0] ss:$12 sps:$4 sm:$0xff]  }
 0x326   : > { %9222 = vmatprep.subr.bf16.mxu0 %v14986_v43  ;;  %v10240_v43 = vld [vmem:[%s14781_s6 + $0x10c] ss:$12 sps:$4 sm:$0xff]  }
 0x327   : > { %v3204_v62 = vpop.f32.mrb[16].mxu0 }
 0x328   : > { %9243 = vmatpush3.bf16.msra.mxu1 %v14987_v4  ;;  %v3205_v44 = vadd.f32 %v3204_v62, %v13073_v18  ;;  %v3206_v11 = vpop.f32.mrb[17].mxu0  ;;  %v10238_v62 = vld [vmem:[%s14781_s6 + $0x108] ss:$12 sps:$4 sm:$0xff]   ;;  %v10243_v4 = vld [vmem:[%s14781_s6 + $0x120] ss:$12 sps:$4 sm:$0xff]  }
 0x329   : > { %v3207_v55 = vadd.f32 %v3206_v11, %v13075_v39  ;;  %v3208_v32 = vpop.f32.mrb[18].mxu0  ;;  %9223 = vmatpush3.bf16.msra.mxu0 %v14988_v52  ;;  %9244 = vmatprep.subr.bf16.mxu1 %v14989_v14  ;;  %v14993_v39 = vld [vmem:[#allocation72_spill] sm:$0xff]  ;;  %v10246_v11 = vld [vmem:[%s14781_s6 + $0x128] ss:$12 sps:$4 sm:$0xff]  }
 0x32a   : > { %v3245_v42 = vpop.f32.mrb[16].mxu1  ;;  %v3209_v8 = vpop.f32.mrb[19].mxu0  ;;  %9224 = vmatprep.subr.bf16.mxu0 %v14990_v36  ;;  %v10248_v32 = vld [vmem:[%s14781_s6 + $0x138] ss:$12 sps:$4 sm:$0xff]   ;;  %v10250_v52 = vld [vmem:[%s14781_s6 + $0x13c] ss:$12 sps:$4 sm:$0xff]  }
 0x32b   : > { %v13193_v49 = vadd.f32 %v3245_v42, %v3205_v44  ;;  %v3247_v60 = vpop.f32.mrb[17].mxu1  ;;  %v10245_v44 = vld [vmem:[%s14781_s6 + $0x124] ss:$12 sps:$4 sm:$0xff]   ;;  %v10251_v14 = vld [vmem:[%s14781_s6 + $0x140] ss:$12 sps:$4 sm:$0xff]  }
 0x32c   : > { %v13195_v58 = vadd.f32 %v3247_v60, %v3207_v55  ;;  %v3249_v34 = vpop.f32.mrb[18].mxu1  ;;  %9245 = vmatpush3.bf16.msra.mxu1 %v14991_v54  ;;  %v10247_v55 = vld [vmem:[%s14781_s6 + $0x68] ss:$12 sps:$4 sm:$0xff]   ;;  %v10252_v42 = vld [vmem:[%s14781_s6 + $0x80] ss:$12 sps:$4 sm:$0xff]  }
 0x32d   : > { %v3250_v18 = vpop.f32.mrb[19].mxu1  ;;  %9225 = vmatpush3.bf16.msra.mxu0 %v14992_v1  ;;  %9246 = vmatprep.subr.bf16.mxu1 %v14993_v39  ;;  %v10255_v8 = vld [vmem:[%s14781_s6 + $0x154] ss:$12 sps:$4 sm:$0xff]   ;;  %v10253_v36 = vld [vmem:[%s14781_s6 + $0x150] ss:$12 sps:$4 sm:$0xff]  }
 0x32e   : > { %9226 = vmatprep.subr.bf16.mxu0 %v12787_v38  ;;  %v10226_v38 = vld [vmem:[%s14781_s6 + $0xc8] ss:$12 sps:$4 sm:$0xff]   ;;  %v10256_v60 = vld [vmem:[%s14781_s6 + $0x158] ss:$12 sps:$4 sm:$0xff]   ;;  %v10261_v1 = vld [vmem:[%s14781_s6 + $0x170] ss:$12 sps:$4 sm:$0xff]  }
 0x32f   : > { %v10260_v34 = vld [vmem:[%s14781_s6 + $0x16c] ss:$12 sps:$4 sm:$0xff]   ;;  %v10258_v18 = vld [vmem:[%s14781_s6 + $0x168] ss:$12 sps:$4 sm:$0xff]   ;;  %v10265_v39 = vld [vmem:[%s14781_s6 + $0x184] ss:$12 sps:$4 sm:$0xff]  }
 0x330   : > { %9247 = vmatpush3.bf16.msra.mxu1 %v14994_v33  ;;  %v10257_v54 = vld [vmem:[%s14781_s6 + $0x98] ss:$12 sps:$4 sm:$0xff]   ;;  %v10266_v33 = vld [vmem:[%s14781_s6 + $0x248] ss:$12 sps:$4 sm:$0xff]  }
 0x331   : > { %9227 = vmatpush3.bf16.msra.mxu0 %v12800_v9  ;;  %9248 = vmatprep.subr.bf16.mxu1 %v14995_v29  ;;  %v10202_v9 = vld [vmem:[%s14781_s6 + $0x18] ss:$12 sps:$4 sm:$0xff]  }
 0x332   : > { %5205 = vmatprep.subr.bf16.mxu0 %v10201_v5  ;;  %v10262_v5 = vld [vmem:[%s14781_s6 + $0xb0] ss:$12 sps:$4 sm:$0xff]  }
 0x334   : > { %9249 = vmatpush3.bf16.msra.mxu1 %v12812_v26  ;;  %3609 = vmatmul.mubr.bf16.vlgmr.msra.gmra.mrb[36].mxu0 %v1668_v0  ;;  %v10231_v26 = vld [vmem:[%s14781_s6 + $0xe0] ss:$12 sps:$4 sm:$0xff]  }
 0x335   : > { %5206 = vmatpush1.bf16.msra.mxu0 %v10199_v53  ;;  %9256 = vmatprep.subr.bf16.mxu1 %v10226_v38  ;;  %v10219_v0 = vld [vmem:[%s14781_s6 + $0x94] ss:$12 sps:$4 sm:$0xff]  }
 0x336   : > { %5207 = vmatprep.subr.bf16.mxu0 %v10204_v63 }
 0x337   : > { %3649 = vmatmul.mubr.bf16.vlgmr.msra.gmra.mrb[36].mxu1 %v1670_v22 }
 0x338   : > { %9257 = vmatpush3.bf16.msra.mxu1 %v10227_v50 }
 0x339   : > { %5208 = vmatpush1.bf16.msra.mxu0 %v10202_v9  ;;  %9258 = vmatprep.subr.bf16.mxu1 %v10231_v26 }
 0x33a   : > { %5209 = vmatprep.subr.bf16.mxu0 %v10207_v48 }
 0x33c   : > { %9259 = vmatpush3.bf16.msra.mxu1 %v10232_v41 }
 0x33d   : > { %5210 = vmatpush1.bf16.msra.mxu0 %v10205_v28  ;;  %9260 = vmatprep.subr.bf16.mxu1 %v10236_v15 }
 0x33e   : > { %5211 = vmatprep.subr.bf16.mxu0 %v10210_v25 }
 0x340   : > { %9261 = vmatpush3.bf16.msra.mxu1 %v10237_v31 }
 0x341   : > { %5212 = vmatpush1.bf16.msra.mxu0 %v10208_v7  ;;  %9262 = vmatprep.subr.bf16.mxu1 %v10241_v61 }
 0x342   : > { %5213 = vmatprep.subr.bf16.mxu0 %v10213_v27 }
 0x344   : > { %9263 = vmatpush3.bf16.msra.mxu1 %v10242_v20 }
 0x345   : > { %5214 = vmatpush1.bf16.msra.mxu0 %v10211_v13  ;;  %9264 = vmatprep.subr.bf16.mxu1 %v10246_v11 }
 0x346   : > { %5215 = vmatprep.subr.bf16.mxu0 %v10216_v37 }
 0x347   : > { %v9140_v12 = vpop.f32.mrb[20].mxu0 }
 0x348   : > { %v9141_v3 = vpop.f32.mrb[21].mxu0  ;;  %9265 = vmatpush3.bf16.msra.mxu1 %v10247_v55 }
 0x349   : > { %v9142_v56 = vadd.f32 %v9141_v3, %v9140_v12  ;;  %v9143_v22 = vpop.f32.mrb[22].mxu0  ;;  %5216 = vmatpush1.bf16.msra.mxu0 %v10214_v16  ;;  %9266 = vmatprep.subr.bf16.mxu1 %v10251_v14  ;;  %v13363_v12 = vld [vmem:[%s14780_s5] sm:$0x7] }
 0x34a   : > { %v9162_v57 = vpop.f32.mrb[20].mxu1  ;;  %v9144_v35 = vpop.f32.mrb[23].mxu0  ;;  %5217 = vmatprep.subr.bf16.mxu0 %v10219_v0  ;;  %v14996_v3 = vld [vmem:[#allocation5_spill] sm:$0xff] }
 0x34b   : > { %v3287_v46 = vadd.f32 %v9142_v56, %v13122_v24  ;;  %v9163_v51 = vpop.f32.mrb[21].mxu1  ;;  %v10223_v24 = vld [vmem:[%s14781_s6 + $0xc0] ss:$12 sps:$4 sm:$0xff]   ;;  %v3661_v56 = vrot.slane %v13363_v12, %v14996_v3 }
 0x34c   : > { %v9164_v30 = vadd.f32 %v9163_v51, %v9162_v57  ;;  %v9165_v6 = vpop.f32.mrb[22].mxu1  ;;  %9267 = vmatpush3.bf16.msra.mxu1 %v10252_v42  ;;  %v10263_v42 = vld [vmem:[%s14781_s6 + $0x180] ss:$12 sps:$4 sm:$0xff]  }
 0x34d   : > { %v9166_v59 = vpop.f32.mrb[23].mxu1  ;;  %5218 = vmatpush1.bf16.msra.mxu0 %v10217_v17  ;;  %9268 = vmatprep.subr.bf16.mxu1 %v10256_v60  ;;  %v14997_v17 = vld [vmem:[#allocation7_spill] sm:$0xff] }
 0x34e   : > { %v13278_v2 = vadd.f32 %v9164_v30, %v3287_v46  ;;  %5219 = vmatprep.subr.bf16.mxu0 %v10222_v19  ;;  %v3665_v57 = vrot.slane %v13363_v12, %v14997_v17  ;;  %v3673_v59 = vadd.f32 %v3661_v56, %v13193_v49 }
 0x350   : > { %9269 = vmatpush3.bf16.msra.mxu1 %v10257_v54  ;;  %v10270_v54 = vld [vmem:[%s14781_s6 + $0x19c] ss:$12 sps:$4 sm:$0xff]  }
 0x351   : > { %5220 = vmatpush1.bf16.msra.mxu0 %v10220_v21  ;;  %9270 = vmatprep.subr.bf16.mxu1 %v10261_v1 }
 0x352   : > { %5221 = vmatprep.subr.bf16.mxu0 %v10225_v47 }
 0x354   : > { %9271 = vmatpush3.bf16.msra.mxu1 %v10262_v5 }
 0x355   : > { %5222 = vmatpush1.bf16.msra.mxu0 %v10223_v24  ;;  %9278 = vmatprep.subr.bf16.mxu1 %v10266_v33  ;;  %v3674_v24 = vadd.f32 %v3665_v57, %v13195_v58  ;;  %v10271_v33 = vld [vmem:[%s14781_s6 + $0x260] ss:$12 sps:$4 sm:$0xff]  }
 0x356   : > { %5223 = vmatprep.subr.bf16.mxu0 %v10230_v23  ;;  %v10355_v58 = vld [vmem:[%s14781_s6 + $0x334] ss:$12 sps:$4 sm:$0xff]  }
 0x359   : > { %5224 = vmatpush1.bf16.msra.mxu0 %v10228_v10 }
 0x35a   : > { %5225 = vmatprep.subr.bf16.mxu0 %v10235_v40 }
 0x35d   : > { %5226 = vmatpush1.bf16.msra.mxu0 %v10233_v45 }
 0x35e   : > { %5227 = vmatprep.subr.bf16.mxu0 %v10240_v43 }
 0x361   : > { %5228 = vmatpush1.bf16.msra.mxu0 %v10238_v62  ;;  %v3676_v62 = vmax.f32 %v3673_v59, 0.0  ;;  %v10292_v59 = vld [vmem:[%s14781_s6 + $0x200] ss:$12 sps:$4 sm:$0xff]  }
 0x362   : > { %5229 = vmatprep.subr.bf16.mxu0 %v10245_v44  ;;  %v3677_v44 = vmax.f32 %v3674_v24, 0.0  ;;  %v10296_v24 = vld [vmem:[%s14781_s6 + $0x2d8] ss:$12 sps:$4 sm:$0xff]  }
 0x365   : > { %5230 = vmatpush1.bf16.msra.mxu0 %v10243_v4 }
 0x366   : > { %5231 = vmatprep.subr.bf16.mxu0 %v10250_v52 }
 0x369   : > { %5232 = vmatpush1.bf16.msra.mxu0 %v10248_v32 }
 0x36a   : > { %5233 = vmatprep.subr.bf16.mxu0 %v10255_v8 }
 0x36d   : > { %5234 = vmatpush1.bf16.msra.mxu0 %v10253_v36 }
 0x36e   : > { %5235 = vmatprep.subr.bf16.mxu0 %v10260_v34  ;;  %v10267_v34 = vld [vmem:[%s14781_s6 + $0x188] ss:$12 sps:$4 sm:$0xff]  }
 0x371   : > { %5236 = vmatpush1.bf16.msra.mxu0 %v10258_v18 }
 0x372   : > { %5248 = vmatprep.subr.bf16.mxu0 %v10265_v39 }
 0x387   : > { %v3366_v29 = vpop.f32.mrb[24].mxu0 }
 0x388   : > { %v3368_v53 = vpop.f32.mrb[25].mxu0 }
 0x389   : > { %v3370_v63 = vpop.f32.mrb[26].mxu0 }
 0x38a   : > { %v3407_v38 = vpop.f32.mrb[24].mxu1  ;;  %v3371_v9 = vpop.f32.mrb[27].mxu0 }
 0x38b   : > { %v3408_v50 = vadd.f32 %v3407_v38, %v3366_v29  ;;  %v3409_v48 = vpop.f32.mrb[25].mxu1  ;;  %v10268_v38 = vld [vmem:[%s14781_s6 + $0x198] ss:$12 sps:$4 sm:$0xff]   ;;  %v10272_v9 = vld [vmem:[%s14781_s6 + $0x1a0] ss:$12 sps:$4 sm:$0xff]  }
 0x38c   : > { %v3410_v26 = vadd.f32 %v3409_v48, %v3368_v53  ;;  %v3411_v41 = vpop.f32.mrb[26].mxu1  ;;  %v10276_v48 = vld [vmem:[%s14781_s6 + $0x278] ss:$12 sps:$4 sm:$0xff]  }
 0x38d   : > { %v3412_v28 = vpop.f32.mrb[27].mxu1  ;;  %v10273_v41 = vld [vmem:[%s14781_s6 + $0x1b0] ss:$12 sps:$4 sm:$0xff]  }
 0x38e   : > { %v10277_v28 = vld [vmem:[%s14781_s6 + $0x1b8] ss:$12 sps:$4 sm:$0xff]  }
 0x3a7   : > { %v9184_v15 = vpop.f32.mrb[28].mxu0 }
 0x3a8   : > { %v9185_v25 = vpop.f32.mrb[29].mxu0 }
 0x3a9   : > { %v9186_v31 = vadd.f32 %v9185_v25, %v9184_v15  ;;  %v9187_v7 = vpop.f32.mrb[30].mxu0  ;;  %v10280_v15 = vld [vmem:[%s14781_s6 + $0x1cc] ss:$12 sps:$4 sm:$0xff]   ;;  %v10281_v25 = vld [vmem:[%s14781_s6 + $0x290] ss:$12 sps:$4 sm:$0xff]  }
 0x3aa   : > { %v9206_v61 = vpop.f32.mrb[28].mxu1  ;;  %v9188_v27 = vpop.f32.mrb[31].mxu0  ;;  %v10282_v7 = vld [vmem:[%s14781_s6 + $0x1d0] ss:$12 sps:$4 sm:$0xff]  }
 0x3ab   : > { %v9207_v20 = vpop.f32.mrb[29].mxu1  ;;  %v10286_v27 = vld [vmem:[%s14781_s6 + $0x2a8] ss:$12 sps:$4 sm:$0xff]  }
 0x3ac   : > { %v9208_v13 = vadd.f32 %v9207_v20, %v9206_v61  ;;  %v9209_v37 = vpop.f32.mrb[30].mxu1  ;;  %v10285_v61 = vld [vmem:[%s14781_s6 + $0x1e4] ss:$12 sps:$4 sm:$0xff]   ;;  %v10283_v20 = vld [vmem:[%s14781_s6 + $0x1e0] ss:$12 sps:$4 sm:$0xff]  }
 0x3ad   : > { %v9210_v16 = vpop.f32.mrb[31].mxu1 }
 0x3ae   : > { %v13358_v0 = vadd.f32 %v9208_v13, %v9186_v31  ;;  %v10278_v31 = vld [vmem:[%s14781_s6 + $0x1c8] ss:$12 sps:$4 sm:$0xff]  }
 0x3af   : > { %v10287_v13 = vld [vmem:[%s14781_s6 + $0x1e8] ss:$12 sps:$4 sm:$0xff]  }
 0x3b0   : > { %v10290_v16 = vld [vmem:[%s14781_s6 + $0x1fc] ss:$12 sps:$4 sm:$0xff]  }
 0x3e7   : > { %v3528_v22 = vpop.f32.mrb[32].mxu0 }
 0x3e8   : > { %v3529_v35 = vadd.f32 %v3528_v22, %v3408_v50  ;;  %v3530_v19 = vpop.f32.mrb[33].mxu0  ;;  %v10275_v50 = vld [vmem:[%s14781_s6 + $0x1b4] ss:$12 sps:$4 sm:$0xff]  }
 0x3e9   : > { %v3531_v46 = vadd.f32 %v3530_v19, %v3410_v26  ;;  %v3532_v51 = vpop.f32.mrb[34].mxu0  ;;  %v15000_v19 = vld [vmem:[#allocation6_spill] sm:$0xff] }
 0x3ea   : > { %v3569_v30 = vpop.f32.mrb[32].mxu1  ;;  %v3533_v6 = vpop.f32.mrb[35].mxu0 }
 0x3eb   : > { %v3570_v21 = vadd.f32 %v3569_v30, %v3529_v35  ;;  %v3571_v47 = vpop.f32.mrb[33].mxu1  ;;  %v10288_v6 = vld [vmem:[%s14781_s6 + $0x1f8] ss:$12 sps:$4 sm:$0xff]  }
 0x3ec   : > { %v3572_v23 = vadd.f32 %v3571_v47, %v3531_v46  ;;  %v3573_v10 = vpop.f32.mrb[34].mxu1  ;;  %v3669_v46 = vrot.slane %v13363_v12, %v15000_v19  ;;  %v10295_v12 = vld [vmem:[%s14781_s6 + $0x214] ss:$12 sps:$4 sm:$0xff]  }
 0x3ed   : > { %v3679_v40 = vadd.f32 %v3661_v56, %v3570_v21  ;;  %v3574_v45 = vpop.f32.mrb[35].mxu1  ;;  %v10291_v56 = vld [vmem:[%s14781_s6 + $0x2c0] ss:$12 sps:$4 sm:$0xff]  }
 0x3ee   : > { %v3680_v43 = vadd.f32 %v3665_v57, %v3572_v23  ;;  %v3675_v45 = vadd.f32 %v3669_v46, %v13278_v2  ;;  %v10301_v2 = vld [vmem:[%s14781_s6 + $0x2f0] ss:$12 sps:$4 sm:$0xff]  }
 0x3ef   : > { %v3682_v4 = vmax.f32 %v3679_v40, 0.0 }
 0x3f0   : > { %v3683_v11 = vmax.f32 %v3680_v43, 0.0 }
 0x3f1   : > { %v3685_v55 = vadd.f32 %v3682_v4, %v3676_v62  ;;  %v10297_v62 = vld [vmem:[%s14781_s6 + $0x218] ss:$12 sps:$4 sm:$0xff]  }
 0x3f2   : > { %v3686_v32 = vadd.f32 %v3683_v11, %v3677_v44  ;;  %v10300_v4 = vld [vmem:[%s14781_s6 + $0x22c] ss:$12 sps:$4 sm:$0xff]   ;;  %v3678_v11 = vmax.f32 %v3675_v45, 0.0  ;;  %v10342_v45 = vld [vmem:[%s14781_s6 + $0x3b0] ss:$12 sps:$4 sm:$0xff]  }
 0x3f3   : > { %v3691_v52 = vrot.slane %v3685_v55, 6 }
 0x3f4   : > { %v13372_v14 = vrot.slane %v3686_v32, 6  ;;  %v10298_v32 = vld [vmem:[%s14781_s6 + $0x228] ss:$12 sps:$4 sm:$0xff]  }
 0x3f5   : > { %v3697_v49 = vsel %vm1464_vm5, 0.0, %v3691_v52  ;;  %v3700_v8 = vsel %vm1464_vm5, %v3691_v52, 0.0  ;;  %v8819_v18 = vpack.c.bf16 %v3691_v52, %v3691_v52  ;;  %v10302_v52 = vld [vmem:[%s14781_s6 + $0x230] ss:$12 sps:$4 sm:$0xff]  }
 0x3f6   : > { %v3724_v36 = vrot.slane %v3697_v49, 2  ;;  %v8815_v60 = vpack.c.bf16 %v13372_v14, %v13372_v14  ;;  %v3709_v1 = vrot.slane %v3697_v49, 1  ;;  %v3710_v39 = vrot.slane %v3700_v8, 1  ;;  %v10305_v49 = vld [vmem:[%s14781_s6 + $0x244] ss:$12 sps:$4 sm:$0xff]  }
 0x3f7   : > { %v3725_v5 = vrot.slane %v3700_v8, 2 }
 0x3f8   : > { %8816 = vmatprep.mubr.msk.bf16.mxu0 %vm13376_vm10, %v8815_v60  ;;  %8828 = vmatprep.mubr.msk.bf16.mxu1 %vm13376_vm10, %v8815_v60  ;;  %v3711_v29 = vsel %vm341_vm0, %v3709_v1, %v3710_v39  ;;  %v10303_v60 = vld [vmem:[%s14781_s6 + $0x240] ss:$12 sps:$4 sm:$0xff]  }
 0x3f9   : > { %8820 = vmatmul.mubr.msk.bf16.vlgmr.msra.gmra.mrb[40].mxu0 %vm13376_vm10, %v8819_v18  ;;  %8832 = vmatmul.mubr.msk.bf16.vlgmr.msra.gmra.mrb[40].mxu1 %vm13376_vm10, %v8819_v18  ;;  %v3726_v53 = vsel %vm355_vm1, %v3724_v36, %v3725_v5  ;;  %v3742_v63 = vpack.c.bf16 %v3710_v39, %v3711_v29  ;;  %v10311_v1 = vld [vmem:[%s14781_s6 + $0x3e0] ss:$12 sps:$4 sm:$0xff]  }
 0x3fa   : > { %5249 = vmatpush1.bf16.msra.mxu0 %v10263_v42  ;;  %9279 = vmatpush3.bf16.msra.mxu1 %v10267_v34  ;;  %v13417_v26 = vpack.c.bf16 %v3725_v5, %v3726_v53  ;;  %v10306_v42 = vld [vmem:[%s14781_s6 + $0x3c8] ss:$12 sps:$4 sm:$0xff]  }
 0x3fb   : > { %5250 = vmatprep.subr.bf16.mxu0 %v10270_v54  ;;  %9280 = vmatprep.subr.bf16.mxu1 %v10271_v33  ;;  %v10307_v34 = vld [vmem:[%s14781_s6 + $0x308] ss:$12 sps:$4 sm:$0xff]  }
 0x3fc   : > { %5280 = vmatprep.mubr.bf16.mxu0 %v3742_v63  ;;  %5493 = vmatprep.mubr.bf16.mxu1 %v3742_v63  ;;  %v10310_v54 = vld [vmem:[%s14781_s6 + $0x25c] ss:$12 sps:$4 sm:$0xff]  }
 0x3fe   : > { %5251 = vmatpush1.bf16.msra.mxu0 %v10268_v38  ;;  %9281 = vmatpush3.bf16.msra.mxu1 %v10272_v9  ;;  %v10308_v38 = vld [vmem:[%s14781_s6 + $0x258] ss:$12 sps:$4 sm:$0xff]   ;;  %v10312_v9 = vld [vmem:[%s14781_s6 + $0x320] ss:$12 sps:$4 sm:$0xff]  }
 0x3ff   : > { %5252 = vmatprep.subr.bf16.mxu0 %v10275_v50  ;;  %9282 = vmatprep.subr.bf16.mxu1 %v10276_v48  ;;  %v10315_v48 = vld [vmem:[%s14781_s6 + $0x274] ss:$12 sps:$4 sm:$0xff]  }
 0x402   : > { %5253 = vmatpush1.bf16.msra.mxu0 %v10273_v41  ;;  %9283 = vmatpush3.bf16.msra.mxu1 %v10277_v28 }
 0x403   : > { %5254 = vmatprep.subr.bf16.mxu0 %v10280_v15  ;;  %9284 = vmatprep.subr.bf16.mxu1 %v10281_v25  ;;  %v10316_v15 = vld [vmem:[%s14781_s6 + $0x3f8] ss:$12 sps:$4 sm:$0xff]  }
 0x406   : > { %5255 = vmatpush1.bf16.msra.mxu0 %v10278_v31  ;;  %9285 = vmatpush3.bf16.msra.mxu1 %v10282_v7  ;;  %v10313_v31 = vld [vmem:[%s14781_s6 + $0x270] ss:$12 sps:$4 sm:$0xff]   ;;  %v10317_v7 = vld [vmem:[%s14781_s6 + $0x338] ss:$12 sps:$4 sm:$0xff]  }
 0x407   : > { %v9228_v37 = vpop.f32.mrb[36].mxu0  ;;  %5256 = vmatprep.subr.bf16.mxu0 %v10285_v61  ;;  %9286 = vmatprep.subr.bf16.mxu1 %v10286_v27  ;;  %v10320_v61 = vld [vmem:[%s14781_s6 + $0x28c] ss:$12 sps:$4 sm:$0xff]   ;;  %v10321_v27 = vld [vmem:[%s14781_s6 + $0x410] ss:$12 sps:$4 sm:$0xff]  }
 0x408   : > { %v9229_v22 = vpop.f32.mrb[37].mxu0 }
 0x409   : > { %v9230_v57 = vadd.f32 %v9229_v22, %v9228_v37  ;;  %v9231_v35 = vpop.f32.mrb[38].mxu0  ;;  %v10325_v37 = vld [vmem:[%s14781_s6 + $0x2a4] ss:$12 sps:$4 sm:$0xff]   ;;  %v10327_v22 = vld [vmem:[%s14781_s6 + $0x368] ss:$12 sps:$4 sm:$0xff]  }
 0x40a   : > { %v9250_v51 = vpop.f32.mrb[36].mxu1  ;;  %5257 = vmatpush1.bf16.msra.mxu0 %v10283_v20  ;;  %9287 = vmatpush3.bf16.msra.mxu1 %v10287_v13  ;;  %v9232_v30 = vpop.f32.mrb[39].mxu0  ;;  %v10318_v20 = vld [vmem:[%s14781_s6 + $0x288] ss:$12 sps:$4 sm:$0xff]   ;;  %v10322_v13 = vld [vmem:[%s14781_s6 + $0x350] ss:$12 sps:$4 sm:$0xff]  }
 0x40b   : > { %v3611_v21 = vadd.f32 %v9230_v57, %v13358_v0  ;;  %v9251_v47 = vpop.f32.mrb[37].mxu1  ;;  %5258 = vmatprep.subr.bf16.mxu0 %v10290_v16  ;;  %9288 = vmatprep.subr.bf16.mxu1 %v10291_v56  ;;  %v10293_v0 = vld [vmem:[%s14781_s6 + $0x210] ss:$12 sps:$4 sm:$0xff]   ;;  %v10326_v16 = vld [vmem:[%s14781_s6 + $0x428] ss:$12 sps:$4 sm:$0xff]  }
 0x40c   : > { %v9252_v23 = vadd.f32 %v9251_v47, %v9250_v51  ;;  %v9253_v10 = vpop.f32.mrb[38].mxu1  ;;  %v10323_v56 = vld [vmem:[%s14781_s6 + $0x2a0] ss:$12 sps:$4 sm:$0xff]   ;;  %v10330_v57 = vld [vmem:[%s14781_s6 + $0x2bc] ss:$12 sps:$4 sm:$0xff]   ;;  %v3701_v47 = vsel %vm1464_vm5, %v13372_v14, 0.0 }
 0x40d   : > { %v9254_v40 = vpop.f32.mrb[39].mxu1  ;;  %v10331_v35 = vld [vmem:[%s14781_s6 + $0x440] ss:$12 sps:$4 sm:$0xff]  }
 0x40e   : > { %v3651_v43 = vadd.f32 %v9252_v23, %v3611_v21  ;;  %5259 = vmatpush1.bf16.msra.mxu0 %v10288_v6  ;;  %9289 = vmatpush3.bf16.msra.mxu1 %v10292_v59  ;;  %v10332_v51 = vld [vmem:[%s14781_s6 + $0x380] ss:$12 sps:$4 sm:$0xff]   ;;  %v10336_v6 = vld [vmem:[%s14781_s6 + $0x458] ss:$12 sps:$4 sm:$0xff]   ;;  %v10333_v59 = vld [vmem:[%s14781_s6 + $0x2d0] ss:$12 sps:$4 sm:$0xff]  }
 0x40f   : > { %5260 = vmatprep.subr.bf16.mxu0 %v10295_v12  ;;  %9290 = vmatprep.subr.bf16.mxu1 %v10296_v24  ;;  %v10335_v30 = vld [vmem:[%s14781_s6 + $0x2d4] ss:$12 sps:$4 sm:$0xff]   ;;  %v3698_v21 = vsel %vm1464_vm5, 0.0, %v13372_v14  ;;  %v10337_v12 = vld [vmem:[%s14781_s6 + $0x398] ss:$12 sps:$4 sm:$0xff]   ;;  %v3713_v40 = vrot.slane %v3701_v47, 1 }
 0x410   : > { %v3681_v44 = vadd.f32 %v3669_v46, %v3651_v43  ;;  %v10328_v46 = vld [vmem:[%s14781_s6 + $0x2b8] ss:$12 sps:$4 sm:$0xff]   ;;  %v10341_v23 = vld [vmem:[%s14781_s6 + $0x470] ss:$12 sps:$4 sm:$0xff]   ;;  %v3712_v10 = vrot.slane %v3698_v21, 1 }
 0x411   : > { %v10340_v24 = vld [vmem:[%s14781_s6 + $0x2ec] ss:$12 sps:$4 sm:$0xff]   ;;  %v10338_v14 = vld [vmem:[%s14781_s6 + $0x2e8] ss:$12 sps:$4 sm:$0xff]   ;;  %v10345_v43 = vld [vmem:[%s14781_s6 + $0x304] ss:$12 sps:$4 sm:$0xff]  }
 0x412   : > { %v3684_v55 = vmax.f32 %v3681_v44, 0.0  ;;  %5261 = vmatpush1.bf16.msra.mxu0 %v10293_v0  ;;  %9291 = vmatpush3.bf16.msra.mxu1 %v10297_v62  ;;  %v3727_v0 = vrot.slane %v3698_v21, 2  ;;  %v3728_v62 = vrot.slane %v3701_v47, 2  ;;  %v3714_v44 = vsel %vm341_vm0, %v3712_v10, %v3713_v40  ;;  %v10401_v21 = vld [vmem:[%s14781_s6 + $0x424] ss:$12 sps:$4 sm:$0xff]  }
 0x413   : > { %5262 = vmatprep.subr.bf16.mxu0 %v10300_v4  ;;  %9292 = vmatprep.subr.bf16.mxu1 %v10301_v2  ;;  %v10346_v4 = vld [vmem:[%s14781_s6 + $0x548] ss:$12 sps:$4 sm:$0xff]   ;;  %v10343_v2 = vld [vmem:[%s14781_s6 + $0x300] ss:$12 sps:$4 sm:$0xff]   ;;  %v10398_v47 = vld [vmem:[%s14781_s6 + $0x650] ss:$12 sps:$4 sm:$0xff]  }
 0x414   : > { %v3687_v8 = vadd.f32 %v3684_v55, %v3678_v11  ;;  %v3729_v11 = vsel %vm355_vm1, %v3727_v0, %v3728_v62  ;;  %v10350_v55 = vld [vmem:[%s14781_s6 + $0x31c] ss:$12 sps:$4 sm:$0xff]   ;;  %v10403_v10 = vld [vmem:[%s14781_s6 + $0x438] ss:$12 sps:$4 sm:$0xff]  }
 0x415   : > { %v10410_v0 = vld [vmem:[%s14781_s6 + $0x698] ss:$12 sps:$4 sm:$0xff]  }
 0x416   : > { %v3693_v36 = vrot.slane %v3687_v8, 6  ;;  %5263 = vmatpush1.bf16.msra.mxu0 %v10298_v32  ;;  %9293 = vmatpush3.bf16.msra.mxu1 %v10302_v52  ;;  %v10347_v32 = vld [vmem:[%s14781_s6 + $0x488] ss:$12 sps:$4 sm:$0xff]   ;;  %v13623_v52 = vpack.c.bf16 %v3713_v40, %v3714_v44  ;;  %v10348_v8 = vld [vmem:[%s14781_s6 + $0x318] ss:$12 sps:$4 sm:$0xff]  }
 0x417   : > { %5264 = vmatprep.subr.bf16.mxu0 %v10305_v49  ;;  %9300 = vmatprep.subr.bf16.mxu1 %v10306_v42  ;;  %v10351_v49 = vld [vmem:[%s14781_s6 + $0x560] ss:$12 sps:$4 sm:$0xff]   ;;  %v13629_v42 = vpack.c.bf16 %v3728_v62, %v3729_v11  ;;  %v10411_v62 = vld [vmem:[%s14781_s6 + $0x468] ss:$12 sps:$4 sm:$0xff]  }
 0x418   : > { %v13504_v18 = vpack.c.bf16 %v3693_v36, %v3693_v36  ;;  %v3699_v39 = vsel %vm1464_vm5, 0.0, %v3693_v36  ;;  %v3702_v5 = vsel %vm1464_vm5, %v3693_v36, 0.0  ;;  %v10352_v36 = vld [vmem:[%s14781_s6 + $0x4a0] ss:$12 sps:$4 sm:$0xff]   ;;  %v10420_v11 = vld [vmem:[%s14781_s6 + $0x49c] ss:$12 sps:$4 sm:$0xff]  }
 0x419   : > { %v3715_v33 = vrot.slane %v3699_v39, 1  ;;  %v3716_v29 = vrot.slane %v3702_v5, 1  ;;  %v3730_v53 = vrot.slane %v3699_v39, 2  ;;  %v3731_v63 = vrot.slane %v3702_v5, 2  ;;  %v10358_v39 = vld [vmem:[%s14781_s6 + $0x348] ss:$12 sps:$4 sm:$0xff]  }
 0x41a   : > { %5265 = vmatpush1.bf16.msra.mxu0 %v10303_v60  ;;  %8836 = vmatmul.mubr.msk.bf16.vlgmr.msra.gmra.mrb[44].mxu1 %vm13376_vm10, %v13504_v18  ;;  %v10356_v60 = vld [vmem:[%s14781_s6 + $0x578] ss:$12 sps:$4 sm:$0xff]   ;;  %v10406_v40 = vld [vmem:[%s14781_s6 + $0x680] ss:$12 sps:$4 sm:$0xff]  }
 0x41b   : > { %9301 = vmatpush3.bf16.msra.mxu1 %v10307_v34  ;;  %5266 = vmatprep.subr.bf16.mxu0 %v10310_v54  ;;  %v3717_v50 = vsel %vm341_vm0, %v3715_v33, %v3716_v29  ;;  %v3732_v41 = vsel %vm355_vm1, %v3730_v53, %v3731_v63  ;;  %v10353_v34 = vld [vmem:[%s14781_s6 + $0x330] ss:$12 sps:$4 sm:$0xff]   ;;  %v10360_v54 = vld [vmem:[%s14781_s6 + $0x34c] ss:$12 sps:$4 sm:$0xff]  }
 0x41c   : > { %9302 = vmatprep.subr.bf16.mxu1 %v10311_v1  ;;  %v13525_v28 = vpack.c.bf16 %v3716_v29, %v3717_v50  ;;  %v13530_v25 = vpack.c.bf16 %v3731_v63, %v3732_v41  ;;  %v10361_v1 = vld [vmem:[%s14781_s6 + $0x590] ss:$12 sps:$4 sm:$0xff]   ;;  %v10366_v29 = vld [vmem:[%s14781_s6 + $0x5a8] ss:$12 sps:$4 sm:$0xff]   ;;  %v10363_v53 = vld [vmem:[%s14781_s6 + $0x360] ss:$12 sps:$4 sm:$0xff]  }
 0x41d   : > { %v10365_v5 = vld [vmem:[%s14781_s6 + $0x364] ss:$12 sps:$4 sm:$0xff]   ;;  %v10370_v63 = vld [vmem:[%s14781_s6 + $0x37c] ss:$12 sps:$4 sm:$0xff]   ;;  %v10372_v41 = vld [vmem:[%s14781_s6 + $0x500] ss:$12 sps:$4 sm:$0xff]  }
 0x41e   : > { %5267 = vmatpush1.bf16.msra.mxu0 %v10308_v38  ;;  %5534 = vmatprep.mubr.bf16.mxu1 %v13525_v28  ;;  %v10362_v33 = vld [vmem:[%s14781_s6 + $0x4d0] ss:$12 sps:$4 sm:$0xff]   ;;  %v10367_v38 = vld [vmem:[%s14781_s6 + $0x4e8] ss:$12 sps:$4 sm:$0xff]   ;;  %v10368_v50 = vld [vmem:[%s14781_s6 + $0x378] ss:$12 sps:$4 sm:$0xff]  }
 0x41f   : > { %9303 = vmatpush3.bf16.msra.mxu1 %v10312_v9  ;;  %5268 = vmatprep.subr.bf16.mxu0 %v10315_v48  ;;  %v10371_v9 = vld [vmem:[%s14781_s6 + $0x5c0] ss:$12 sps:$4 sm:$0xff]  }
 0x420   : > { %9304 = vmatprep.subr.bf16.mxu1 %v10316_v15  ;;  %v10375_v48 = vld [vmem:[%s14781_s6 + $0x394] ss:$12 sps:$4 sm:$0xff]   ;;  %v10373_v15 = vld [vmem:[%s14781_s6 + $0x390] ss:$12 sps:$4 sm:$0xff]  }
 0x421   : > { %v10415_v44 = vld [vmem:[%s14781_s6 + $0x480] ss:$12 sps:$4 sm:$0xff]  }
 0x422   : > { %5269 = vmatpush1.bf16.msra.mxu0 %v10313_v31  ;;  %v10380_v31 = vld [vmem:[%s14781_s6 + $0x3ac] ss:$12 sps:$4 sm:$0xff]  }
 0x423   : > { %9305 = vmatpush3.bf16.msra.mxu1 %v10317_v7  ;;  %5270 = vmatprep.subr.bf16.mxu0 %v10320_v61  ;;  %v10377_v7 = vld [vmem:[%s14781_s6 + $0x518] ss:$12 sps:$4 sm:$0xff]   ;;  %v10381_v61 = vld [vmem:[%s14781_s6 + $0x5f0] ss:$12 sps:$4 sm:$0xff]  }
 0x424   : > { %9306 = vmatprep.subr.bf16.mxu1 %v10321_v27  ;;  %v10378_v27 = vld [vmem:[%s14781_s6 + $0x3a8] ss:$12 sps:$4 sm:$0xff]  }
 0x426   : > { %5271 = vmatpush1.bf16.msra.mxu0 %v10318_v20  ;;  %v10385_v20 = vld [vmem:[%s14781_s6 + $0x3c4] ss:$12 sps:$4 sm:$0xff]  }
 0x427   : > { %9307 = vmatpush3.bf16.msra.mxu1 %v10322_v13  ;;  %5272 = vmatprep.subr.bf16.mxu0 %v10325_v37  ;;  %v10382_v13 = vld [vmem:[%s14781_s6 + $0x530] ss:$12 sps:$4 sm:$0xff]   ;;  %v10383_v37 = vld [vmem:[%s14781_s6 + $0x3c0] ss:$12 sps:$4 sm:$0xff]  }
 0x428   : > { %9308 = vmatprep.subr.bf16.mxu1 %v10326_v16  ;;  %v10389_v16 = vld [vmem:[%s14781_s6 + $0x3dc] ss:$12 sps:$4 sm:$0xff]  }
 0x42a   : > { %5273 = vmatpush1.bf16.msra.mxu0 %v10323_v56  ;;  %v10386_v56 = vld [vmem:[%s14781_s6 + $0x608] ss:$12 sps:$4 sm:$0xff]  }
 0x42b   : > { %9309 = vmatpush3.bf16.msra.mxu1 %v10327_v22  ;;  %5274 = vmatprep.subr.bf16.mxu0 %v10330_v57  ;;  %v10868_v22 = vmov 0.0   ;;  %v10387_v57 = vld [vmem:[%s14781_s6 + $0x3d8] ss:$12 sps:$4 sm:$0xff]  }
 0x42c   : > { %9310 = vmatprep.subr.bf16.mxu1 %v10331_v35  ;;  %v10393_v35 = vld [vmem:[%s14781_s6 + $0x3f4] ss:$12 sps:$4 sm:$0xff]  }
 0x42e   : > { %5275 = vmatpush1.bf16.msra.mxu0 %v10328_v46  ;;  %v10390_v46 = vld [vmem:[%s14781_s6 + $0x620] ss:$12 sps:$4 sm:$0xff]  }
 0x42f   : > { %9311 = vmatpush3.bf16.msra.mxu1 %v10332_v51  ;;  %5276 = vmatprep.subr.bf16.mxu0 %v10335_v30  ;;  %v10391_v51 = vld [vmem:[%s14781_s6 + $0x3f0] ss:$12 sps:$4 sm:$0xff]   ;;  %v10397_v30 = vld [vmem:[%s14781_s6 + $0x40c] ss:$12 sps:$4 sm:$0xff]  }
 0x430   : > { %9312 = vmatprep.subr.bf16.mxu1 %v10336_v6  ;;  %v10394_v6 = vld [vmem:[%s14781_s6 + $0x638] ss:$12 sps:$4 sm:$0xff]  }
 0x432   : > { %5277 = vmatpush1.bf16.msra.mxu0 %v10333_v59  ;;  %v10395_v59 = vld [vmem:[%s14781_s6 + $0x408] ss:$12 sps:$4 sm:$0xff]  }
 0x433   : > { %9313 = vmatpush3.bf16.msra.mxu1 %v10337_v12  ;;  %5278 = vmatprep.subr.bf16.mxu0 %v10340_v24  ;;  %v10399_v12 = vld [vmem:[%s14781_s6 + $0x420] ss:$12 sps:$4 sm:$0xff]   ;;  %v10405_v24 = vld [vmem:[%s14781_s6 + $0x43c] ss:$12 sps:$4 sm:$0xff]  }
 0x434   : > { %9314 = vmatprep.subr.bf16.mxu1 %v10341_v23  ;;  %v10402_v23 = vld [vmem:[%s14781_s6 + $0x668] ss:$12 sps:$4 sm:$0xff]  }
 0x436   : > { %5279 = vmatpush1.bf16.msra.mxu0 %v10338_v14  ;;  %v10409_v14 = vld [vmem:[%s14781_s6 + $0x454] ss:$12 sps:$4 sm:$0xff]  }
 0x437   : > { %9315 = vmatpush3.bf16.msra.mxu1 %v10342_v45  ;;  %5291 = vmatprep.subr.bf16.mxu0 %v10345_v43  ;;  %v10407_v45 = vld [vmem:[%s14781_s6 + $0x450] ss:$12 sps:$4 sm:$0xff]   ;;  %v10413_v43 = vld [vmem:[%s14781_s6 + $0x46c] ss:$12 sps:$4 sm:$0xff]  }
 0x438   : > { %9322 = vmatprep.subr.bf16.mxu1 %v10346_v4  ;;  %v10417_v4 = vld [vmem:[%s14781_s6 + $0x484] ss:$12 sps:$4 sm:$0xff]  }
 0x439   : > { %8824 = vmatmul.mubr.msk.bf16.vlgmr.msra.gmra.mrb[40].mxu0 %vm13376_vm10, %v13504_v18  ;;  %v10357_v18 = vld [vmem:[%s14781_s6 + $0x4b8] ss:$12 sps:$4 sm:$0xff]  }
 0x43a   : > { %5292 = vmatpush1.bf16.msra.mxu0 %v10343_v2  ;;  %5323 = vmatprep.mubr.bf16.mxu0 %v13525_v28  ;;  %v10376_v28 = vld [vmem:[%s14781_s6 + $0x5d8] ss:$12 sps:$4 sm:$0xff]   ;;  %v10414_v2 = vld [vmem:[%s14781_s6 + $0x6b0] ss:$12 sps:$4 sm:$0xff]  }
 0x43b   : > { %5535 = vmatmul.mubr.bf16.vlgmr.msra.gmra.mrb[48].mxu1 %v13623_v52  ;;  %5293 = vmatprep.subr.bf16.mxu0 %v10350_v55  ;;  %v10418_v55 = vld [vmem:[%s14781_s6 + $0x498] ss:$12 sps:$4 sm:$0xff]  }
 0x43c   : > { %9323 = vmatpush3.bf16.msra.mxu1 %v10347_v32  ;;  %5575 = vmatprep.mubr.bf16.mxu1 %v13629_v42  ;;  %v10423_v32 = vld [vmem:[%s14781_s6 + $0x4b4] ss:$12 sps:$4 sm:$0xff]  }
 0x43d   : > { %9324 = vmatprep.subr.bf16.mxu1 %v10351_v49  ;;  %v10421_v49 = vld [vmem:[%s14781_s6 + $0x4b0] ss:$12 sps:$4 sm:$0xff]  }
 0x43e   : > { %5294 = vmatpush1.bf16.msra.mxu0 %v10348_v8  ;;  %v10429_v8 = vld [vmem:[%s14781_s6 + $0x4e4] ss:$12 sps:$4 sm:$0xff]  }
 0x43f   : > { %5295 = vmatprep.subr.bf16.mxu0 %v10355_v58  ;;  %v10427_v58 = vld [vmem:[%s14781_s6 + $0x4e0] ss:$12 sps:$4 sm:$0xff]  }
 0x440   : > { %9325 = vmatpush3.bf16.msra.mxu1 %v10352_v36  ;;  %v10432_v36 = vld [vmem:[%s14781_s6 + $0x4fc] ss:$12 sps:$4 sm:$0xff]  }
 0x441   : > { %9326 = vmatprep.subr.bf16.mxu1 %v10356_v60  ;;  %v10430_v60 = vld [vmem:[%s14781_s6 + $0x4f8] ss:$12 sps:$4 sm:$0xff]  }
 0x442   : > { %5296 = vmatpush1.bf16.msra.mxu0 %v10353_v34  ;;  %v10435_v34 = vld [vmem:[%s14781_s6 + $0x514] ss:$12 sps:$4 sm:$0xff]  }
 0x443   : > { %5297 = vmatprep.subr.bf16.mxu0 %v10360_v54  ;;  %v10433_v54 = vld [vmem:[%s14781_s6 + $0x510] ss:$12 sps:$4 sm:$0xff]  }
 0x444   : > { %9327 = vmatpush3.bf16.msra.mxu1 %v10357_v18  ;;  %v10438_v18 = vld [vmem:[%s14781_s6 + $0x52c] ss:$12 sps:$4 sm:$0xff]  }
 0x445   : > { %9328 = vmatprep.subr.bf16.mxu1 %v10361_v1  ;;  %v10436_v1 = vld [vmem:[%s14781_s6 + $0x528] ss:$12 sps:$4 sm:$0xff]  }
 0x446   : > { %5298 = vmatpush1.bf16.msra.mxu0 %v10358_v39  ;;  %v10441_v39 = vld [vmem:[%s14781_s6 + $0x544] ss:$12 sps:$4 sm:$0xff]  }
 0x447   : > { %5299 = vmatprep.subr.bf16.mxu0 %v10365_v5  ;;  %v10439_v5 = vld [vmem:[%s14781_s6 + $0x540] ss:$12 sps:$4 sm:$0xff]  }
 0x448   : > { %9329 = vmatpush3.bf16.msra.mxu1 %v10362_v33  ;;  %v10444_v33 = vld [vmem:[%s14781_s6 + $0x55c] ss:$12 sps:$4 sm:$0xff]  }
 0x449   : > { %9330 = vmatprep.subr.bf16.mxu1 %v10366_v29  ;;  %v10442_v29 = vld [vmem:[%s14781_s6 + $0x558] ss:$12 sps:$4 sm:$0xff]  }
 0x44a   : > { %5300 = vmatpush1.bf16.msra.mxu0 %v10363_v53  ;;  %v10447_v53 = vld [vmem:[%s14781_s6 + $0x574] ss:$12 sps:$4 sm:$0xff]  }
 0x44b   : > { %5301 = vmatprep.subr.bf16.mxu0 %v10370_v63  ;;  %v10445_v63 = vld [vmem:[%s14781_s6 + $0x570] ss:$12 sps:$4 sm:$0xff]  }
 0x44c   : > { %9331 = vmatpush3.bf16.msra.mxu1 %v10367_v38  ;;  %v10450_v38 = vld [vmem:[%s14781_s6 + $0x58c] ss:$12 sps:$4 sm:$0xff]  }
 0x44d   : > { %9332 = vmatprep.subr.bf16.mxu1 %v10371_v9  ;;  %v10448_v9 = vld [vmem:[%s14781_s6 + $0x588] ss:$12 sps:$4 sm:$0xff]  }
 0x44e   : > { %5302 = vmatpush1.bf16.msra.mxu0 %v10368_v50  ;;  %v10453_v50 = vld [vmem:[%s14781_s6 + $0x5a4] ss:$12 sps:$4 sm:$0xff]  }
 0x44f   : > { %5303 = vmatprep.subr.bf16.mxu0 %v10375_v48  ;;  %v10451_v48 = vld [vmem:[%s14781_s6 + $0x5a0] ss:$12 sps:$4 sm:$0xff]  }
 0x450   : > { %9333 = vmatpush3.bf16.msra.mxu1 %v10372_v41  ;;  %v10456_v41 = vld [vmem:[%s14781_s6 + $0x5bc] ss:$12 sps:$4 sm:$0xff]  }
 0x451   : > { %9334 = vmatprep.subr.bf16.mxu1 %v10376_v28  ;;  %v10454_v28 = vld [vmem:[%s14781_s6 + $0x5b8] ss:$12 sps:$4 sm:$0xff]  }
 0x452   : > { %5304 = vmatpush1.bf16.msra.mxu0 %v10373_v15  ;;  %v10459_v15 = vld [vmem:[%s14781_s6 + $0x5d4] ss:$12 sps:$4 sm:$0xff]  }
 0x453   : > { %5305 = vmatprep.subr.bf16.mxu0 %v10380_v31  ;;  %v10457_v31 = vld [vmem:[%s14781_s6 + $0x5d0] ss:$12 sps:$4 sm:$0xff]  }
 0x454   : > { %9335 = vmatpush3.bf16.msra.mxu1 %v10377_v7  ;;  %v10462_v7 = vld [vmem:[%s14781_s6 + $0x5ec] ss:$12 sps:$4 sm:$0xff]  }
 0x455   : > { %9336 = vmatprep.subr.bf16.mxu1 %v10381_v61  ;;  %v10460_v61 = vld [vmem:[%s14781_s6 + $0x5e8] ss:$12 sps:$4 sm:$0xff]  }
 0x456   : > { %5306 = vmatpush1.bf16.msra.mxu0 %v10378_v27  ;;  %v10465_v27 = vld [vmem:[%s14781_s6 + $0x604] ss:$12 sps:$4 sm:$0xff]  }
 0x457   : > { %5307 = vmatprep.subr.bf16.mxu0 %v10385_v20  ;;  %v10463_v20 = vld [vmem:[%s14781_s6 + $0x600] ss:$12 sps:$4 sm:$0xff]  }
 0x458   : > { %9337 = vmatpush3.bf16.msra.mxu1 %v10382_v13  ;;  %v10468_v13 = vld [vmem:[%s14781_s6 + $0x61c] ss:$12 sps:$4 sm:$0xff]  }
 0x459   : > { %9683 = vmatprep.subr.bf16.mxu1 %v10868_v22 }
 0x45a   : > { %5308 = vmatpush1.bf16.msra.mxu0 %v10383_v37  ;;  %v10466_v37 = vld [vmem:[%s14781_s6 + $0x618] ss:$12 sps:$4 sm:$0xff]  }
 0x45b   : > { %5576 = vmatmul.mubr.bf16.vlgmr.msra.gmra.mrb[52].mxu1 %v13417_v26  ;;  %5309 = vmatprep.subr.bf16.mxu0 %v10389_v16  ;;  %v15001_v16 = vmov 0  }
 0x45c   : > { %9684 = vmatpush3.bf16.msra.mxu1 %v10386_v56  ;;  %9699 = vmatprep.mubr.msk.bf16.mxu1 %vm10869_vm11, %v10868_v22  ;;  %v10471_v56 = vld [vmem:[%s14781_s6 + $0x634] ss:$12 sps:$4 sm:$0xff]  }
 0x45d   : > { %9685 = vmatprep.subr.bf16.mxu1 %v10868_v22 }
 0x45e   : > { %5310 = vmatpush1.bf16.msra.mxu0 %v10387_v57  ;;  %v10472_v57 = vld [vmem:[%s14781_s6 + $0x648] ss:$12 sps:$4 sm:$0xff]  }
 0x45f   : > { %5311 = vmatprep.subr.bf16.mxu0 %v10393_v35  ;;  %v10477_v35 = vld [vmem:[%s14781_s6 + $0x664] ss:$12 sps:$4 sm:$0xff]  }
 0x460   : > { %9686 = vmatpush3.bf16.msra.mxu1 %v10390_v46  ;;  %v10475_v46 = vld [vmem:[%s14781_s6 + $0x660] ss:$12 sps:$4 sm:$0xff]  }
 0x461   : > { %9687 = vmatprep.subr.bf16.mxu1 %v10868_v22 }
 0x462   : > { %5312 = vmatpush1.bf16.msra.mxu0 %v10391_v51  ;;  %v10480_v51 = vld [vmem:[%s14781_s6 + $0x67c] ss:$12 sps:$4 sm:$0xff]  }
 0x463   : > { %5313 = vmatprep.subr.bf16.mxu0 %v10397_v30  ;;  %v10478_v30 = vld [vmem:[%s14781_s6 + $0x678] ss:$12 sps:$4 sm:$0xff]  }
 0x464   : > { %9688 = vmatpush3.bf16.msra.mxu1 %v10394_v6  ;;  %v10483_v6 = vld [vmem:[%s14781_s6 + $0x694] ss:$12 sps:$4 sm:$0xff]  }
 0x465   : > { %9689 = vmatprep.subr.bf16.mxu1 %v10868_v22 }
 0x466   : > { %5314 = vmatpush1.bf16.msra.mxu0 %v10395_v59 }
 0x467   : > { %5315 = vmatprep.subr.bf16.mxu0 %v10401_v21  ;;  %v13927_v21 = vld [vmem:[%s14782_s7] sm:$0x7] }
 0x468   : > { %9690 = vmatpush3.bf16.msra.mxu1 %v10398_v47 }
 0x469   : > { %9691 = vmatprep.subr.bf16.mxu1 %v10868_v22 }
 0x46a   : > { %5316 = vmatpush1.bf16.msra.mxu0 %v10399_v12 }
 0x46b   : > { %5317 = vmatprep.subr.bf16.mxu0 %v10405_v24 }
 0x46c   : > { %9692 = vmatpush3.bf16.msra.mxu1 %v10402_v23  ;;  %v10481_v23 = vld [vmem:[%s14781_s6 + $0x690] ss:$12 sps:$4 sm:$0xff]  }
 0x46d   : > { %9693 = vmatprep.subr.bf16.mxu1 %v10868_v22 }
 0x46e   : > { %5318 = vmatpush1.bf16.msra.mxu0 %v10403_v10 }
 0x46f   : > { %5319 = vmatprep.subr.bf16.mxu0 %v10409_v14  ;;  %v10486_v14 = vld [vmem:[%s14781_s6 + $0x6ac] ss:$12 sps:$4 sm:$0xff]  }
 0x470   : > { %9694 = vmatpush3.bf16.msra.mxu1 %v10406_v40  ;;  %v4049_v40 = vrot.slane %v13927_v21, %v15000_v19  ;;  %v10489_v19 = vld [vmem:[%s14783_s8 + $0x240] sm:$0xff]  }
 0x471   : > { %9695 = vmatprep.subr.bf16.mxu1 %v10868_v22 }
 0x472   : > { %5320 = vmatpush1.bf16.msra.mxu0 %v10407_v45 }
 0x473   : > { %5321 = vmatprep.subr.bf16.mxu0 %v10413_v43 }
 0x474   : > { %9696 = vmatpush3.bf16.msra.mxu1 %v10410_v0  ;;  %v10484_v0 = vld [vmem:[%s14781_s6 + $0x6a8] ss:$12 sps:$4 sm:$0xff]  }
 0x475   : > { %9697 = vmatprep.subr.bf16.mxu1 %v10868_v22  ;;  %v10469_v22 = vld [vmem:[%s14781_s6 + $0x630] ss:$12 sps:$4 sm:$0xff]  }
 0x476   : > { %5322 = vmatpush1.bf16.msra.mxu0 %v10411_v62  ;;  %v10487_v62 = vld [vmem:[%s14783_s8 + $0x40] sm:$0xff]  }
 0x477   : > { %5334 = vmatprep.subr.bf16.mxu0 %v10417_v4  ;;  %v10488_v4 = vld [vmem:[%s14783_s8] sm:$0xff]  }
 0x478   : > { %9698 = vmatpush3.bf16.msra.mxu1 %v10414_v2  ;;  %v10490_v2 = vld [vmem:[%s14783_s8 + $0x200] sm:$0xff]  }
 0x479   : > { %5324 = vmatmul.mubr.bf16.vlgmr.msra.gmra.mrb[40].mxu0 %v13623_v52  ;;  %v10426_v52 = vld [vmem:[%s14781_s6 + $0x4cc] ss:$12 sps:$4 sm:$0xff]   ;;  %9353 = vmatprep.subr.bf16.mxu1 %v10487_v62 }
 0x47a   : > { %5335 = vmatpush1.bf16.msra.mxu0 %v10415_v44  ;;  %5366 = vmatprep.mubr.bf16.mxu0 %v13629_v42  ;;  %v10424_v42 = vld [vmem:[%s14781_s6 + $0x4c8] ss:$12 sps:$4 sm:$0xff]  }
 0x47b   : > { %9700 = vmatmul.mubr.bf16.vlgmr.msra.gmra.mrb[56].mxu1 %v13530_v25  ;;  %5336 = vmatprep.subr.bf16.mxu0 %v10420_v11  ;;  %v10491_v44 = vld [vmem:[%s14783_s8 + $0x48] sm:$0xff]  }
 0x47c   : > { %v10493_v11 = vld [vmem:[%s14783_s8 + $0x248] sm:$0xff]   ;;  %9354 = vmatpush3.bf16.msra.mxu1 %v10488_v4 }
 0x47d   : > { %9355 = vmatprep.subr.bf16.mxu1 %v10491_v44  ;;  %v4041_v44 = vrot.slane %v13927_v21, %v14996_v3 }
 0x47e   : > { %5337 = vmatpush1.bf16.msra.mxu0 %v10418_v55  ;;  %v10492_v55 = vld [vmem:[%s14783_s8 + $0x8] sm:$0xff]  }
 0x47f   : > { %5338 = vmatprep.subr.bf16.mxu0 %v10423_v32  ;;  %v10494_v32 = vld [vmem:[%s14783_s8 + $0x208] sm:$0xff]  }
 0x480   : > { %9356 = vmatpush3.bf16.msra.mxu1 %v10492_v55 }
 0x482   : > { %5339 = vmatpush1.bf16.msra.mxu0 %v10421_v49  ;;  %v10497_v49 = vld [vmem:[%s14783_s8 + $0x250] sm:$0xff]  }
 0x483   : > { %5340 = vmatprep.subr.bf16.mxu0 %v10426_v52  ;;  %v10496_v52 = vld [vmem:[%s14783_s8 + $0x10] sm:$0xff]  }
 0x486   : > { %5341 = vmatpush1.bf16.msra.mxu0 %v10424_v42  ;;  %v10498_v42 = vld [vmem:[%s14783_s8 + $0x210] sm:$0xff]  }
 0x487   : > { %5342 = vmatprep.subr.bf16.mxu0 %v10429_v8  ;;  %v10499_v8 = vld [vmem:[%s14783_s8 + $0x58] sm:$0xff]  }
 0x48a   : > { %5343 = vmatpush1.bf16.msra.mxu0 %v10427_v58  ;;  %v10501_v58 = vld [vmem:[%s14783_s8 + $0x258] sm:$0xff]  }
 0x48b   : > { %5344 = vmatprep.subr.bf16.mxu0 %v10432_v36  ;;  %v10500_v36 = vld [vmem:[%s14783_s8 + $0x18] sm:$0xff]  }
 0x48e   : > { %5345 = vmatpush1.bf16.msra.mxu0 %v10430_v60  ;;  %v10502_v60 = vld [vmem:[%s14783_s8 + $0x218] sm:$0xff]  }
 0x48f   : > { %5346 = vmatprep.subr.bf16.mxu0 %v10435_v34  ;;  %v10503_v34 = vld [vmem:[%s14783_s8 + $0x60] sm:$0xff]  }
 0x492   : > { %5347 = vmatpush1.bf16.msra.mxu0 %v10433_v54  ;;  %v10505_v54 = vld [vmem:[%s14783_s8 + $0x260] sm:$0xff]  }
 0x493   : > { %5348 = vmatprep.subr.bf16.mxu0 %v10438_v18  ;;  %v10504_v18 = vld [vmem:[%s14783_s8 + $0x20] sm:$0xff]  }
 0x496   : > { %5349 = vmatpush1.bf16.msra.mxu0 %v10436_v1  ;;  %v10506_v1 = vld [vmem:[%s14783_s8 + $0x220] sm:$0xff]  }
 0x497   : > { %5350 = vmatprep.subr.bf16.mxu0 %v10441_v39  ;;  %v10507_v39 = vld [vmem:[%s14783_s8 + $0x68] sm:$0xff]  }
 0x49a   : > { %5351 = vmatpush1.bf16.msra.mxu0 %v10439_v5  ;;  %v10509_v5 = vld [vmem:[%s14783_s8 + $0x268] sm:$0xff]  }
 0x49b   : > { %5352 = vmatprep.subr.bf16.mxu0 %v10444_v33  ;;  %v10508_v33 = vld [vmem:[%s14783_s8 + $0x28] sm:$0xff]  }
 0x49e   : > { %5353 = vmatpush1.bf16.msra.mxu0 %v10442_v29  ;;  %v10510_v29 = vld [vmem:[%s14783_s8 + $0x228] sm:$0xff]  }
 0x49f   : > { %5354 = vmatprep.subr.bf16.mxu0 %v10447_v53 }
 0x4a2   : > { %5355 = vmatpush1.bf16.msra.mxu0 %v10445_v63 }
 0x4a3   : > { %5356 = vmatprep.subr.bf16.mxu0 %v10450_v38 }
 0x4a6   : > { %5357 = vmatpush1.bf16.msra.mxu0 %v10448_v9 }
 0x4a7   : > { %5358 = vmatprep.subr.bf16.mxu0 %v10453_v50 }
 0x4aa   : > { %5359 = vmatpush1.bf16.msra.mxu0 %v10451_v48 }
 0x4ab   : > { %5360 = vmatprep.subr.bf16.mxu0 %v10456_v41 }
 0x4ae   : > { %5361 = vmatpush1.bf16.msra.mxu0 %v10454_v28 }
 0x4af   : > { %5362 = vmatprep.subr.bf16.mxu0 %v10459_v15 }
 0x4b2   : > { %5363 = vmatpush1.bf16.msra.mxu0 %v10457_v31 }
 0x4b3   : > { %5364 = vmatprep.subr.bf16.mxu0 %v10462_v7 }
 0x4b6   : > { %5365 = vmatpush1.bf16.msra.mxu0 %v10460_v61 }
 0x4b7   : > { %5377 = vmatprep.subr.bf16.mxu0 %v10465_v27 }
 0x4b9   : > { %5367 = vmatmul.mubr.bf16.vlgmr.msra.gmra.mrb[40].mxu0 %v13417_v26  ;;  %v10474_v26 = vld [vmem:[%s14781_s6 + $0x64c] ss:$12 sps:$4 sm:$0xff]  }
 0x4ba   : > { %5378 = vmatpush1.bf16.msra.mxu0 %v10463_v20  ;;  %5409 = vmatprep.mubr.bf16.mxu0 %v15001_v16 }
 0x4bb   : > { %5379 = vmatprep.subr.bf16.mxu0 %v10468_v13 }
 0x4be   : > { %5380 = vmatpush1.bf16.msra.mxu0 %v10466_v37 }
 0x4bf   : > { %5381 = vmatprep.subr.bf16.mxu0 %v10471_v56 }
 0x4c2   : > { %5382 = vmatpush1.bf16.msra.mxu0 %v10469_v22 }
 0x4c3   : > { %5383 = vmatprep.subr.bf16.mxu0 %v10474_v26  ;;  %v10511_v26 = vld [vmem:[%s14783_s8 + $0x70] sm:$0xff]  }
 0x4c6   : > { %5384 = vmatpush1.bf16.msra.mxu0 %v10472_v57 }
 0x4c7   : > { %5385 = vmatprep.subr.bf16.mxu0 %v10477_v35 }
 0x4ca   : > { %5386 = vmatpush1.bf16.msra.mxu0 %v10475_v46  ;;  %v10512_v46 = vld [vmem:[%s14783_s8 + $0x30] sm:$0xff]  }
 0x4cb   : > { %5387 = vmatprep.subr.bf16.mxu0 %v10480_v51  ;;  %v10513_v51 = vld [vmem:[%s14783_s8 + $0x270] sm:$0xff]  }
 0x4cc   : > { %v9272_v59 = vpop.f32.mrb[40].mxu1 }
 0x4cd   : > { %v9273_v47 = vpop.f32.mrb[41].mxu1 }
 0x4ce   : > { %5388 = vmatpush1.bf16.msra.mxu0 %v10478_v30  ;;  %v13929_v12 = vadd.f32 %v9273_v47, %v9272_v59  ;;  %v9275_v24 = vpop.f32.mrb[42].mxu1 }
 0x4cf   : > { %v9276_v10 = vpop.f32.mrb[43].mxu1  ;;  %5389 = vmatprep.subr.bf16.mxu0 %v10483_v6 }
 0x4d0   : > { %v9277_v45 = vadd.f32 %v9276_v10, %v9275_v24  ;;  %v5455_v38 = vadd.f32 %v13929_v12, %v4049_v40  ;;  %v10514_v12 = vld [vmem:[%s14783_s8 + $0x230] sm:$0xff]   ;;  %v10515_v24 = vld [vmem:[%s14783_s8 + $0x78] sm:$0xff]  }
 0x4d1   : > { %v10517_v10 = vld [vmem:[%s14783_s8 + $0x278] sm:$0xff]  }
 0x4d2   : > { %v5458_v43 = vadd.f32 %v9277_v45, %v4049_v40  ;;  %5390 = vmatpush1.bf16.msra.mxu0 %v10481_v23  ;;  %v10516_v23 = vld [vmem:[%s14783_s8 + $0x38] sm:$0xff]   ;;  %v10519_v40 = vld [vmem:[%s14783_s8 + $0xc0] sm:$0xff]  }
 0x4d3   : > { %5391 = vmatprep.subr.bf16.mxu0 %v10486_v14  ;;  %v10518_v14 = vld [vmem:[%s14783_s8 + $0x238] sm:$0xff]   ;;  %v10521_v45 = vld [vmem:[%s14783_s8 + $0x340] sm:$0xff]  }
 0x4d6   : > { %5392 = vmatpush1.bf16.msra.mxu0 %v10484_v0 }
 0x4d7   : > { %9441 = vmatprep.subr.bf16.mxu0 %v10489_v19 }
 0x4d9   : > { %5410 = vmatmul.mubr.bf16.vlgmr.msra.gmra.mrb[40].mxu0 %v13530_v25  ;;  %v10495_v25 = vld [vmem:[%s14783_s8 + $0x50] sm:$0xff]  }
 0x4da   : > { %9442 = vmatpush3.bf16.msra.mxu0 %v10490_v2  ;;  %9357 = vmatprep.subr.bf16.mxu1 %v10495_v25 }
 0x4db   : > { %9443 = vmatprep.subr.bf16.mxu0 %v10493_v11  ;;  %9358 = vmatpush3.bf16.msra.mxu1 %v10496_v52  ;;  %v4045_v11 = vrot.slane %v13927_v21, %v14997_v17 }
 0x4dc   : > { %9359 = vmatprep.subr.bf16.mxu1 %v10499_v8 }
 0x4de   : > { %9444 = vmatpush3.bf16.msra.mxu0 %v10494_v32 }
 0x4df   : > { %9445 = vmatprep.subr.bf16.mxu0 %v10497_v49  ;;  %9360 = vmatpush3.bf16.msra.mxu1 %v10500_v36 }
 0x4e0   : > { %9361 = vmatprep.subr.bf16.mxu1 %v10503_v34 }
 0x4e2   : > { %9446 = vmatpush3.bf16.msra.mxu0 %v10498_v42 }
 0x4e3   : > { %9447 = vmatprep.subr.bf16.mxu0 %v10501_v58  ;;  %9362 = vmatpush3.bf16.msra.mxu1 %v10504_v18  ;;  %v10520_v18 = vld [vmem:[%s14783_s8 + $0x80] sm:$0xff]  }
 0x4e4   : > { %9363 = vmatprep.subr.bf16.mxu1 %v10507_v39 }
 0x4e6   : > { %9448 = vmatpush3.bf16.msra.mxu0 %v10502_v60 }
 0x4e7   : > { %9449 = vmatprep.subr.bf16.mxu0 %v10505_v54  ;;  %9364 = vmatpush3.bf16.msra.mxu1 %v10508_v33 }
 0x4e8   : > { %9365 = vmatprep.subr.bf16.mxu1 %v10511_v26  ;;  %v10541_v26 = vld [vmem:[%s14783_s8 + $0x368] sm:$0xff]  }
 0x4ea   : > { %9450 = vmatpush3.bf16.msra.mxu0 %v10506_v1 }
 0x4eb   : > { %9451 = vmatprep.subr.bf16.mxu0 %v10509_v5  ;;  %9366 = vmatpush3.bf16.msra.mxu1 %v10512_v46  ;;  %v10542_v46 = vld [vmem:[%s14783_s8 + $0x328] sm:$0xff]  }
 0x4ec   : > { %9367 = vmatprep.subr.bf16.mxu1 %v10515_v24  ;;  %v10551_v24 = vld [vmem:[%s14783_s8 + $0x140] sm:$0xff]  }
 0x4ed   : > { %v9294_v53 = vpop.f32.mrb[44].mxu1 }
 0x4ee   : > { %v9295_v63 = vpop.f32.mrb[45].mxu1  ;;  %9452 = vmatpush3.bf16.msra.mxu0 %v10510_v29  ;;  %v10523_v29 = vld [vmem:[%s14783_s8 + $0xc8] sm:$0xff]  }
 0x4ef   : > { %v9296_v9 = vadd.f32 %v9295_v63, %v9294_v53  ;;  %v9297_v50 = vpop.f32.mrb[46].mxu1  ;;  %9453 = vmatprep.subr.bf16.mxu0 %v10513_v51  ;;  %9368 = vmatpush3.bf16.msra.mxu1 %v10516_v23  ;;  %v10522_v53 = vld [vmem:[%s14783_s8 + $0x300] sm:$0xff]   ;;  %v10545_v51 = vld [vmem:[%s14783_s8 + $0x370] sm:$0xff]   ;;  %v10550_v23 = vld [vmem:[%s14783_s8 + $0x338] sm:$0xff]  }
 0x4f0   : > { %v9298_v48 = vpop.f32.mrb[47].mxu1  ;;  %9375 = vmatprep.subr.bf16.mxu1 %v10519_v40  ;;  %v10553_v40 = vld [vmem:[%s14783_s8 + $0x440] sm:$0xff]  }
 0x4f1   : > { %v5496_v41 = vadd.f32 %v9296_v9, %v5455_v38  ;;  %v9299_v28 = vadd.f32 %v9298_v48, %v9297_v50  ;;  %v10525_v9 = vld [vmem:[%s14783_s8 + $0x348] sm:$0xff]   ;;  %v10527_v48 = vld [vmem:[%s14783_s8 + $0xd0] sm:$0xff]  }
 0x4f2   : > { %9454 = vmatpush3.bf16.msra.mxu0 %v10514_v12  ;;  %v10524_v50 = vld [vmem:[%s14783_s8 + $0x88] sm:$0xff]   ;;  %v10548_v12 = vld [vmem:[%s14783_s8 + $0xb8] sm:$0xff]  }
 0x4f3   : > { %v5499_v15 = vadd.f32 %v9299_v28, %v5458_v43  ;;  %9455 = vmatprep.subr.bf16.mxu0 %v10517_v10  ;;  %v10529_v28 = vld [vmem:[%s14783_s8 + $0x350] sm:$0xff]  }
 0x4f6   : > { %9456 = vmatpush3.bf16.msra.mxu0 %v10518_v14 }
 0x4f7   : > { %9485 = vmatprep.subr.bf16.mxu0 %v10521_v45  ;;  %v10552_v45 = vld [vmem:[%s14783_s8 + $0x100] sm:$0xff]  }
 0x50e   : > { %v9316_v31 = vpop.f32.mrb[48].mxu1 }
 0x50f   : > { %v9317_v7 = vpop.f32.mrb[49].mxu1 }
 0x510   : > { %v9318_v61 = vadd.f32 %v9317_v7, %v9316_v31  ;;  %v9319_v27 = vpop.f32.mrb[50].mxu1  ;;  %v10531_v31 = vld [vmem:[%s14783_s8 + $0xd8] sm:$0xff]   ;;  %v10530_v7 = vld [vmem:[%s14783_s8 + $0x310] sm:$0xff]  }
 0x511   : > { %v9320_v20 = vpop.f32.mrb[51].mxu1 }
 0x512   : > { %v5537_v13 = vadd.f32 %v9318_v61, %v5496_v41  ;;  %v9321_v37 = vadd.f32 %v9320_v20, %v9319_v27  ;;  %v10526_v41 = vld [vmem:[%s14783_s8 + $0x308] sm:$0xff]   ;;  %v10533_v61 = vld [vmem:[%s14783_s8 + $0x358] sm:$0xff]   ;;  %v10535_v20 = vld [vmem:[%s14783_s8 + $0xe0] sm:$0xff]  }
 0x513   : > { %v10532_v27 = vld [vmem:[%s14783_s8 + $0x98] sm:$0xff]  }
 0x514   : > { %v5540_v16 = vadd.f32 %v9321_v37, %v5499_v15  ;;  %v10528_v15 = vld [vmem:[%s14783_s8 + $0x90] sm:$0xff]   ;;  %v10537_v37 = vld [vmem:[%s14783_s8 + $0x360] sm:$0xff]  }
 0x52e   : > { %v9338_v56 = vpop.f32.mrb[52].mxu1 }
 0x52f   : > { %v9339_v22 = vpop.f32.mrb[53].mxu1 }
 0x530   : > { %v9340_v57 = vadd.f32 %v9339_v22, %v9338_v56  ;;  %v9341_v35 = vpop.f32.mrb[54].mxu1  ;;  %v10539_v56 = vld [vmem:[%s14783_s8 + $0xe8] sm:$0xff]   ;;  %v10538_v22 = vld [vmem:[%s14783_s8 + $0x320] sm:$0xff]  }
 0x531   : > { %v9342_v30 = vpop.f32.mrb[55].mxu1 }
 0x532   : > { %v9343_v6 = vadd.f32 %v9342_v30, %v9341_v35  ;;  %v5578_v59 = vadd.f32 %v9340_v57, %v5537_v13  ;;  %v10534_v13 = vld [vmem:[%s14783_s8 + $0x318] sm:$0xff]   ;;  %v10540_v57 = vld [vmem:[%s14783_s8 + $0xa8] sm:$0xff]   ;;  %v10543_v35 = vld [vmem:[%s14783_s8 + $0xf0] sm:$0xff]  }
 0x533   : > { %v10544_v30 = vld [vmem:[%s14783_s8 + $0xb0] sm:$0xff]  }
 0x534   : > { %v5581_v47 = vadd.f32 %v9343_v6, %v5540_v16  ;;  %v10536_v16 = vld [vmem:[%s14783_s8 + $0xa0] sm:$0xff]   ;;  %v10547_v6 = vld [vmem:[%s14783_s8 + $0xf8] sm:$0xff]  }
 0x54e   : > { %v5618_v43 = vpop.f32.mrb[56].mxu1 }
 0x54f   : > { %v5619_v0 = vadd.f32 %v5618_v43, %v5578_v59  ;;  %v9701_v62 = vpop.f32.mrb[57].mxu1  ;;  %v10546_v59 = vld [vmem:[%s14783_s8 + $0x330] sm:$0xff]  }
 0x550   : > { %v5621_v4 = vpop.f32.mrb[58].mxu1  ;;  %v10555_v62 = vld [vmem:[%s14783_s8 + $0x148] sm:$0xff]  }
 0x551   : > { %v14046_v19 = vadd.f32 %v5621_v4, %v5581_v47  ;;  %v9702_v2 = vpop.f32.mrb[59].mxu1  ;;  %v14052_v32 = vmax.f32 %v5619_v0, 0.0  ;;  %v10549_v47 = vld [vmem:[%s14783_s8 + $0x378] sm:$0xff]  }
 0x552   : > { %v10554_v2 = vld [vmem:[%s14783_s8 + $0x400] sm:$0xff]  }
 0x553   : > { %v5642_v21 = vrot.slane %v14052_v32, 2  ;;  %v5636_v10 = vrot.slane %v14052_v32, 1  ;;  %v5660_v43 = vrot.slane %v14052_v32, 5  ;;  %v5687_v0 = vpack.c.bf16 %v14052_v32, %v14052_v32 }
 0x555   : > { %v5693_v38 = vpack.c.bf16 %v5642_v21, %v5642_v21  ;;  %v5690_v4 = vpack.c.bf16 %v5636_v10, %v5636_v10  ;;  %v10565_v21 = vld [vmem:[%s14783_s8 + $0x458] sm:$0xff]   ;;  %v10594_v10 = vld [vmem:[%s14783_s8 + $0x510] sm:$0xff]  }
 0x5ac   : > { %v5411_v55 = vpop.f32.mrb[40].mxu0 }
 0x5ad   : > { %v9719_v25 = vadd.f32 %v5411_v55, %v4041_v44  ;;  %v5413_v49 = vpop.f32.mrb[41].mxu0  ;;  %v5702_v55 = vpack.c.bf16 %v5660_v43, %v5660_v43  ;;  %v10598_v43 = vld [vmem:[%s14783_s8 + $0x518] sm:$0xff]  }
 0x5ae   : > { %v9720_v52 = vadd.f32 %v5413_v49, %v4045_v11  ;;  %v5415_v42 = vpop.f32.mrb[42].mxu0  ;;  %v10559_v49 = vld [vmem:[%s14783_s8 + $0x150] sm:$0xff]  }
 0x5af   : > { %v14054_v8 = vmax.f32 %v9719_v25, 0.0  ;;  %v14056_v58 = vadd.f32 %v5415_v42, %v4041_v44  ;;  %v5417_v36 = vpop.f32.mrb[43].mxu0  ;;  %v10556_v25 = vld [vmem:[%s14783_s8 + $0x108] sm:$0xff]   ;;  %v10561_v42 = vld [vmem:[%s14783_s8 + $0x450] sm:$0xff]  }
 0x5b0   : > { %v14058_v60 = vmax.f32 %v9720_v52, 0.0  ;;  %v14060_v34 = vadd.f32 %v5417_v36, %v4045_v11  ;;  %v10557_v11 = vld [vmem:[%s14783_s8 + $0x448] sm:$0xff]   ;;  %v10560_v36 = vld [vmem:[%s14783_s8 + $0x110] sm:$0xff]  }
 0x5b1   : > { %v5646_v3 = vrot.slane %v14054_v8, 3  ;;  %v5634_v17 = vrot.slane %v14054_v8, 1  ;;  %v5685_v39 = vpack.c.bf16 %v14054_v8, %v14054_v8  ;;  %v5652_v14 = vrot.slane %v14054_v8, 4  ;;  %v10558_v52 = vld [vmem:[%s14783_s8 + $0x408] sm:$0xff]  }
 0x5b2   : > { %v5686_v54 = vpack.c.bf16 %v14058_v60, %v14058_v60  ;;  %v5653_v1 = vrot.slane %v14058_v60, 4 }
 0x5b3   : > { %v5694_v5 = vpack.c.bf16 %v5646_v3, %v5646_v3  ;;  %v5688_v33 = vpack.c.bf16 %v5634_v17, %v5634_v17  ;;  %v5697_v44 = vpack.c.bf16 %v5652_v14, %v5652_v14  ;;  %v10563_v3 = vld [vmem:[%s14783_s8 + $0x158] sm:$0xff]   ;;  %v10562_v17 = vld [vmem:[%s14783_s8 + $0x410] sm:$0xff]  }
 0x5b4   : > { %7667 = vmatprep.mubr.bf16.mxu1 %v5686_v54  ;;  %v5698_v63 = vpack.c.bf16 %v5653_v1, %v5653_v1  ;;  %v10564_v54 = vld [vmem:[%s14783_s8 + $0x118] sm:$0xff]  }
 0x5b5   : > { %7668 = vmatmul.mubr.bf16.vlgmr.msra.gmra.mrb[60].mxu1 %v5685_v39  ;;  %7827 = vmatprep.mubr.bf16.mxu0 %v5694_v5  ;;  %v10566_v1 = vld [vmem:[%s14783_s8 + $0x418] sm:$0xff]   ;;  %v10569_v39 = vld [vmem:[%s14783_s8 + $0x460] sm:$0xff]  }
 0x5b6   : > { %9376 = vmatpush3.bf16.msra.mxu1 %v10520_v18  ;;  %7707 = vmatprep.mubr.bf16.mxu1 %v5688_v33  ;;  %v10567_v18 = vld [vmem:[%s14783_s8 + $0x160] sm:$0xff]   ;;  %v10571_v33 = vld [vmem:[%s14783_s8 + $0x168] sm:$0xff]   ;;  %v10597_v14 = vld [vmem:[%s14783_s8 + $0x558] sm:$0xff]  }
 0x5b7   : > { %7828 = vmatmul.mubr.bf16.vlgmr.msra.gmra.mrb[44].mxu0 %v5693_v38  ;;  %9377 = vmatprep.subr.bf16.mxu1 %v10523_v29  ;;  %v10568_v5 = vld [vmem:[%s14783_s8 + $0x120] sm:$0xff]   ;;  %v10575_v38 = vld [vmem:[%s14783_s8 + $0x170] sm:$0xff]  }
 0x5b8   : > { %9486 = vmatpush3.bf16.msra.mxu0 %v10522_v53  ;;  %7907 = vmatprep.mubr.bf16.mxu0 %v5698_v63  ;;  %v10570_v29 = vld [vmem:[%s14783_s8 + $0x420] sm:$0xff]   ;;  %v10573_v53 = vld [vmem:[%s14783_s8 + $0x468] sm:$0xff]  }
 0x5b9   : > { %9487 = vmatprep.subr.bf16.mxu0 %v10525_v9  ;;  %v10572_v63 = vld [vmem:[%s14783_s8 + $0x128] sm:$0xff]  }
 0x5ba   : > { %9378 = vmatpush3.bf16.msra.mxu1 %v10524_v50  ;;  %v10574_v9 = vld [vmem:[%s14783_s8 + $0x428] sm:$0xff]   ;;  %v10577_v50 = vld [vmem:[%s14783_s8 + $0x470] sm:$0xff]  }
 0x5bb   : > { %9379 = vmatprep.subr.bf16.mxu1 %v10527_v48  ;;  %v10576_v48 = vld [vmem:[%s14783_s8 + $0x130] sm:$0xff]  }
 0x5bc   : > { %9488 = vmatpush3.bf16.msra.mxu0 %v10526_v41  ;;  %v10579_v41 = vld [vmem:[%s14783_s8 + $0x178] sm:$0xff]  }
 0x5bd   : > { %9489 = vmatprep.subr.bf16.mxu0 %v10529_v28  ;;  %v10578_v28 = vld [vmem:[%s14783_s8 + $0x430] sm:$0xff]  }
 0x5be   : > { %9380 = vmatpush3.bf16.msra.mxu1 %v10528_v15  ;;  %v10581_v15 = vld [vmem:[%s14783_s8 + $0x478] sm:$0xff]  }
 0x5bf   : > { %9381 = vmatprep.subr.bf16.mxu1 %v10531_v31  ;;  %v10580_v31 = vld [vmem:[%s14783_s8 + $0x138] sm:$0xff]  }
 0x5c0   : > { %9490 = vmatpush3.bf16.msra.mxu0 %v10530_v7  ;;  %v5635_v7 = vrot.slane %v14058_v60, 1 }
 0x5c1   : > { %9491 = vmatprep.subr.bf16.mxu0 %v10533_v61  ;;  %v10583_v61 = vld [vmem:[%s14783_s8 + $0x1c0] sm:$0xff]  }
 0x5c2   : > { %9382 = vmatpush3.bf16.msra.mxu1 %v10532_v27  ;;  %v10582_v27 = vld [vmem:[%s14783_s8 + $0x438] sm:$0xff]  }
 0x5c3   : > { %9383 = vmatprep.subr.bf16.mxu1 %v10535_v20  ;;  %v5641_v20 = vrot.slane %v14058_v60, 2 }
 0x5c4   : > { %9492 = vmatpush3.bf16.msra.mxu0 %v10534_v13  ;;  %v5659_v13 = vrot.slane %v14058_v60, 5 }
 0x5c5   : > { %9493 = vmatprep.subr.bf16.mxu0 %v10537_v37  ;;  %v10585_v37 = vld [vmem:[%s14783_s8 + $0x540] sm:$0xff]  }
 0x5c6   : > { %9384 = vmatpush3.bf16.msra.mxu1 %v10536_v16  ;;  %v10584_v16 = vld [vmem:[%s14783_s8 + $0x180] sm:$0xff]  }
 0x5c7   : > { %9385 = vmatprep.subr.bf16.mxu1 %v10539_v56  ;;  %v5670_v56 = vrot.slane %v14054_v8, 7 }
 0x5c8   : > { %9494 = vmatpush3.bf16.msra.mxu0 %v10538_v22  ;;  %v5689_v22 = vpack.c.bf16 %v5635_v7, %v5635_v7  ;;  %v10624_v7 = vld [vmem:[%s14783_s8 + $0x290] sm:$0xff]  }
 0x5c9   : > { %9495 = vmatprep.subr.bf16.mxu0 %v10541_v26  ;;  %v10587_v26 = vld [vmem:[%s14783_s8 + $0x1c8] sm:$0xff]  }
 0x5ca   : > { %9386 = vmatpush3.bf16.msra.mxu1 %v10540_v57  ;;  %v5692_v57 = vpack.c.bf16 %v5641_v20, %v5641_v20  ;;  %v10629_v20 = vld [vmem:[%s14783_s8 + $0x658] sm:$0xff]  }
 0x5cb   : > { %9387 = vmatprep.subr.bf16.mxu1 %v10543_v35  ;;  %v10586_v35 = vld [vmem:[%s14783_s8 + $0x500] sm:$0xff]  }
 0x5cc   : > { %9496 = vmatpush3.bf16.msra.mxu0 %v10542_v46  ;;  %v5701_v46 = vpack.c.bf16 %v5659_v13, %v5659_v13  ;;  %v10628_v13 = vld [vmem:[%s14783_s8 + $0x298] sm:$0xff]  }
 0x5cd   : > { %9497 = vmatprep.subr.bf16.mxu0 %v10545_v51  ;;  %v10589_v51 = vld [vmem:[%s14783_s8 + $0x548] sm:$0xff]  }
 0x5ce   : > { %9388 = vmatpush3.bf16.msra.mxu1 %v10544_v30  ;;  %v5706_v30 = vpack.c.bf16 %v5670_v56, %v5670_v56  ;;  %v10633_v56 = vld [vmem:[%s14783_s8 + $0x660] sm:$0xff]  }
 0x5cf   : > { %9389 = vmatprep.subr.bf16.mxu1 %v10547_v6  ;;  %v10588_v6 = vld [vmem:[%s14783_s8 + $0x188] sm:$0xff]  }
 0x5d0   : > { %9498 = vmatpush3.bf16.msra.mxu0 %v10546_v59  ;;  %v10591_v59 = vld [vmem:[%s14783_s8 + $0x1d0] sm:$0xff]  }
 0x5d1   : > { %9499 = vmatprep.subr.bf16.mxu0 %v10549_v47  ;;  %v10590_v47 = vld [vmem:[%s14783_s8 + $0x508] sm:$0xff]  }
 0x5d2   : > { %9390 = vmatpush3.bf16.msra.mxu1 %v10548_v12  ;;  %v10593_v12 = vld [vmem:[%s14783_s8 + $0x550] sm:$0xff]  }
 0x5d3   : > { %9397 = vmatprep.subr.bf16.mxu1 %v10551_v24  ;;  %v10592_v24 = vld [vmem:[%s14783_s8 + $0x190] sm:$0xff]  }
 0x5d4   : > { %9500 = vmatpush3.bf16.msra.mxu0 %v10550_v23  ;;  %v10595_v23 = vld [vmem:[%s14783_s8 + $0x1d8] sm:$0xff]  }
 0x5d5   : > { %7708 = vmatmul.mubr.bf16.vlgmr.msra.gmra.mrb[64].mxu1 %v5687_v0  ;;  %9529 = vmatprep.subr.bf16.mxu0 %v10553_v40  ;;  %v10596_v40 = vld [vmem:[%s14783_s8 + $0x198] sm:$0xff]   ;;  %v10601_v0 = vld [vmem:[%s14783_s8 + $0x560] sm:$0xff]  }
 0x5d6   : > { %9398 = vmatpush3.bf16.msra.mxu1 %v10552_v45  ;;  %7747 = vmatprep.mubr.bf16.mxu1 %v5690_v4  ;;  %v10599_v45 = vld [vmem:[%s14783_s8 + $0x1e0] sm:$0xff]   ;;  %v10603_v4 = vld [vmem:[%s14783_s8 + $0x1e8] sm:$0xff]  }
 0x5d7   : > { %7908 = vmatmul.mubr.bf16.vlgmr.msra.gmra.mrb[48].mxu0 %v5697_v44  ;;  %9399 = vmatprep.subr.bf16.mxu1 %v10555_v62  ;;  %v10600_v62 = vld [vmem:[%s14783_s8 + $0x1a0] sm:$0xff]   ;;  %v10605_v44 = vld [vmem:[%s14783_s8 + $0x568] sm:$0xff]  }
 0x5d8   : > { %9530 = vmatpush3.bf16.msra.mxu0 %v10554_v2  ;;  %7987 = vmatprep.mubr.bf16.mxu0 %v5702_v55  ;;  %v10602_v2 = vld [vmem:[%s14783_s8 + $0x520] sm:$0xff]   ;;  %v10607_v55 = vld [vmem:[%s14783_s8 + $0x1f0] sm:$0xff]  }
 0x5d9   : > { %9531 = vmatprep.subr.bf16.mxu0 %v10557_v11  ;;  %v10604_v11 = vld [vmem:[%s14783_s8 + $0x1a8] sm:$0xff]  }
 0x5da   : > { %9400 = vmatpush3.bf16.msra.mxu1 %v10556_v25  ;;  %v10606_v25 = vld [vmem:[%s14783_s8 + $0x528] sm:$0xff]  }
 0x5db   : > { %9401 = vmatprep.subr.bf16.mxu1 %v10559_v49  ;;  %v10609_v49 = vld [vmem:[%s14783_s8 + $0x570] sm:$0xff]  }
 0x5dc   : > { %9532 = vmatpush3.bf16.msra.mxu0 %v10558_v52  ;;  %v10608_v52 = vld [vmem:[%s14783_s8 + $0x1b0] sm:$0xff]  }
 0x5dd   : > { %9533 = vmatprep.subr.bf16.mxu0 %v10561_v42  ;;  %v10611_v42 = vld [vmem:[%s14783_s8 + $0x1f8] sm:$0xff]  }
 0x5de   : > { %9402 = vmatpush3.bf16.msra.mxu1 %v10560_v36  ;;  %v10610_v36 = vld [vmem:[%s14783_s8 + $0x530] sm:$0xff]  }
 0x5df   : > { %9403 = vmatprep.subr.bf16.mxu1 %v10563_v3  ;;  %v10613_v3 = vld [vmem:[%s14783_s8 + $0x578] sm:$0xff]  }
 0x5e0   : > { %9534 = vmatpush3.bf16.msra.mxu0 %v10562_v17  ;;  %v10612_v17 = vld [vmem:[%s14783_s8 + $0x1b8] sm:$0xff]  }
 0x5e1   : > { %9535 = vmatprep.subr.bf16.mxu0 %v10565_v21  ;;  %v5640_v21 = vrot.slane %v14054_v8, 2 }
 0x5e2   : > { %9404 = vmatpush3.bf16.msra.mxu1 %v10564_v54  ;;  %v10615_v54 = vld [vmem:[%s14783_s8 + $0x2c0] sm:$0xff]  }
 0x5e3   : > { %9405 = vmatprep.subr.bf16.mxu1 %v10567_v18  ;;  %v10614_v18 = vld [vmem:[%s14783_s8 + $0x538] sm:$0xff]  }
 0x5e4   : > { %9536 = vmatpush3.bf16.msra.mxu0 %v10566_v1  ;;  %v5648_v1 = vrot.slane %v14052_v32, 3 }
 0x5e5   : > { %9537 = vmatprep.subr.bf16.mxu0 %v10569_v39  ;;  %v5666_v39 = vrot.slane %v14052_v32, 6 }
 0x5e6   : > { %9406 = vmatpush3.bf16.msra.mxu1 %v10568_v5  ;;  %v10617_v5 = vld [vmem:[%s14783_s8 + $0x640] sm:$0xff]  }
 0x5e7   : > { %9407 = vmatprep.subr.bf16.mxu1 %v10571_v33  ;;  %v14371_v33 = vmax.f32 %v14060_v34, 0.0  ;;  %v5705_v34 = vpack.c.bf16 %v5666_v39, %v5666_v39  ;;  %v10663_v39 = vld [vmem:[%s14783_s8 + $0x3e0] sm:$0xff]  }
 0x5e8   : > { %9538 = vmatpush3.bf16.msra.mxu0 %v10570_v29  ;;  %v10616_v29 = vld [vmem:[%s14783_s8 + $0x280] sm:$0xff]  }
 0x5e9   : > { %9539 = vmatprep.subr.bf16.mxu0 %v10573_v53  ;;  %v5691_v53 = vpack.c.bf16 %v5640_v21, %v5640_v21  ;;  %v10659_v21 = vld [vmem:[%s14783_s8 + $0x3d8] sm:$0xff]  }
 0x5ea   : > { %9408 = vmatpush3.bf16.msra.mxu1 %v10572_v63  ;;  %v10619_v63 = vld [vmem:[%s14783_s8 + $0x2c8] sm:$0xff]  }
 0x5eb   : > { %9409 = vmatprep.subr.bf16.mxu1 %v10575_v38  ;;  %v5696_v38 = vpack.c.bf16 %v5648_v1, %v5648_v1  ;;  %v10660_v1 = vld [vmem:[%s14783_s8 + $0x398] sm:$0xff]  }
 0x5ec   : > { %9540 = vmatpush3.bf16.msra.mxu0 %v10574_v9  ;;  %v10618_v9 = vld [vmem:[%s14783_s8 + $0x600] sm:$0xff]  }
 0x5ed   : > { %9541 = vmatprep.subr.bf16.mxu0 %v10577_v50  ;;  %v10621_v50 = vld [vmem:[%s14783_s8 + $0x648] sm:$0xff]  }
 0x5ee   : > { %9410 = vmatpush3.bf16.msra.mxu1 %v10576_v48  ;;  %v5710_v48 = vpack.c.bf16 %v14371_v33, %v14371_v33 }
 0x5ef   : > { %9411 = vmatprep.subr.bf16.mxu1 %v10579_v41  ;;  %v10620_v41 = vld [vmem:[%s14783_s8 + $0x288] sm:$0xff]  }
 0x5f0   : > { %9542 = vmatpush3.bf16.msra.mxu0 %v10578_v28  ;;  %v10623_v28 = vld [vmem:[%s14783_s8 + $0x2d0] sm:$0xff]  }
 0x5f1   : > { %9543 = vmatprep.subr.bf16.mxu0 %v10581_v15  ;;  %v10622_v15 = vld [vmem:[%s14783_s8 + $0x608] sm:$0xff]  }
 0x5f2   : > { %9412 = vmatpush3.bf16.msra.mxu1 %v10580_v31  ;;  %v10625_v31 = vld [vmem:[%s14783_s8 + $0x650] sm:$0xff]  }
 0x5f3   : > { %9419 = vmatprep.subr.bf16.mxu1 %v10583_v61  ;;  %v10627_v61 = vld [vmem:[%s14783_s8 + $0x2d8] sm:$0xff]  }
 0x5f4   : > { %9544 = vmatpush3.bf16.msra.mxu0 %v10582_v27  ;;  %v10626_v27 = vld [vmem:[%s14783_s8 + $0x610] sm:$0xff]  }
 0x5f5   : > { %7748 = vmatmul.mubr.bf16.vlgmr.msra.gmra.mrb[68].mxu1 %v5689_v22  ;;  %9573 = vmatprep.subr.bf16.mxu0 %v10585_v37  ;;  %v10631_v37 = vld [vmem:[%s14783_s8 + $0x2e0] sm:$0xff]  }
 0x5f6   : > { %9420 = vmatpush3.bf16.msra.mxu1 %v10584_v16  ;;  %7787 = vmatprep.mubr.bf16.mxu1 %v5692_v57  ;;  %v10630_v16 = vld [vmem:[%s14783_s8 + $0x618] sm:$0xff]   ;;  %v10632_v22 = vld [vmem:[%s14783_s8 + $0x2a0] sm:$0xff]  }
 0x5f7   : > { %7988 = vmatmul.mubr.bf16.vlgmr.msra.gmra.mrb[52].mxu0 %v5701_v46  ;;  %9421 = vmatprep.subr.bf16.mxu1 %v10587_v26  ;;  %v10635_v26 = vld [vmem:[%s14783_s8 + $0x2e8] sm:$0xff]   ;;  %v10634_v57 = vld [vmem:[%s14783_s8 + $0x620] sm:$0xff]  }
 0x5f8   : > { %9574 = vmatpush3.bf16.msra.mxu0 %v10586_v35  ;;  %8067 = vmatprep.mubr.bf16.mxu0 %v5706_v30  ;;  %v10637_v35 = vld [vmem:[%s14783_s8 + $0x668] sm:$0xff]  }
 0x5f9   : > { %9575 = vmatprep.subr.bf16.mxu0 %v10589_v51  ;;  %v10636_v46 = vld [vmem:[%s14783_s8 + $0x2a8] sm:$0xff]   ;;  %v10639_v51 = vld [vmem:[%s14783_s8 + $0x2f0] sm:$0xff]  }
 0x5fa   : > { %9422 = vmatpush3.bf16.msra.mxu1 %v10588_v6  ;;  %v10638_v30 = vld [vmem:[%s14783_s8 + $0x628] sm:$0xff]   ;;  %v10641_v6 = vld [vmem:[%s14783_s8 + $0x670] sm:$0xff]  }
 0x5fb   : > { %9423 = vmatprep.subr.bf16.mxu1 %v10591_v59  ;;  %v10640_v59 = vld [vmem:[%s14783_s8 + $0x2b0] sm:$0xff]  }
 0x5fc   : > { %9576 = vmatpush3.bf16.msra.mxu0 %v10590_v47  ;;  %v10643_v47 = vld [vmem:[%s14783_s8 + $0x2f8] sm:$0xff]  }
 0x5fd   : > { %9577 = vmatprep.subr.bf16.mxu0 %v10593_v12  ;;  %v10642_v12 = vld [vmem:[%s14783_s8 + $0x630] sm:$0xff]  }
 0x5fe   : > { %9424 = vmatpush3.bf16.msra.mxu1 %v10592_v24  ;;  %v10645_v24 = vld [vmem:[%s14783_s8 + $0x678] sm:$0xff]  }
 0x5ff   : > { %9425 = vmatprep.subr.bf16.mxu1 %v10595_v23  ;;  %v14460_v23 = vmax.f32 %v14046_v19, 0.0  ;;  %v5658_v19 = vrot.slane %v14054_v8, 5 }
 0x600   : > { %9578 = vmatpush3.bf16.msra.mxu0 %v10594_v10  ;;  %v10644_v10 = vld [vmem:[%s14783_s8 + $0x2b8] sm:$0xff]  }
 0x601   : > { %9579 = vmatprep.subr.bf16.mxu0 %v10597_v14  ;;  %v5647_v14 = vrot.slane %v14058_v60, 3 }
 0x602   : > { %9426 = vmatpush3.bf16.msra.mxu1 %v10596_v40  ;;  %v10647_v40 = vld [vmem:[%s14783_s8 + $0x3c0] sm:$0xff]  }
 0x603   : > { %9427 = vmatprep.subr.bf16.mxu1 %v10599_v45  ;;  %v10646_v45 = vld [vmem:[%s14783_s8 + $0x638] sm:$0xff]  }
 0x604   : > { %9580 = vmatpush3.bf16.msra.mxu0 %v10598_v43  ;;  %v14474_v43 = vmax.f32 %v14056_v58, 0.0  ;;  %v5700_v58 = vpack.c.bf16 %v5658_v19, %v5658_v19  ;;  %v5664_v19 = vrot.slane %v14054_v8, 6  ;;  %v10698_v8 = vld [vmem:[%s14783_s8 + $0x588] sm:$0xff]  }
 0x605   : > { %9581 = vmatprep.subr.bf16.mxu0 %v10601_v0  ;;  %v10649_v0 = vld [vmem:[%s14783_s8 + $0x740] sm:$0xff]  }
 0x606   : > { %9428 = vmatpush3.bf16.msra.mxu1 %v10600_v62  ;;  %v5681_v62 = vrot.slane %v14460_v23, 1 }
 0x607   : > { %9429 = vmatprep.subr.bf16.mxu1 %v10603_v4  ;;  %v10648_v4 = vld [vmem:[%s14783_s8 + $0x380] sm:$0xff]  }
 0x608   : > { %9582 = vmatpush3.bf16.msra.mxu0 %v10602_v2  ;;  %v5695_v2 = vpack.c.bf16 %v5647_v14, %v5647_v14  ;;  %v10692_v14 = vld [vmem:[%s14783_s8 + $0x4b0] sm:$0xff]  }
 0x609   : > { %9583 = vmatprep.subr.bf16.mxu0 %v10605_v44  ;;  %v10651_v44 = vld [vmem:[%s14783_s8 + $0x3c8] sm:$0xff]  }
 0x60a   : > { %9430 = vmatpush3.bf16.msra.mxu1 %v10604_v11  ;;  %v10650_v11 = vld [vmem:[%s14783_s8 + $0x700] sm:$0xff]  }
 0x60b   : > { %9431 = vmatprep.subr.bf16.mxu1 %v10607_v55  ;;  %v5709_v55 = vpack.c.bf16 %v14474_v43, %v14474_v43 }
 0x60c   : > { %9584 = vmatpush3.bf16.msra.mxu0 %v10606_v25  ;;  %v10653_v25 = vld [vmem:[%s14783_s8 + $0x748] sm:$0xff]  }
 0x60d   : > { %9585 = vmatprep.subr.bf16.mxu0 %v10609_v49  ;;  %v5714_v49 = vpack.c.bf16 %v5681_v62, %v5681_v62  ;;  %v5672_v62 = vrot.slane %v14052_v32, 7 }
 0x60e   : > { %9432 = vmatpush3.bf16.msra.mxu1 %v10608_v52  ;;  %v10652_v52 = vld [vmem:[%s14783_s8 + $0x388] sm:$0xff]  }
 0x60f   : > { %9433 = vmatprep.subr.bf16.mxu1 %v10611_v42  ;;  %v10655_v42 = vld [vmem:[%s14783_s8 + $0x3d0] sm:$0xff]  }
 0x610   : > { %9586 = vmatpush3.bf16.msra.mxu0 %v10610_v36  ;;  %v10654_v36 = vld [vmem:[%s14783_s8 + $0x708] sm:$0xff]  }
 0x611   : > { %9587 = vmatprep.subr.bf16.mxu0 %v10613_v3  ;;  %v10657_v3 = vld [vmem:[%s14783_s8 + $0x750] sm:$0xff]  }
 0x612   : > { %9434 = vmatpush3.bf16.msra.mxu1 %v10612_v17  ;;  %v10656_v17 = vld [vmem:[%s14783_s8 + $0x390] sm:$0xff]  }
 0x613   : > { %9463 = vmatprep.subr.bf16.mxu1 %v10615_v54  ;;  %v10658_v54 = vld [vmem:[%s14783_s8 + $0x710] sm:$0xff]  }
 0x614   : > { %9588 = vmatpush3.bf16.msra.mxu0 %v10614_v18  ;;  %v10661_v18 = vld [vmem:[%s14783_s8 + $0x758] sm:$0xff]  }
 0x615   : > { %7788 = vmatmul.mubr.bf16.vlgmr.msra.gmra.mrb[72].mxu1 %v5691_v53  ;;  %9617 = vmatprep.subr.bf16.mxu0 %v10617_v5  ;;  %v10662_v5 = vld [vmem:[%s14783_s8 + $0x718] sm:$0xff]   ;;  %v10664_v53 = vld [vmem:[%s14783_s8 + $0x3a0] sm:$0xff]  }
 0x616   : > { %9464 = vmatpush3.bf16.msra.mxu1 %v10616_v29  ;;  %7867 = vmatprep.mubr.bf16.mxu1 %v5696_v38  ;;  %v10665_v29 = vld [vmem:[%s14783_s8 + $0x760] sm:$0xff]  }
 0x617   : > { %8068 = vmatmul.mubr.bf16.vlgmr.msra.gmra.mrb[56].mxu0 %v5705_v34  ;;  %9465 = vmatprep.subr.bf16.mxu1 %v10619_v63  ;;  %v10667_v63 = vld [vmem:[%s14783_s8 + $0x3e8] sm:$0xff]   ;;  %v10666_v38 = vld [vmem:[%s14783_s8 + $0x720] sm:$0xff]  }
 0x618   : > { %9618 = vmatpush3.bf16.msra.mxu0 %v10618_v9  ;;  %8147 = vmatprep.mubr.bf16.mxu0 %v5710_v48  ;;  %v10669_v9 = vld [vmem:[%s14783_s8 + $0x768] sm:$0xff]  }
 0x619   : > { %9619 = vmatprep.subr.bf16.mxu0 %v10621_v50  ;;  %v10668_v34 = vld [vmem:[%s14783_s8 + $0x3a8] sm:$0xff]   ;;  %v10671_v50 = vld [vmem:[%s14783_s8 + $0x3f0] sm:$0xff]  }
 0x61a   : > { %9466 = vmatpush3.bf16.msra.mxu1 %v10620_v41  ;;  %v10670_v48 = vld [vmem:[%s14783_s8 + $0x728] sm:$0xff]   ;;  %v10673_v41 = vld [vmem:[%s14783_s8 + $0x770] sm:$0xff]  }
 0x61b   : > { %9467 = vmatprep.subr.bf16.mxu1 %v10623_v28  ;;  %v10672_v28 = vld [vmem:[%s14783_s8 + $0x3b0] sm:$0xff]  }
 0x61c   : > { %9620 = vmatpush3.bf16.msra.mxu0 %v10622_v15  ;;  %v10675_v15 = vld [vmem:[%s14783_s8 + $0x3f8] sm:$0xff]  }
 0x61d   : > { %9621 = vmatprep.subr.bf16.mxu0 %v10625_v31  ;;  %v10674_v31 = vld [vmem:[%s14783_s8 + $0x730] sm:$0xff]  }
 0x61e   : > { %9468 = vmatpush3.bf16.msra.mxu1 %v10624_v7  ;;  %v10677_v7 = vld [vmem:[%s14783_s8 + $0x778] sm:$0xff]  }
 0x61f   : > { %9469 = vmatprep.subr.bf16.mxu1 %v10627_v61  ;;  %v10676_v61 = vld [vmem:[%s14783_s8 + $0x3b8] sm:$0xff]  }
 0x620   : > { %9622 = vmatpush3.bf16.msra.mxu0 %v10626_v27  ;;  %v5654_v27 = vrot.slane %v14052_v32, 4  ;;  %v10699_v32 = vld [vmem:[%s14783_s8 + $0x5d0] sm:$0xff]  }
 0x621   : > { %9623 = vmatprep.subr.bf16.mxu0 %v10629_v20  ;;  %v10679_v20 = vld [vmem:[%s14783_s8 + $0x4c0] sm:$0xff]  }
 0x622   : > { %9470 = vmatpush3.bf16.msra.mxu1 %v10628_v13  ;;  %v10678_v13 = vld [vmem:[%s14783_s8 + $0x738] sm:$0xff]  }
 0x623   : > { %9471 = vmatprep.subr.bf16.mxu1 %v10631_v37  ;;  %v5665_v37 = vrot.slane %v14058_v60, 6 }
 0x624   : > { %9624 = vmatpush3.bf16.msra.mxu0 %v10630_v16  ;;  %v5680_v16 = vrot.slane %v14371_v33, 1  ;;  %v10682_v33 = vld [vmem:[%s14783_s8 + $0x488] sm:$0xff]  }
 0x625   : > { %9625 = vmatprep.subr.bf16.mxu0 %v10633_v56  ;;  %v10680_v56 = vld [vmem:[%s14783_s8 + $0x480] sm:$0xff]  }
 0x626   : > { %9472 = vmatpush3.bf16.msra.mxu1 %v10632_v22  ;;  %v5699_v22 = vpack.c.bf16 %v5654_v27, %v5654_v27  ;;  %v10717_v27 = vld [vmem:[%s14783_s8 + $0x6d8] sm:$0xff]  }
 0x627   : > { %9473 = vmatprep.subr.bf16.mxu1 %v10635_v26  ;;  %v10681_v26 = vld [vmem:[%s14783_s8 + $0x4c8] sm:$0xff]  }
 0x628   : > { %9626 = vmatpush3.bf16.msra.mxu0 %v10634_v57  ;;  %v5704_v57 = vpack.c.bf16 %v5665_v37, %v5665_v37  ;;  %v10720_v37 = vld [vmem:[%s14783_s8 + $0x6a0] sm:$0xff]  }
 0x629   : > { %9627 = vmatprep.subr.bf16.mxu0 %v10637_v35  ;;  %v5713_v35 = vpack.c.bf16 %v5680_v16, %v5680_v16  ;;  %v10721_v16 = vld [vmem:[%s14783_s8 + $0x6e8] sm:$0xff]  }
 0x62a   : > { %9474 = vmatpush3.bf16.msra.mxu1 %v10636_v46  ;;  %v10683_v46 = vld [vmem:[%s14783_s8 + $0x4d0] sm:$0xff]  }
 0x62b   : > { %9475 = vmatprep.subr.bf16.mxu1 %v10639_v51  ;;  %v10684_v51 = vld [vmem:[%s14783_s8 + $0x490] sm:$0xff]  }
 0x62c   : > { %9628 = vmatpush3.bf16.msra.mxu0 %v10638_v30  ;;  %v10685_v30 = vld [vmem:[%s14783_s8 + $0x4d8] sm:$0xff]  }
 0x62d   : > { %9629 = vmatprep.subr.bf16.mxu0 %v10641_v6  ;;  %v10686_v6 = vld [vmem:[%s14783_s8 + $0x498] sm:$0xff]  }
 0x62e   : > { %9476 = vmatpush3.bf16.msra.mxu1 %v10640_v59  ;;  %v10687_v59 = vld [vmem:[%s14783_s8 + $0x4e0] sm:$0xff]  }
 0x62f   : > { %9477 = vmatprep.subr.bf16.mxu1 %v10643_v47  ;;  %v10688_v47 = vld [vmem:[%s14783_s8 + $0x4a0] sm:$0xff]  }
 0x630   : > { %9630 = vmatpush3.bf16.msra.mxu0 %v10642_v12  ;;  %v10689_v12 = vld [vmem:[%s14783_s8 + $0x4e8] sm:$0xff]  }
 0x631   : > { %9631 = vmatprep.subr.bf16.mxu0 %v10645_v24  ;;  %v10690_v24 = vld [vmem:[%s14783_s8 + $0x4a8] sm:$0xff]  }
 0x632   : > { %9478 = vmatpush3.bf16.msra.mxu1 %v10644_v10  ;;  %v10691_v10 = vld [vmem:[%s14783_s8 + $0x4f0] sm:$0xff]  }
 0x633   : > { %9507 = vmatprep.subr.bf16.mxu1 %v10647_v40  ;;  %v10693_v40 = vld [vmem:[%s14783_s8 + $0x4f8] sm:$0xff]  }
 0x634   : > { %9632 = vmatpush3.bf16.msra.mxu0 %v10646_v45  ;;  %v10694_v45 = vld [vmem:[%s14783_s8 + $0x4b8] sm:$0xff]  }
 0x635   : > { %7868 = vmatmul.mubr.bf16.vlgmr.msra.gmra.mrb[76].mxu1 %v5695_v2  ;;  %9661 = vmatprep.subr.bf16.mxu0 %v10649_v0  ;;  %v10695_v0 = vld [vmem:[%s14783_s8 + $0x5c0] sm:$0xff]   ;;  %v5703_v2 = vpack.c.bf16 %v5664_v19, %v5664_v19 }
 0x636   : > { %9508 = vmatpush3.bf16.msra.mxu1 %v10648_v4  ;;  %7947 = vmatprep.mubr.bf16.mxu1 %v5700_v58  ;;  %v10696_v4 = vld [vmem:[%s14783_s8 + $0x580] sm:$0xff]   ;;  %v5708_v58 = vpack.c.bf16 %v5672_v62, %v5672_v62 }
 0x637   : > { %8148 = vmatmul.mubr.bf16.vlgmr.msra.gmra.mrb[60].mxu0 %v5709_v55  ;;  %9509 = vmatprep.subr.bf16.mxu1 %v10651_v44  ;;  %v10697_v44 = vld [vmem:[%s14783_s8 + $0x5c8] sm:$0xff]   ;;  %v10701_v55 = vld [vmem:[%s14783_s8 + $0x5d8] sm:$0xff]  }
 0x638   : > { %9662 = vmatpush3.bf16.msra.mxu0 %v10650_v11  ;;  %8227 = vmatprep.mubr.bf16.mxu0 %v5714_v49  ;;  %v10700_v11 = vld [vmem:[%s14783_s8 + $0x590] sm:$0xff]   ;;  %v10703_v49 = vld [vmem:[%s14783_s8 + $0x5e0] sm:$0xff]  }
 0x639   : > { %9663 = vmatprep.subr.bf16.mxu0 %v10653_v25  ;;  %v10702_v25 = vld [vmem:[%s14783_s8 + $0x598] sm:$0xff]  }
 0x63a   : > { %9510 = vmatpush3.bf16.msra.mxu1 %v10652_v52  ;;  %v10704_v52 = vld [vmem:[%s14783_s8 + $0x5a0] sm:$0xff]  }
 0x63b   : > { %9511 = vmatprep.subr.bf16.mxu1 %v10655_v42  ;;  %v10705_v42 = vld [vmem:[%s14783_s8 + $0x5e8] sm:$0xff]  }
 0x63c   : > { %9664 = vmatpush3.bf16.msra.mxu0 %v10654_v36  ;;  %v10706_v36 = vld [vmem:[%s14783_s8 + $0x5a8] sm:$0xff]  }
 0x63d   : > { %9665 = vmatprep.subr.bf16.mxu0 %v10657_v3  ;;  %v10707_v3 = vld [vmem:[%s14783_s8 + $0x5f0] sm:$0xff]  }
 0x63e   : > { %9512 = vmatpush3.bf16.msra.mxu1 %v10656_v17 }
 0x63f   : > { %9513 = vmatprep.subr.bf16.mxu1 %v10659_v21 }
 0x640   : > { %9666 = vmatpush3.bf16.msra.mxu0 %v10658_v54 }
 0x641   : > { %9667 = vmatprep.subr.bf16.mxu0 %v10661_v18 }
 0x642   : > { %9514 = vmatpush3.bf16.msra.mxu1 %v10660_v1 }
 0x643   : > { %9515 = vmatprep.subr.bf16.mxu1 %v10663_v39  ;;  %v10708_v39 = vld [vmem:[%s14783_s8 + $0x5b0] sm:$0xff]  }
 0x644   : > { %9668 = vmatpush3.bf16.msra.mxu0 %v10662_v5 }
 0x645   : > { %9669 = vmatprep.subr.bf16.mxu0 %v10665_v29 }
 0x646   : > { %9516 = vmatpush3.bf16.msra.mxu1 %v10664_v53  ;;  %v10709_v53 = vld [vmem:[%s14783_s8 + $0x5f8] sm:$0xff]  }
 0x647   : > { %9517 = vmatprep.subr.bf16.mxu1 %v10667_v63 }
 0x648   : > { %9670 = vmatpush3.bf16.msra.mxu0 %v10666_v38 }
 0x649   : > { %9671 = vmatprep.subr.bf16.mxu0 %v10669_v9 }
 0x64a   : > { %9518 = vmatpush3.bf16.msra.mxu1 %v10668_v34  ;;  %v10710_v34 = vld [vmem:[%s14783_s8 + $0x5b8] sm:$0xff]  }
 0x64b   : > { %9519 = vmatprep.subr.bf16.mxu1 %v10671_v50  ;;  %v5671_v50 = vrot.slane %v14058_v60, 7  ;;  %v10714_v60 = vld [vmem:[%s14783_s8 + $0x688] sm:$0xff]  }
 0x64c   : > { %9672 = vmatpush3.bf16.msra.mxu0 %v10670_v48  ;;  %v10711_v48 = vld [vmem:[%s14783_s8 + $0x6c0] sm:$0xff]  }
 0x64d   : > { %9673 = vmatprep.subr.bf16.mxu0 %v10673_v41  ;;  %v5679_v41 = vrot.slane %v14474_v43, 1  ;;  %v10715_v43 = vld [vmem:[%s14783_s8 + $0x6d0] sm:$0xff]  }
 0x64e   : > { %9520 = vmatpush3.bf16.msra.mxu1 %v10672_v28  ;;  %v10712_v28 = vld [vmem:[%s14783_s8 + $0x680] sm:$0xff]  }
 0x64f   : > { %9521 = vmatprep.subr.bf16.mxu1 %v10675_v15  ;;  %v5707_v15 = vpack.c.bf16 %v5671_v50, %v5671_v50 }
 0x650   : > { %9674 = vmatpush3.bf16.msra.mxu0 %v10674_v31  ;;  %v10713_v31 = vld [vmem:[%s14783_s8 + $0x6c8] sm:$0xff]  }
 0x651   : > { %9675 = vmatprep.subr.bf16.mxu0 %v10677_v7  ;;  %v5712_v7 = vpack.c.bf16 %v5679_v41, %v5679_v41 }
 0x652   : > { %9522 = vmatpush3.bf16.msra.mxu1 %v10676_v61  ;;  %v10716_v61 = vld [vmem:[%s14783_s8 + $0x690] sm:$0xff]  }
 0x653   : > { %9551 = vmatprep.subr.bf16.mxu1 %v10679_v20  ;;  %v10718_v20 = vld [vmem:[%s14783_s8 + $0x698] sm:$0xff]  }
 0x654   : > { %9676 = vmatpush3.bf16.msra.mxu0 %v10678_v13  ;;  %v10719_v13 = vld [vmem:[%s14783_s8 + $0x6e0] sm:$0xff]  }
 0x655   : > { %7948 = vmatmul.mubr.bf16.vlgmr.msra.gmra.mrb[80].mxu1 %v5699_v22  ;;  %v10723_v22 = vld [vmem:[%s14783_s8 + $0x6f0] sm:$0xff]  }
 0x656   : > { %9552 = vmatpush3.bf16.msra.mxu1 %v10680_v56  ;;  %8027 = vmatprep.mubr.bf16.mxu1 %v5704_v57  ;;  %v10722_v56 = vld [vmem:[%s14783_s8 + $0x6a8] sm:$0xff]  }
 0x657   : > { %8228 = vmatmul.mubr.bf16.vlgmr.msra.gmra.mrb[64].mxu0 %v5713_v35  ;;  %9553 = vmatprep.subr.bf16.mxu1 %v10681_v26 }
 0x65a   : > { %9554 = vmatpush3.bf16.msra.mxu1 %v10682_v33 }
 0x65b   : > { %9555 = vmatprep.subr.bf16.mxu1 %v10683_v46 }
 0x65e   : > { %9556 = vmatpush3.bf16.msra.mxu1 %v10684_v51  ;;  %v10724_v51 = vld [vmem:[%s14783_s8 + $0x6b0] sm:$0xff]  }
 0x65f   : > { %9557 = vmatprep.subr.bf16.mxu1 %v10685_v30 }
 0x662   : > { %9558 = vmatpush3.bf16.msra.mxu1 %v10686_v6 }
 0x663   : > { %9559 = vmatprep.subr.bf16.mxu1 %v10687_v59  ;;  %v10725_v59 = vld [vmem:[%s14783_s8 + $0x6f8] sm:$0xff]  }
 0x666   : > { %9560 = vmatpush3.bf16.msra.mxu1 %v10688_v47 }
 0x667   : > { %9561 = vmatprep.subr.bf16.mxu1 %v10689_v12 }
 0x66a   : > { %9562 = vmatpush3.bf16.msra.mxu1 %v10690_v24 }
 0x66b   : > { %9563 = vmatprep.subr.bf16.mxu1 %v10691_v10 }
 0x66e   : > { %9564 = vmatpush3.bf16.msra.mxu1 %v10692_v14  ;;  %v10726_v14 = vld [vmem:[%s14783_s8 + $0x6b8] sm:$0xff]  }
 0x66f   : > { %9565 = vmatprep.subr.bf16.mxu1 %v10693_v40  ;;  %v5711_v40 = vpack.c.bf16 %v14460_v23, %v14460_v23 }
 0x672   : > { %9566 = vmatpush3.bf16.msra.mxu1 %v10694_v45 }
 0x673   : > { %9595 = vmatprep.subr.bf16.mxu1 %v10695_v0 }
 0x675   : > { %8028 = vmatmul.mubr.bf16.vlgmr.msra.gmra.mrb[84].mxu1 %v5703_v2 }
 0x676   : > { %9596 = vmatpush3.bf16.msra.mxu1 %v10696_v4  ;;  %8107 = vmatprep.mubr.bf16.mxu1 %v5708_v58 }
 0x677   : > { %9597 = vmatprep.subr.bf16.mxu1 %v10697_v44 }
 0x67a   : > { %9598 = vmatpush3.bf16.msra.mxu1 %v10698_v8 }
 0x67b   : > { %9599 = vmatprep.subr.bf16.mxu1 %v10699_v32 }
 0x67e   : > { %9600 = vmatpush3.bf16.msra.mxu1 %v10700_v11 }
 0x67f   : > { %9601 = vmatprep.subr.bf16.mxu1 %v10701_v55 }
 0x682   : > { %9602 = vmatpush3.bf16.msra.mxu1 %v10702_v25 }
 0x683   : > { %9603 = vmatprep.subr.bf16.mxu1 %v10703_v49 }
 0x686   : > { %9604 = vmatpush3.bf16.msra.mxu1 %v10704_v52 }
 0x687   : > { %9605 = vmatprep.subr.bf16.mxu1 %v10705_v42 }
 0x688   : > { %v9369_v17 = vpop.f32.mrb[60].mxu1 }
 0x689   : > { %v9370_v21 = vpop.f32.mrb[61].mxu1 }
 0x68a   : > { %v9371_v54 = vadd.f32 %v9370_v21, %v9369_v17  ;;  %v9457_v18 = vpop.f32.mrb[44].mxu0  ;;  %9606 = vmatpush3.bf16.msra.mxu1 %v10706_v36  ;;  %v9372_v1 = vpop.f32.mrb[62].mxu1 }
 0x68b   : > { %v9458_v5 = vpop.f32.mrb[45].mxu0  ;;  %v9373_v29 = vpop.f32.mrb[63].mxu1  ;;  %9607 = vmatprep.subr.bf16.mxu1 %v10707_v3 }
 0x68c   : > { %v14670_v63 = vadd.f32 %v9458_v5, %v9457_v18  ;;  %v9460_v38 = vpop.f32.mrb[46].mxu0 }
 0x68d   : > { %v9461_v9 = vpop.f32.mrb[47].mxu0 }
 0x68e   : > { %9608 = vmatpush3.bf16.msra.mxu1 %v10708_v39 }
 0x68f   : > { %9609 = vmatprep.subr.bf16.mxu1 %v10709_v53 }
 0x692   : > { %9610 = vmatpush3.bf16.msra.mxu1 %v10710_v34 }
 0x693   : > { %9639 = vmatprep.subr.bf16.mxu1 %v10711_v48 }
 0x695   : > { %8108 = vmatmul.mubr.bf16.vlgmr.msra.gmra.mrb[88].mxu1 %v5707_v15 }
 0x696   : > { %9640 = vmatpush3.bf16.msra.mxu1 %v10712_v28  ;;  %8187 = vmatprep.mubr.bf16.mxu1 %v5712_v7 }
 0x697   : > { %9641 = vmatprep.subr.bf16.mxu1 %v10713_v31 }
 0x69a   : > { %9642 = vmatpush3.bf16.msra.mxu1 %v10714_v60 }
 0x69b   : > { %9643 = vmatprep.subr.bf16.mxu1 %v10715_v43 }
 0x69e   : > { %9644 = vmatpush3.bf16.msra.mxu1 %v10716_v61 }
 0x69f   : > { %9645 = vmatprep.subr.bf16.mxu1 %v10717_v27 }
 0x6a2   : > { %9646 = vmatpush3.bf16.msra.mxu1 %v10718_v20 }
 0x6a3   : > { %9647 = vmatprep.subr.bf16.mxu1 %v10719_v13 }
 0x6a6   : > { %9648 = vmatpush3.bf16.msra.mxu1 %v10720_v37 }
 0x6a7   : > { %9649 = vmatprep.subr.bf16.mxu1 %v10721_v16 }
 0x6a8   : > { %v9391_v26 = vpop.f32.mrb[64].mxu1 }
 0x6a9   : > { %v9392_v57 = vpop.f32.mrb[65].mxu1 }
 0x6aa   : > { %v9393_v35 = vadd.f32 %v9392_v57, %v9391_v26  ;;  %v9501_v33 = vpop.f32.mrb[48].mxu0  ;;  %v9394_v46 = vpop.f32.mrb[66].mxu1  ;;  %9650 = vmatpush3.bf16.msra.mxu1 %v10722_v56 }
 0x6ab   : > { %v9502_v30 = vpop.f32.mrb[49].mxu0  ;;  %v9395_v6 = vpop.f32.mrb[67].mxu1  ;;  %9651 = vmatprep.subr.bf16.mxu1 %v10723_v22 }
 0x6ac   : > { %v7710_v47 = vadd.f32 %v9393_v35, %v9371_v54  ;;  %v9503_v12 = vadd.f32 %v9502_v30, %v9501_v33  ;;  %v9504_v24 = vpop.f32.mrb[50].mxu0 }
 0x6ad   : > { %v9505_v10 = vpop.f32.mrb[51].mxu0 }
 0x6ae   : > { %9652 = vmatpush3.bf16.msra.mxu1 %v10724_v51 }
 0x6af   : > { %9653 = vmatprep.subr.bf16.mxu1 %v10725_v59 }
 0x6b2   : > { %9654 = vmatpush3.bf16.msra.mxu1 %v10726_v14 }
 0x6b5   : > { %8188 = vmatmul.mubr.bf16.vlgmr.msra.gmra.mrb[92].mxu1 %v5711_v40 }
 0x6c8   : > { %v9413_v45 = vpop.f32.mrb[68].mxu1 }
 0x6c9   : > { %v9414_v19 = vpop.f32.mrb[69].mxu1 }
 0x6ca   : > { %v9415_v0 = vadd.f32 %v9414_v19, %v9413_v45  ;;  %v9545_v62 = vpop.f32.mrb[52].mxu0  ;;  %v9416_v4 = vpop.f32.mrb[70].mxu1 }
 0x6cb   : > { %v9546_v2 = vpop.f32.mrb[53].mxu0  ;;  %v9417_v44 = vpop.f32.mrb[71].mxu1 }
 0x6cc   : > { %v7750_v58 = vadd.f32 %v9415_v0, %v7710_v47  ;;  %v9547_v8 = vadd.f32 %v9546_v2, %v9545_v62  ;;  %v9548_v32 = vpop.f32.mrb[54].mxu0 }
 0x6cd   : > { %v9549_v11 = vpop.f32.mrb[55].mxu0 }
 0x6e8   : > { %v9435_v55 = vpop.f32.mrb[72].mxu1 }
 0x6e9   : > { %v9436_v25 = vpop.f32.mrb[73].mxu1 }
 0x6ea   : > { %v9437_v49 = vadd.f32 %v9436_v25, %v9435_v55  ;;  %v9589_v52 = vpop.f32.mrb[56].mxu0  ;;  %v9438_v42 = vpop.f32.mrb[74].mxu1 }
 0x6eb   : > { %v9590_v36 = vpop.f32.mrb[57].mxu0  ;;  %v9439_v3 = vpop.f32.mrb[75].mxu1 }
 0x6ec   : > { %v7790_v23 = vadd.f32 %v9437_v49, %v7750_v58  ;;  %v9591_v17 = vadd.f32 %v9590_v36, %v9589_v52  ;;  %v9592_v21 = vpop.f32.mrb[58].mxu0 }
 0x6ed   : > { %v9593_v54 = vpop.f32.mrb[59].mxu0 }
 0x6ee   : > { %v7830_v18 = vadd.f32 %v14670_v63, %v7790_v23 }
 0x708   : > { %v9479_v1 = vpop.f32.mrb[76].mxu1 }
 0x709   : > { %v9480_v39 = vpop.f32.mrb[77].mxu1 }
 0x70a   : > { %v9481_v5 = vadd.f32 %v9480_v39, %v9479_v1  ;;  %v9633_v29 = vpop.f32.mrb[60].mxu0  ;;  %v9482_v53 = vpop.f32.mrb[78].mxu1 }
 0x70b   : > { %v9634_v38 = vpop.f32.mrb[61].mxu0  ;;  %v9483_v9 = vpop.f32.mrb[79].mxu1 }
 0x70c   : > { %v7870_v34 = vadd.f32 %v9481_v5, %v7830_v18  ;;  %v9635_v50 = vadd.f32 %v9634_v38, %v9633_v29  ;;  %v9636_v48 = vpop.f32.mrb[62].mxu0 }
 0x70d   : > { %v9637_v41 = vpop.f32.mrb[63].mxu0 }
 0x70e   : > { %v7910_v28 = vadd.f32 %v9503_v12, %v7870_v34 }
 0x728   : > { %v9523_v15 = vpop.f32.mrb[80].mxu1 }
 0x729   : > { %v9524_v31 = vpop.f32.mrb[81].mxu1 }
 0x72a   : > { %v9525_v7 = vadd.f32 %v9524_v31, %v9523_v15  ;;  %v9677_v60 = vpop.f32.mrb[64].mxu0  ;;  %v9526_v43 = vpop.f32.mrb[82].mxu1 }
 0x72b   : > { %v9678_v61 = vpop.f32.mrb[65].mxu0  ;;  %v9527_v27 = vpop.f32.mrb[83].mxu1 }
 0x72c   : > { %v7950_v63 = vadd.f32 %v9525_v7, %v7910_v28  ;;  %v9679_v20 = vadd.f32 %v9678_v61, %v9677_v60  ;;  %v9680_v13 = vpop.f32.mrb[66].mxu0 }
 0x72d   : > { %v9681_v37 = vpop.f32.mrb[67].mxu0 }
 0x72e   : > { %v7990_v16 = vadd.f32 %v9547_v8, %v7950_v63 }
 0x748   : > { %v9567_v56 = vpop.f32.mrb[84].mxu1 }
 0x749   : > { %v9568_v22 = vpop.f32.mrb[85].mxu1 }
 0x74a   : > { %v9569_v26 = vadd.f32 %v9568_v22, %v9567_v56  ;;  %v9570_v57 = vpop.f32.mrb[86].mxu1 }
 0x74b   : > { %v9571_v35 = vpop.f32.mrb[87].mxu1 }
 0x74c   : > { %v8030_v33 = vadd.f32 %v9569_v26, %v7990_v16 }
 0x74e   : > { %v8070_v46 = vadd.f32 %v9591_v17, %v8030_v33 }
 0x768   : > { %v9611_v51 = vpop.f32.mrb[88].mxu1 }
 0x769   : > { %v9612_v30 = vpop.f32.mrb[89].mxu1 }
 0x76a   : > { %v9613_v6 = vadd.f32 %v9612_v30, %v9611_v51  ;;  %v9614_v59 = vpop.f32.mrb[90].mxu1 }
 0x76b   : > { %v9615_v47 = vpop.f32.mrb[91].mxu1 }
 0x76c   : > { %v8110_v12 = vadd.f32 %v9613_v6, %v8070_v46 }
 0x76e   : > { %v8150_v24 = vadd.f32 %v9635_v50, %v8110_v12 }
 0x788   : > { %v9655_v10 = vpop.f32.mrb[92].mxu1 }
 0x789   : > { %v9656_v14 = vpop.f32.mrb[93].mxu1 }
 0x78a   : > { %v9657_v40 = vadd.f32 %v9656_v14, %v9655_v10  ;;  %v9658_v45 = vpop.f32.mrb[94].mxu1 }
 0x78b   : > { %v9659_v19 = vpop.f32.mrb[95].mxu1 }
 0x78c   : > { %v8190_v0 = vadd.f32 %v9657_v40, %v8150_v24 }
 0x78e   : > { %v8230_v62 = vadd.f32 %v9679_v20, %v8190_v0 }
 0x790   : > { %8235 = vst [vmem:[%s324_s23] sm:$0x1] %v8230_v62 }
 0x791   : > { %10815 = shalt.err (!%p10812_p3)
}
 0x792   : > { %s10816_s24 = scalar_lea.hbm %s14733_s29, 16  ;;  %s10820_s23 = scalar_lea.hbm %s14784_s9, 32 }
 0x793   : > { %p10817_p4 = scmp.ne.s32.totalorder %s14733_s29, %s10816_s24  ;;  %p10821_p9 = scmp.lt.u32.totalorder %s14733_s29, %s14784_s9 }
 0x794   : > { %p10822_p10 = scmp.lt.u32.totalorder %s10820_s23, %s10816_s24  ;;  %p10824_p12 = scmp.lt.u32.totalorder %s10816_s24, %s14733_s29 }
 0x795   : > { %p10818_p7 = pnand %p10817_p4, %p10959_p5 }
 0x796   : > { %p10823_p11 = por %p10822_p10, %p10821_p9 }
 0x797   : > { %p10819_p8 = pneg %p10818_p7 }
 0x798   : > { %p10825_p13 = por %p10824_p12, %p10823_p11 }
 0x79a   : > { %p10826_p0 = pnand %p10825_p13, %p10819_p8 }
 0x79c   : > { %10829 = shalt.err (!%p10826_p0)
}
 0x79d   : > { %9756 = dma.vmem_to_hbm [thread:$0]  (%p10959_p5), %s14735_s21, 16, %s14733_s29, %s8237_s14  }
 0x79e PF: > { %p9762_p1 = scmp.ge.s32.totalorder %s10864_s12, 2  ;;  %s8261_s16 = sand.u32 1, %s10852_s30  }
 0x79f   : > { %s8262_s13 = scalar_lea.sflag [#allocation3], %s8261_s16 }
 0x7a0   : > { %p9759_p2 = pnand %p9762_p1, %p10963_p6 }
 0x7a2   : > { %10847 = dma.done.wait (!%p9759_p2), %s8262_s13, 16  }
 0x7a3   : > { %10849 = vsyncadd (!%p9759_p2), %s8262_s13, 4294967280  ;;  %p19_p3 = scmp.ge.s32.totalorder %s10946_s15, 4   ;;  %s15002_s30 = smov %s10856_s10 }
 0x7a4   : > { %s15003_s10 = smov %s10860_s11  ;;  %s15004_s11 = smov %s10957_s18 }
 0x7a5   : > { %s15005_s12 = smov %s10946_s15  ;;  %21 = sbr.rel (!%p19_p3) target bundleno = 3 (0x3), region = 91 }
 0x7ac   :  { %8266 = vsyncpa [#allocation3], 1 }
 0x7ad   :  { %8268 = vsyncpa [#allocation3 + $0x1], 1 }

</bundles_post_ra>
